<compile_context>
chip_gen: v7x
topology: tpu7x:2x2x1
jax: 0.10.0
libtpu: 0.0.40
codegen_flags: <defaults>
</compile_context>

<pallas_src>
import functools

import jax
import jax.numpy as jnp
from jax.experimental import pallas as pl
from jax.experimental.pallas import tpu as pltpu

KERNEL_SIZE = 7
PAD = 3
LANE = 128
SUBLANE = 8


def _round_up(v, m):
    return (v + m - 1) // m * m


def block_kernel(x_ref, dww_ref, dwb_ref, lnw_ref, lnb_ref,
                 w1_ref, b1_ref, gamma_ref, beta_ref, w2_ref, b2_ref,
                 out_ref, *, nb, seq, l_true, c_true, h_true, approx_gelu):
    cp = x_ref.shape[2]          # lane-padded channel count
    hp = w1_ref.shape[1]         # lane-padded hidden (4C) count
    m = nb * seq                 # matmul M dim = samples-per-step * padded sequence length

    # (Nb, Lp, Cp) -> (Nb*Lp, Cp); Lp % 8 == 0 so this merge is layout-preserving.
    x = x_ref[...].reshape(m, cp)

    # Row position within its own sample (full lane shape -> plain same-shape selects).
    pos = jax.lax.broadcasted_iota(jnp.int32, (nb, seq, cp), 1).reshape(m, cp)

    # ---- depthwise conv1d (k=7, padding=3, groups=C) via XLU sublane rolls + edge masks ----
    # Rolling the merged (Nb*Lp, Cp) tile is safe: every row that would bleed across a sample
    # boundary is exactly a row that the Conv1d zero-padding would make read zeros, and the
    # per-tap mask zeroes it.
    dww = dww_ref[...]                                   # (7, Cp)
    acc = jnp.zeros((m, cp), jnp.float32)
    for k in range(KERNEL_SIZE):
        wk = dww[k:k + 1, :]                             # (1, Cp) broadcast over rows
        if k == PAD:
            acc = acc + x * wk                           # center tap: no shift, no mask
        else:
            s = PAD - k                                  # tap k reads x[row + k - PAD]
            rolled = pltpu.roll(x, shift=s % m, axis=0)  # static sublane rotate (XLU slot)
            valid = (pos >= s) if s > 0 else (pos < seq + s)
            acc = acc + jnp.where(valid, rolled, 0.0) * wk
    h = acc + dwb_ref[...]                               # (M, Cp)

    # ---- LayerNorm over channels (eps=1e-6); divide by the true C, mask padded lanes ----
    inv_c = 1.0 / c_true
    mu = jnp.sum(h, axis=-1, keepdims=True) * inv_c      # padded lanes of h are exactly 0
    d = h - mu
    d2 = d * d
    if c_true != cp:                                     # exclude zero-padded lanes from var
        lane = jax.lax.broadcasted_iota(jnp.int32, (1, cp), 1)
        d2 = jnp.where(lane < c_true, d2, 0.0)
    var = jnp.sum(d2, axis=-1, keepdims=True) * inv_c
    hn = d * jax.lax.rsqrt(var + 1e-6) * lnw_ref[...] + lnb_ref[...]

    # ---- pwconv1 (bf16 operands into the MXU, f32 accumulate) + GELU ----
    h1 = jnp.dot(hn.astype(jnp.bfloat16), w1_ref[...],
                 preferred_element_type=jnp.float32) + b1_ref[...]
    h1 = jax.nn.gelu(h1, approximate=approx_gelu)        # tanh path runs on the EUP

    # ---- GRN: per-sample L2 norm over the (true) sequence axis ----
    h1b = h1.reshape(nb, seq, hp)
    h1sq = h1b * h1b
    if l_true != seq:                                    # exclude zero-padded rows from the norm
        rowpos = jax.lax.broadcasted_iota(jnp.int32, (nb, seq, hp), 1)
        h1sq = jnp.where(rowpos < l_true, h1sq, 0.0)
    gx = jnp.sqrt(jnp.sum(h1sq, axis=1, keepdims=True))               # (Nb, 1, Hp)
    gmean = jnp.sum(gx, axis=-1, keepdims=True) * (1.0 / h_true)      # true-4C channel mean
    nx = gx * pl.reciprocal(gmean + 1e-6, approx=True)
    h1g = gamma_ref[...] * (h1b * nx) + beta_ref[...] + h1b           # (Nb, Lp, Hp)

    # ---- pwconv2 (bf16 operands, f32 accumulate) + residual; lane-dense store ----
    h2 = jnp.dot(h1g.reshape(m, hp).astype(jnp.bfloat16), w2_ref[...],
                 preferred_element_type=jnp.float32) + b2_ref[...]
    out_ref[...] = (x + h2).reshape(nb, seq, cp).astype(out_ref.dtype)


def convnextv2_block(x, params, *, block_n=None, approx_gelu=True):
    """ConvNeXtV2 Block forward. x: (N, C, L) float32 (PyTorch Conv1d layout)."""
    dww, dwb, lnw, lnb, w1, b1, gamma, beta, w2, b2 = params
    N, C, L = x.shape
    H = w1.shape[1]                                      # 4 * C
    assert dww.shape == (KERNEL_SIZE, C)

    Cp = _round_up(C, LANE)
    Hp = _round_up(H, LANE)
    Lp = _round_up(L, SUBLANE)

    if block_n is None:
        # A few samples per step so the matmul M dim is large, but keep the per-step
        # f32 (Nb*Lp, Hp) intermediate modest; prefer grid >= 2 (v7x has 2 TensorCores).
        cap = max(1, (8 << 20) // (4 * Hp * Lp))
        block_n = min(N, cap)
        if block_n == N and N > 1:
            block_n = max(1, N // 2)
    while N % block_n:
        block_n -= 1
    grid = N // block_n

    # ---- one-time layout plumbing (channels-last + lane/sublane padding), handled by XLA ----
    x_cl = jnp.transpose(x, (0, 2, 1)).astype(jnp.float32)   # (N, L, C)
    if Cp != C or Lp != L:
        x_cl = jnp.pad(x_cl, ((0, 0), (0, Lp - L), (0, Cp - C)))

    def row(v, n):                                       # 1-D param -> (1, n), zero-padded
        v = v.reshape(1, -1).astype(jnp.float32)
        return v if v.shape[1] == n else jnp.pad(v, ((0, 0), (0, n - v.shape[1])))

    def mat(w, r, c, dtype):                             # 2-D weight -> (r, c), zero-padded
        pr, pc = r - w.shape[0], c - w.shape[1]
        if pr or pc:
            w = jnp.pad(w, ((0, pr), (0, pc)))
        return w.astype(dtype)

    args = (x_cl,
            mat(dww, KERNEL_SIZE, Cp, jnp.float32), row(dwb, Cp),
            row(lnw, Cp), row(lnb, Cp),
            mat(w1, Cp, Hp, jnp.bfloat16), row(b1, Hp),
            row(gamma, Hp), row(beta, Hp),
            mat(w2, Hp, Cp, jnp.bfloat16), row(b2, Cp))

    full = lambda shape: pl.BlockSpec(shape, lambda b: (0,) * len(shape))
    # NOTE: constant-index weight/bias blocks are only DMA'd once (block index never changes);
    # on v7x (64 MiB VMEM) at production sizes consider pipeline_mode=pl.Buffered(1) for them
    # and an L-tile grid axis with a two-pass GRN.

    out_cl = pl.pallas_call(
        functools.partial(block_kernel, nb=block_n, seq=Lp, l_true=L,
                          c_true=C, h_true=H, approx_gelu=approx_gelu),
        out_shape=jax.ShapeDtypeStruct((N, Lp, Cp), x.dtype),
        grid_spec=pltpu.PrefetchScalarGridSpec(
            num_scalar_prefetch=0,
            grid=(grid,),
            in_specs=[
                pl.BlockSpec((block_n, Lp, Cp), lambda b: (b, 0, 0)),  # x (channels-last)
                full((KERNEL_SIZE, Cp)),                               # dwconv weight
                full((1, Cp)),                                         # dwconv bias
                full((1, Cp)), full((1, Cp)),                          # layernorm w, b
                full((Cp, Hp)), full((1, Hp)),                         # pwconv1 w (bf16), b
                full((1, Hp)), full((1, Hp)),                          # GRN gamma, beta
                full((Hp, Cp)), full((1, Cp)),                         # pwconv2 w (bf16), b
            ],
            out_specs=pl.BlockSpec((block_n, Lp, Cp), lambda b: (b, 0, 0)),
        ),
        compiler_params=pltpu.CompilerParams(
            dimension_semantics=("parallel",)),
    )(*args)

    if Cp != C or Lp != L:
        out_cl = out_cl[:, :L, :C]
    return jnp.transpose(out_cl, (0, 2, 1))


def reference_block(x, params, *, mm_dtype=jnp.float32, approx_gelu=False):
    """Pure-JAX reference mirroring the PyTorch forward (optionally bf16-matmul matched)."""
    dww, dwb, lnw, lnb, w1, b1, gamma, beta, w2, b2 = params
    N, C, L = x.shape
    xp = jnp.pad(x, ((0, 0), (0, 0), (PAD, PAD)))
    dw = sum(dww[k][None, :, None] * xp[:, :, k:k + L] for k in range(KERNEL_SIZE))
    dw = dw + dwb[None, :, None]                         # (N, C, L)
    h = jnp.transpose(dw, (0, 2, 1))                     # (N, L, C)
    mu = jnp.mean(h, axis=-1, keepdims=True)
    var = jnp.mean((h - mu) ** 2, axis=-1, keepdims=True)
    h = (h - mu) / jnp.sqrt(var + 1e-6) * lnw + lnb
    mm = lambda a, w: jnp.dot(a.astype(mm_dtype), w.astype(mm_dtype),
                              preferred_element_type=jnp.float32)
    h = mm(h, w1) + b1
    h = jax.nn.gelu(h, approximate=approx_gelu)
    gx = jnp.sqrt(jnp.sum(h * h, axis=1, keepdims=True))            # (N, 1, 4C)
    nx = gx / (jnp.mean(gx, axis=-1, keepdims=True) + 1e-6)
    h = gamma * (h * nx) + beta + h
    h = mm(h, w2) + b2
    return x + jnp.transpose(h, (0, 2, 1))


def _run_case(key, N, C, L):
    H = 4 * C
    ks = jax.random.split(key, 11)
    x = jax.random.normal(ks[0], (N, C, L), jnp.float32)

    dww = 0.2 * jax.random.normal(ks[1], (KERNEL_SIZE, C), jnp.float32)
    dwb = 0.1 * jax.random.normal(ks[2], (C,), jnp.float32)
    lnw = 1.0 + 0.1 * jax.random.normal(ks[3], (C,), jnp.float32)
    lnb = 0.1 * jax.random.normal(ks[4], (C,), jnp.float32)
    w1 = jax.random.normal(ks[5], (C, H), jnp.float32) * (C ** -0.5)
    b1 = 0.05 * jax.random.normal(ks[6], (H,), jnp.float32)
    gamma = 0.1 * jax.random.normal(ks[7], (H,), jnp.float32)
    beta = 0.1 * jax.random.normal(ks[8], (H,), jnp.float32)
    w2 = jax.random.normal(ks[9], (H, C), jnp.float32) * (H ** -0.5)
    b2 = 0.02 * jax.random.normal(ks[10], (C,), jnp.float32)
    params = (dww, dwb, lnw, lnb, w1, b1, gamma, beta, w2, b2)

    out = jax.block_until_ready(convnextv2_block(x, params))
    assert out.shape == (N, C, L)

    # Numerics-matched reference (bf16 matmul operands + tanh GELU): tight tolerance.
    ref_match = reference_block(x, params, mm_dtype=jnp.bfloat16, approx_gelu=True)
    assert jnp.allclose(out, ref_match, atol=1e-2, rtol=1e-2)
    # PyTorch-faithful f32 / exact-erf reference: loose tolerance (bf16 matmuls + tanh GELU).
    ref_exact = reference_block(x, params)
    assert jnp.allclose(out, ref_exact, atol=1e-1, rtol=1e-1)


if __name__ == "__main__":
    k1, k2, k3 = jax.random.split(jax.random.PRNGKey(0), 3)
    _run_case(k1, N=4, C=128, L=64)   # lane-aligned fast path (no channel / length padding)
    _run_case(k2, N=2, C=48, L=40)    # exercises C/4C lane padding + masked LayerNorm/GRN
    _run_case(k3, N=2, C=48, L=37)    # exercises L sublane padding (masked GRN rows) as well
    print("KERNEL_OK")
</pallas_src>

<mosaic_0001>
module attributes {stable_mosaic.version = 11 : i64} {
  func.func @block_kernel(%arg0: i32, %arg1: memref<2x64x128xf32, #tpu.memory_space<vmem>>, %arg2: memref<7x128xf32, #tpu.memory_space<vmem>>, %arg3: memref<1x128xf32, #tpu.memory_space<vmem>>, %arg4: memref<1x128xf32, #tpu.memory_space<vmem>>, %arg5: memref<1x128xf32, #tpu.memory_space<vmem>>, %arg6: memref<128x512xbf16, #tpu.memory_space<vmem>>, %arg7: memref<1x512xf32, #tpu.memory_space<vmem>>, %arg8: memref<1x512xf32, #tpu.memory_space<vmem>>, %arg9: memref<1x512xf32, #tpu.memory_space<vmem>>, %arg10: memref<512x128xbf16, #tpu.memory_space<vmem>>, %arg11: memref<1x128xf32, #tpu.memory_space<vmem>>, %arg12: memref<2x64x128xf32, #tpu.memory_space<vmem>>) attributes {dimension_semantics = [#tpu.dimension_semantics<parallel>], iteration_bounds = array<i64: 2>, scalar_prefetch = 0 : i64, scratch_operands = 0 : i64, tpu.core_type = #tpu.core_type<tc>, window_params = [{transform_indices = @transform_0, window_bounds = array<i64: 2, 64, 128>}, {pipeline_mode = #tpu.pipeline_mode<synchronous>, transform_indices = @transform_1, window_bounds = array<i64: 7, 128>}, {pipeline_mode = #tpu.pipeline_mode<synchronous>, transform_indices = @transform_2, window_bounds = array<i64: 1, 128>}, {pipeline_mode = #tpu.pipeline_mode<synchronous>, transform_indices = @transform_3, window_bounds = array<i64: 1, 128>}, {pipeline_mode = #tpu.pipeline_mode<synchronous>, transform_indices = @transform_4, window_bounds = array<i64: 1, 128>}, {pipeline_mode = #tpu.pipeline_mode<synchronous>, transform_indices = @transform_5, window_bounds = array<i64: 128, 512>}, {pipeline_mode = #tpu.pipeline_mode<synchronous>, transform_indices = @transform_6, window_bounds = array<i64: 1, 512>}, {pipeline_mode = #tpu.pipeline_mode<synchronous>, transform_indices = @transform_7, window_bounds = array<i64: 1, 512>}, {pipeline_mode = #tpu.pipeline_mode<synchronous>, transform_indices = @transform_8, window_bounds = array<i64: 1, 512>}, {pipeline_mode = #tpu.pipeline_mode<synchronous>, transform_indices = @transform_9, window_bounds = array<i64: 512, 128>}, {pipeline_mode = #tpu.pipeline_mode<synchronous>, transform_indices = @transform_10, window_bounds = array<i64: 1, 128>}, {transform_indices = @transform_11, window_bounds = array<i64: 2, 64, 128>}]} {
    %c0 = arith.constant 0 : index
    %c0_0 = arith.constant 0 : index
    %c0_1 = arith.constant 0 : index
    %0 = vector.load %arg1[%c0, %c0_0, %c0_1] : memref<2x64x128xf32, #tpu.memory_space<vmem>>, vector<2x64x128xf32>
    %1 = vector.shape_cast %0 : vector<2x64x128xf32> to vector<128x128xf32>
    %2 = tpu.iota {dimensions = array<i32: 1>} : vector<2x64x128xi32>
    %3 = vector.shape_cast %2 : vector<2x64x128xi32> to vector<128x128xi32>
    %c0_2 = arith.constant 0 : index
    %c0_3 = arith.constant 0 : index
    %4 = vector.load %arg2[%c0_2, %c0_3] : memref<7x128xf32, #tpu.memory_space<vmem>>, vector<7x128xf32>
    %cst = arith.constant 0.000000e+00 : f32
    %5 = vector.broadcast %cst : f32 to vector<128x128xf32>
    %6 = vector.extract_strided_slice %4 {offsets = [0, 0], sizes = [1, 128], strides = [1, 1]} : vector<7x128xf32> to vector<1x128xf32>
    %c3_i32 = arith.constant 3 : i32
    %7 = tpu.dynamic_rotate %1 by %c3_i32 dim 0 : vector<128x128xf32>, i32 -> vector<128x128xf32>
    %c3_i32_4 = arith.constant 3 : i32
    %8 = vector.broadcast %c3_i32_4 : i32 to vector<128x128xi32>
    %9 = arith.cmpi sge, %3, %8 : vector<128x128xi32>
    %cst_5 = arith.constant 0.000000e+00 : f32
    %10 = vector.broadcast %cst_5 : f32 to vector<128x128xf32>
    %11 = arith.select %9, %7, %10 : vector<128x128xi1>, vector<128x128xf32>
    %12 = vector.broadcast %6 : vector<1x128xf32> to vector<128x128xf32>
    %13 = arith.mulf %11, %12 : vector<128x128xf32>
    %14 = arith.addf %5, %13 : vector<128x128xf32>
    %15 = vector.extract_strided_slice %4 {offsets = [1, 0], sizes = [1, 128], strides = [1, 1]} : vector<7x128xf32> to vector<1x128xf32>
    %c2_i32 = arith.constant 2 : i32
    %16 = tpu.dynamic_rotate %1 by %c2_i32 dim 0 : vector<128x128xf32>, i32 -> vector<128x128xf32>
    %c2_i32_6 = arith.constant 2 : i32
    %17 = vector.broadcast %c2_i32_6 : i32 to vector<128x128xi32>
    %18 = arith.cmpi sge, %3, %17 : vector<128x128xi32>
    %cst_7 = arith.constant 0.000000e+00 : f32
    %19 = vector.broadcast %cst_7 : f32 to vector<128x128xf32>
    %20 = arith.select %18, %16, %19 : vector<128x128xi1>, vector<128x128xf32>
    %21 = vector.broadcast %15 : vector<1x128xf32> to vector<128x128xf32>
    %22 = arith.mulf %20, %21 : vector<128x128xf32>
    %23 = arith.addf %14, %22 : vector<128x128xf32>
    %24 = vector.extract_strided_slice %4 {offsets = [2, 0], sizes = [1, 128], strides = [1, 1]} : vector<7x128xf32> to vector<1x128xf32>
    %c1_i32 = arith.constant 1 : i32
    %25 = tpu.dynamic_rotate %1 by %c1_i32 dim 0 : vector<128x128xf32>, i32 -> vector<128x128xf32>
    %c1_i32_8 = arith.constant 1 : i32
    %26 = vector.broadcast %c1_i32_8 : i32 to vector<128x128xi32>
    %27 = arith.cmpi sge, %3, %26 : vector<128x128xi32>
    %cst_9 = arith.constant 0.000000e+00 : f32
    %28 = vector.broadcast %cst_9 : f32 to vector<128x128xf32>
    %29 = arith.select %27, %25, %28 : vector<128x128xi1>, vector<128x128xf32>
    %30 = vector.broadcast %24 : vector<1x128xf32> to vector<128x128xf32>
    %31 = arith.mulf %29, %30 : vector<128x128xf32>
    %32 = arith.addf %23, %31 : vector<128x128xf32>
    %33 = vector.extract_strided_slice %4 {offsets = [3, 0], sizes = [1, 128], strides = [1, 1]} : vector<7x128xf32> to vector<1x128xf32>
    %34 = vector.broadcast %33 : vector<1x128xf32> to vector<128x128xf32>
    %35 = arith.mulf %1, %34 : vector<128x128xf32>
    %36 = arith.addf %32, %35 : vector<128x128xf32>
    %37 = vector.extract_strided_slice %4 {offsets = [4, 0], sizes = [1, 128], strides = [1, 1]} : vector<7x128xf32> to vector<1x128xf32>
    %c127_i32 = arith.constant 127 : i32
    %38 = tpu.dynamic_rotate %1 by %c127_i32 dim 0 : vector<128x128xf32>, i32 -> vector<128x128xf32>
    %c63_i32 = arith.constant 63 : i32
    %39 = vector.broadcast %c63_i32 : i32 to vector<128x128xi32>
    %40 = arith.cmpi slt, %3, %39 : vector<128x128xi32>
    %cst_10 = arith.constant 0.000000e+00 : f32
    %41 = vector.broadcast %cst_10 : f32 to vector<128x128xf32>
    %42 = arith.select %40, %38, %41 : vector<128x128xi1>, vector<128x128xf32>
    %43 = vector.broadcast %37 : vector<1x128xf32> to vector<128x128xf32>
    %44 = arith.mulf %42, %43 : vector<128x128xf32>
    %45 = arith.addf %36, %44 : vector<128x128xf32>
    %46 = vector.extract_strided_slice %4 {offsets = [5, 0], sizes = [1, 128], strides = [1, 1]} : vector<7x128xf32> to vector<1x128xf32>
    %c126_i32 = arith.constant 126 : i32
    %47 = tpu.dynamic_rotate %1 by %c126_i32 dim 0 : vector<128x128xf32>, i32 -> vector<128x128xf32>
    %c62_i32 = arith.constant 62 : i32
    %48 = vector.broadcast %c62_i32 : i32 to vector<128x128xi32>
    %49 = arith.cmpi slt, %3, %48 : vector<128x128xi32>
    %cst_11 = arith.constant 0.000000e+00 : f32
    %50 = vector.broadcast %cst_11 : f32 to vector<128x128xf32>
    %51 = arith.select %49, %47, %50 : vector<128x128xi1>, vector<128x128xf32>
    %52 = vector.broadcast %46 : vector<1x128xf32> to vector<128x128xf32>
    %53 = arith.mulf %51, %52 : vector<128x128xf32>
    %54 = arith.addf %45, %53 : vector<128x128xf32>
    %55 = vector.extract_strided_slice %4 {offsets = [6, 0], sizes = [1, 128], strides = [1, 1]} : vector<7x128xf32> to vector<1x128xf32>
    %c125_i32 = arith.constant 125 : i32
    %56 = tpu.dynamic_rotate %1 by %c125_i32 dim 0 : vector<128x128xf32>, i32 -> vector<128x128xf32>
    %c61_i32 = arith.constant 61 : i32
    %57 = vector.broadcast %c61_i32 : i32 to vector<128x128xi32>
    %58 = arith.cmpi slt, %3, %57 : vector<128x128xi32>
    %cst_12 = arith.constant 0.000000e+00 : f32
    %59 = vector.broadcast %cst_12 : f32 to vector<128x128xf32>
    %60 = arith.select %58, %56, %59 : vector<128x128xi1>, vector<128x128xf32>
    %61 = vector.broadcast %55 : vector<1x128xf32> to vector<128x128xf32>
    %62 = arith.mulf %60, %61 : vector<128x128xf32>
    %63 = arith.addf %54, %62 : vector<128x128xf32>
    %c0_13 = arith.constant 0 : index
    %c0_14 = arith.constant 0 : index
    %64 = vector.load %arg3[%c0_13, %c0_14] : memref<1x128xf32, #tpu.memory_space<vmem>>, vector<1x128xf32>
    %65 = vector.broadcast %64 : vector<1x128xf32> to vector<128x128xf32>
    %66 = arith.addf %63, %65 : vector<128x128xf32>
    %cst_15 = arith.constant dense<0.000000e+00> : vector<128xf32>
    %67 = vector.multi_reduction <add>, %66, %cst_15 [1] : vector<128x128xf32> to vector<128xf32>
    %68 = vector.shape_cast %67 : vector<128xf32> to vector<128x1xf32>
    %cst_16 = arith.constant 7.812500e-03 : f32
    %69 = vector.broadcast %cst_16 : f32 to vector<128x1xf32>
    %70 = arith.mulf %68, %69 : vector<128x1xf32>
    %71 = vector.broadcast %70 : vector<128x1xf32> to vector<128x128xf32>
    %72 = arith.subf %66, %71 : vector<128x128xf32>
    %73 = arith.mulf %72, %72 : vector<128x128xf32>
    %cst_17 = arith.constant dense<0.000000e+00> : vector<128xf32>
    %74 = vector.multi_reduction <add>, %73, %cst_17 [1] : vector<128x128xf32> to vector<128xf32>
    %75 = vector.shape_cast %74 : vector<128xf32> to vector<128x1xf32>
    %cst_18 = arith.constant 7.812500e-03 : f32
    %76 = vector.broadcast %cst_18 : f32 to vector<128x1xf32>
    %77 = arith.mulf %75, %76 : vector<128x1xf32>
    %cst_19 = arith.constant 9.99999997E-7 : f32
    %78 = vector.broadcast %cst_19 : f32 to vector<128x1xf32>
    %79 = arith.addf %77, %78 : vector<128x1xf32>
    %80 = math.rsqrt %79 : vector<128x1xf32>
    %81 = vector.broadcast %80 : vector<128x1xf32> to vector<128x128xf32>
    %82 = arith.mulf %72, %81 : vector<128x128xf32>
    %c0_20 = arith.constant 0 : index
    %c0_21 = arith.constant 0 : index
    %83 = vector.load %arg4[%c0_20, %c0_21] : memref<1x128xf32, #tpu.memory_space<vmem>>, vector<1x128xf32>
    %84 = vector.broadcast %83 : vector<1x128xf32> to vector<128x128xf32>
    %85 = arith.mulf %82, %84 : vector<128x128xf32>
    %c0_22 = arith.constant 0 : index
    %c0_23 = arith.constant 0 : index
    %86 = vector.load %arg5[%c0_22, %c0_23] : memref<1x128xf32, #tpu.memory_space<vmem>>, vector<1x128xf32>
    %87 = vector.broadcast %86 : vector<1x128xf32> to vector<128x128xf32>
    %88 = arith.addf %85, %87 : vector<128x128xf32>
    %89 = arith.truncf %88 : vector<128x128xf32> to vector<128x128xbf16>
    %c0_24 = arith.constant 0 : index
    %c0_25 = arith.constant 0 : index
    %90 = vector.load %arg6[%c0_24, %c0_25] : memref<128x512xbf16, #tpu.memory_space<vmem>>, vector<128x512xbf16>
    %cst_26 = arith.constant dense<0.000000e+00> : vector<128x512xf32>
    %91 = tpu.matmul %89, %90, %cst_26 {dimension_numbers = #tpu.dot_dimension_numbers<[1], [0], [0], [1], [0, 0, 1, 1], [], []>} : vector<128x128xbf16>, vector<128x512xbf16>, vector<128x512xf32> -> vector<128x512xf32>
    %c0_27 = arith.constant 0 : index
    %c0_28 = arith.constant 0 : index
    %92 = vector.load %arg7[%c0_27, %c0_28] : memref<1x512xf32, #tpu.memory_space<vmem>>, vector<1x512xf32>
    %93 = vector.broadcast %92 : vector<1x512xf32> to vector<128x512xf32>
    %94 = arith.addf %91, %93 : vector<128x512xf32>
    %95 = arith.mulf %94, %94 : vector<128x512xf32>
    %96 = arith.mulf %94, %95 : vector<128x512xf32>
    %cst_29 = arith.constant 4.471500e-02 : f32
    %97 = vector.broadcast %cst_29 : f32 to vector<128x512xf32>
    %98 = arith.mulf %97, %96 : vector<128x512xf32>
    %99 = arith.addf %94, %98 : vector<128x512xf32>
    %cst_30 = arith.constant 0.797884583 : f32
    %100 = vector.broadcast %cst_30 : f32 to vector<128x512xf32>
    %101 = arith.mulf %100, %99 : vector<128x512xf32>
    %102 = math.tanh %101 : vector<128x512xf32>
    %cst_31 = arith.constant 1.000000e+00 : f32
    %103 = vector.broadcast %cst_31 : f32 to vector<128x512xf32>
    %104 = arith.addf %103, %102 : vector<128x512xf32>
    %cst_32 = arith.constant 5.000000e-01 : f32
    %105 = vector.broadcast %cst_32 : f32 to vector<128x512xf32>
    %106 = arith.mulf %105, %104 : vector<128x512xf32>
    %107 = arith.mulf %94, %106 : vector<128x512xf32>
    %108 = vector.shape_cast %107 : vector<128x512xf32> to vector<2x64x512xf32>
    %109 = arith.mulf %108, %108 : vector<2x64x512xf32>
    %cst_33 = arith.constant dense<0.000000e+00> : vector<2x512xf32>
    %110 = vector.multi_reduction <add>, %109, %cst_33 [1] : vector<2x64x512xf32> to vector<2x512xf32>
    %111 = vector.shape_cast %110 : vector<2x512xf32> to vector<2x1x512xf32>
    %112 = math.sqrt %111 : vector<2x1x512xf32>
    %cst_34 = arith.constant dense<0.000000e+00> : vector<2x1xf32>
    %113 = vector.multi_reduction <add>, %112, %cst_34 [2] : vector<2x1x512xf32> to vector<2x1xf32>
    %114 = vector.shape_cast %113 : vector<2x1xf32> to vector<2x1x1xf32>
    %cst_35 = arith.constant 0.001953125 : f32
    %115 = vector.broadcast %cst_35 : f32 to vector<2x1x1xf32>
    %116 = arith.mulf %114, %115 : vector<2x1x1xf32>
    %cst_36 = arith.constant 9.99999997E-7 : f32
    %117 = vector.broadcast %cst_36 : f32 to vector<2x1x1xf32>
    %118 = arith.addf %116, %117 : vector<2x1x1xf32>
    %119 = tpu.reciprocal %118 {approx = true} : vector<2x1x1xf32> -> vector<2x1x1xf32>
    %120 = vector.broadcast %119 : vector<2x1x1xf32> to vector<2x1x512xf32>
    %121 = arith.mulf %112, %120 : vector<2x1x512xf32>
    %c0_37 = arith.constant 0 : index
    %c0_38 = arith.constant 0 : index
    %122 = vector.load %arg8[%c0_37, %c0_38] : memref<1x512xf32, #tpu.memory_space<vmem>>, vector<1x512xf32>
    %123 = vector.broadcast %121 : vector<2x1x512xf32> to vector<2x64x512xf32>
    %124 = arith.mulf %108, %123 : vector<2x64x512xf32>
    %125 = vector.shape_cast %122 : vector<1x512xf32> to vector<1x1x512xf32>
    %126 = vector.broadcast %125 : vector<1x1x512xf32> to vector<2x64x512xf32>
    %127 = arith.mulf %126, %124 : vector<2x64x512xf32>
    %c0_39 = arith.constant 0 : index
    %c0_40 = arith.constant 0 : index
    %128 = vector.load %arg9[%c0_39, %c0_40] : memref<1x512xf32, #tpu.memory_space<vmem>>, vector<1x512xf32>
    %129 = vector.shape_cast %128 : vector<1x512xf32> to vector<1x1x512xf32>
    %130 = vector.broadcast %129 : vector<1x1x512xf32> to vector<2x64x512xf32>
    %131 = arith.addf %127, %130 : vector<2x64x512xf32>
    %132 = arith.addf %131, %108 : vector<2x64x512xf32>
    %133 = vector.shape_cast %132 : vector<2x64x512xf32> to vector<128x512xf32>
    %134 = arith.truncf %133 : vector<128x512xf32> to vector<128x512xbf16>
    %c0_41 = arith.constant 0 : index
    %c0_42 = arith.constant 0 : index
    %135 = vector.load %arg10[%c0_41, %c0_42] : memref<512x128xbf16, #tpu.memory_space<vmem>>, vector<512x128xbf16>
    %cst_43 = arith.constant dense<0.000000e+00> : vector<128x128xf32>
    %136 = tpu.matmul %134, %135, %cst_43 {dimension_numbers = #tpu.dot_dimension_numbers<[1], [0], [0], [1], [0, 0, 1, 1], [], []>} : vector<128x512xbf16>, vector<512x128xbf16>, vector<128x128xf32> -> vector<128x128xf32>
    %c0_44 = arith.constant 0 : index
    %c0_45 = arith.constant 0 : index
    %137 = vector.load %arg11[%c0_44, %c0_45] : memref<1x128xf32, #tpu.memory_space<vmem>>, vector<1x128xf32>
    %138 = vector.broadcast %137 : vector<1x128xf32> to vector<128x128xf32>
    %139 = arith.addf %136, %138 : vector<128x128xf32>
    %140 = arith.addf %1, %139 : vector<128x128xf32>
    %141 = vector.shape_cast %140 : vector<128x128xf32> to vector<2x64x128xf32>
    %c0_46 = arith.constant 0 : index
    %c0_47 = arith.constant 0 : index
    %c0_48 = arith.constant 0 : index
    %142 = vector.load %arg12[%c0_46, %c0_47, %c0_48] : memref<2x64x128xf32, #tpu.memory_space<vmem>>, vector<2x64x128xf32>
    tpu.vector_store %arg12[%c0_46, %c0_47, %c0_48], %141 {strides = array<i32>} : memref<2x64x128xf32, #tpu.memory_space<vmem>>, vector<2x64x128xf32>,
    return
  }
  func.func @transform_0(%arg0: i32) -> (i32, i32, i32) {
    %c0_i32 = arith.constant 0 : i32
    %c0_i32_0 = arith.constant 0 : i32
    %c0_i32_1 = arith.constant 0 : i32
    return %arg0, %c0_i32, %c0_i32_0 : i32, i32, i32
  }
  func.func @transform_1(%arg0: i32) -> (i32, i32) {
    %c0_i32 = arith.constant 0 : i32
    %c0_i32_0 = arith.constant 0 : i32
    %c0_i32_1 = arith.constant 0 : i32
    return %c0_i32, %c0_i32_0 : i32, i32
  }
  func.func @transform_2(%arg0: i32) -> (i32, i32) {
    %c0_i32 = arith.constant 0 : i32
    %c0_i32_0 = arith.constant 0 : i32
    %c0_i32_1 = arith.constant 0 : i32
    return %c0_i32, %c0_i32_0 : i32, i32
  }
  func.func @transform_3(%arg0: i32) -> (i32, i32) {
    %c0_i32 = arith.constant 0 : i32
    %c0_i32_0 = arith.constant 0 : i32
    %c0_i32_1 = arith.constant 0 : i32
    return %c0_i32, %c0_i32_0 : i32, i32
  }
  func.func @transform_4(%arg0: i32) -> (i32, i32) {
    %c0_i32 = arith.constant 0 : i32
    %c0_i32_0 = arith.constant 0 : i32
    %c0_i32_1 = arith.constant 0 : i32
    return %c0_i32, %c0_i32_0 : i32, i32
  }
  func.func @transform_5(%arg0: i32) -> (i32, i32) {
    %c0_i32 = arith.constant 0 : i32
    %c0_i32_0 = arith.constant 0 : i32
    %c0_i32_1 = arith.constant 0 : i32
    return %c0_i32, %c0_i32_0 : i32, i32
  }
  func.func @transform_6(%arg0: i32) -> (i32, i32) {
    %c0_i32 = arith.constant 0 : i32
    %c0_i32_0 = arith.constant 0 : i32
    %c0_i32_1 = arith.constant 0 : i32
    return %c0_i32, %c0_i32_0 : i32, i32
  }
  func.func @transform_7(%arg0: i32) -> (i32, i32) {
    %c0_i32 = arith.constant 0 : i32
    %c0_i32_0 = arith.constant 0 : i32
    %c0_i32_1 = arith.constant 0 : i32
    return %c0_i32, %c0_i32_0 : i32, i32
  }
  func.func @transform_8(%arg0: i32) -> (i32, i32) {
    %c0_i32 = arith.constant 0 : i32
    %c0_i32_0 = arith.constant 0 : i32
    %c0_i32_1 = arith.constant 0 : i32
    return %c0_i32, %c0_i32_0 : i32, i32
  }
  func.func @transform_9(%arg0: i32) -> (i32, i32) {
    %c0_i32 = arith.constant 0 : i32
    %c0_i32_0 = arith.constant 0 : i32
    %c0_i32_1 = arith.constant 0 : i32
    return %c0_i32, %c0_i32_0 : i32, i32
  }
  func.func @transform_10(%arg0: i32) -> (i32, i32) {
    %c0_i32 = arith.constant 0 : i32
    %c0_i32_0 = arith.constant 0 : i32
    %c0_i32_1 = arith.constant 0 : i32
    return %c0_i32, %c0_i32_0 : i32, i32
  }
  func.func @transform_11(%arg0: i32) -> (i32, i32, i32) {
    %c0_i32 = arith.constant 0 : i32
    %c0_i32_0 = arith.constant 0 : i32
    %c0_i32_1 = arith.constant 0 : i32
    return %arg0, %c0_i32, %c0_i32_0 : i32, i32, i32
  }
}

</mosaic_0001>

<bundles_post_ra>
// kernel: tpu_custom_call.1
= control target key start
LH: loop header
LB: loop body
LE: loop exit
PB: predicated region body
PF: predicated region fallthrough
CT: control target
= control target key end

     0   :  { %s6904_s0 = inlined_call_operand.hbm [shape: f32[4,64,128], index: 0, kind: input, shape index: {}]   ;;  %s6905_s1 = inlined_call_operand.hbm [shape: f32[7,128], index: 1, kind: input, shape index: {}]   ;;  %s6906_s2 = inlined_call_operand.vmem [shape: f32[1,128], index: 2, kind: input, shape index: {}]   ;;  %s6907_s3 = inlined_call_operand.vmem [shape: f32[1,128], index: 3, kind: input, shape index: {}]   ;;  %s6908_s4 = inlined_call_operand.vmem [shape: f32[1,128], index: 4, kind: input, shape index: {}]   ;;  %s6909_s5 = inlined_call_operand.hbm [shape: bf16[128,512], index: 5, kind: input, shape index: {}]   ;;  %s6910_s6 = inlined_call_operand.vmem [shape: f32[1,512], index: 6, kind: input, shape index: {}]   ;;  %s6911_s7 = inlined_call_operand.vmem [shape: f32[1,512], index: 7, kind: input, shape index: {}]   ;;  %s6912_s8 = inlined_call_operand.vmem [shape: f32[1,512], index: 8, kind: input, shape index: {}]   ;;  %s6913_s9 = inlined_call_operand.hbm [shape: bf16[512,128], index: 9, kind: input, shape index: {}]   ;;  %s6914_s10 = inlined_call_operand.vmem [shape: f32[1,128], index: 10, kind: input, shape index: {}]   ;;  %s6915_s11 = inlined_call_operand.hbm [shape: f32[4,64,128], index: 11, kind: output, shape index: {}]  }
   0x1   :  { %7021 = sst [smem:[#allocation66_spill]] %s6905_s1 }
   0x2   :  { %7022 = sst [smem:[#allocation67_spill]] %s6915_s11 }
   0x3   :  { %16 = vsyncpa [#allocation3], 0 }
   0x4   :  { %18 = vsyncpa [#allocation3 + $0x1], 0 }
   0x5   :  { %19 = vsyncpa [#allocation6], 0 }
   0x6   :  { %20 = vsyncpa [#allocation9], 0 }
   0x7   :  { %21 = vsyncpa [#allocation4], 0 }
   0x8   :  { %23 = vsyncpa [#allocation4 + $0x1], 0  ;;  %s4375_s17 = smov 0   ;;  %s4377_s18 = smov 0  }
   0x9   :  { %s4379_s19 = smov 0   ;;  %s4381_s20 = smov 0  }
   0xa LB: > { %7023 = sst [smem:[#allocation15_spill]] %s4287_s17  ;;  %s4396_s21 = sadd.s32 4294967295, %s4299_s20   ;;  %s4299_s20 = sphi %s4381_s20, %s7154_s20   ;;  %s4295_s19 = sphi %s4379_s19, %s7153_s19   ;;  %s4291_s18 = sphi %s4377_s18, %s7152_s18   ;;  %s4287_s17 = sphi %s4375_s17, %s7151_s17  }
   0xb   : > { %s3526_s22 = sadd.s32 4294967294, %s4299_s20   ;;  %p49_p0 = scmp.ne.s32.totalorder %s4291_s18, %s4287_s17 }
   0xc   : > { %p6917_p1 = scmp.eq.s32.totalorder %s4396_s21, 0  ;;  %p289_p3 = scmp.eq.s32.totalorder %s3526_s22, 1 }
   0xd   : > { %p3527_p5 = scmp.ge.s32.totalorder %s4299_s20, 1  ;;  %p296_p7 = scmp.lt.s32.totalorder %s4299_s20, 3 }
   0xe   : > { %p4405_p4 = por %p6917_p1, %p49_p0  ;;  %p4410_p6 = por %p289_p3, %p49_p0 }
   0xf   : > { %p4415_p8 = pnand %p3527_p5, %p296_p7  ;;  %s4301_s26 = smov [#allocation5]  }
  0x10   : > { %s7024_s23 = scalar_select %p4405_p4, 1, 0 }
  0x11   : > { %s7025_s24 = scalar_select %p4410_p6, 1, 0 }
  0x12   : > { %s7027_s25 = scalar_select %p4415_p8, 1, 0 }
  0x13   : > { %7026 = sst [smem:[#allocation16_spill]] %s7025_s24  ;;  %s309_s27 = sshll.u32 %s4301_s26, 4  ;;  %s310_s27 = int_to_ptr.vmem [resolvable:$true] %s309_s27 }
  0x14   : > { %p3764_p10 = pneg %p4415_p8  ;;  %s4302_s28 = smov [#allocation7]  }
  0x15   : > { %s328_s29 = sshll.u32 %s4302_s28, 4  ;;  %s4303_s12 = smov [#allocation8]   ;;  %s4428_s29 = int_to_ptr.vmem [resolvable:$true] %s328_s29 }
  0x16   : > { %p4424_p11 = pnand %p3764_p10, %p6917_p1  ;;  %s4430_s13 = sshll.u32 %s4303_s12, 4  ;;  %s351_s13 = int_to_ptr.vmem [resolvable:$true] %s4430_s13 }
  0x17   : > { %s7029_s1 = sld [smem:[#allocation66_spill]] }
  0x18   : > { %p4440_p13 = pneg %p4424_p11 }
  0x1d   : > { %s4111_s16 = scalar_lea.hbm %s7029_s1, 128 }
  0x1e   : > { %p4112_p12 = scmp.ne.s32.totalorder %s7029_s1, %s4111_s16  ;;  %p4118_p5 = scmp.lt.u32.totalorder %s4111_s16, %s7029_s1 }
  0x20   : > { %p4114_p0 = pnand %p4440_p13, %p4112_p12 }
  0x22   : > { %p4115_p3 = pneg %p4114_p0 }
  0x24   : > { %p4120_p7 = pnand %p4118_p5, %p4115_p3 }
  0x26   : > { %4123 = shalt.err (!%p4120_p7)
}
  0x27   : > { %s4124_s14 = scalar_lea.vmem %s310_s27, 128  ;;  %p4132_p2 = scmp.lt.s32.totalorder %s310_s27, %s310_s27 }
  0x28   : > { %p4125_p10 = scmp.ne.s32.totalorder %s310_s27, %s4124_s14  ;;  %p4133_p6 = scmp.lt.s32.totalorder %s4124_s14, %s4124_s14 }
  0x2a   : > { %p4127_p9 = pnand %p4125_p10, %p4440_p13  ;;  %p4134_p4 = por %p4133_p6, %p4132_p2 }
  0x2c   : > { %p4128_p1 = pneg %p4127_p9 }
  0x2e   : > { %p4135_p8 = pnand %p4134_p4, %p4128_p1 }
  0x30   : > { %4138 = shalt.err (!%p4135_p8)
}
  0x31   : > { %3767 = dma.hbm_to_vmem [thread:$0]  (!%p4424_p11), %s7029_s1, 128, %s310_s27, [#allocation6]  }
  0x32   : > { %s4139_s26 = scalar_lea.hbm %s6909_s5, 4096 }
  0x33   : > { %p4140_p9 = scmp.ne.s32.totalorder %s6909_s5, %s4139_s26  ;;  %p4146_p1 = scmp.lt.u32.totalorder %s4139_s26, %s6909_s5 }
  0x35   : > { %p4142_p12 = pnand %p4140_p9, %p4440_p13 }
  0x37   : > { %p4143_p2 = pneg %p4142_p12 }
  0x39   : > { %p4148_p4 = pnand %p4146_p1, %p4143_p2 }
  0x3b   : > { %4151 = shalt.err (!%p4148_p4)
}
  0x3c   : > { %s4152_s27 = scalar_lea.vmem %s4428_s29, 4096  ;;  %p4160_p3 = scmp.lt.s32.totalorder %s4428_s29, %s4428_s29 }
  0x3d   : > { %p4153_p6 = scmp.ne.s32.totalorder %s4428_s29, %s4152_s27  ;;  %p4161_p5 = scmp.lt.s32.totalorder %s4152_s27, %s4152_s27 }
  0x3f   : > { %p4155_p8 = pnand %p4153_p6, %p4440_p13  ;;  %p4162_p7 = por %p4161_p5, %p4160_p3 }
  0x41   : > { %p4156_p0 = pneg %p4155_p8 }
  0x43   : > { %p4163_p10 = pnand %p4162_p7, %p4156_p0 }
  0x45   : > { %4166 = shalt.err (!%p4163_p10)
}
  0x46   : > { %s4304_s17 = smov 256   ;;  %s4305_s11 = smov 16  }
  0x47   : > { %3770 = dma.hbm_to_vmem [thread:$0]  (!%p4424_p11), %s6909_s5, 4096, %s4428_s29, [#allocation6], %s4304_s17, %s4304_s17, %s4305_s11  }
  0x48   : > { %s4167_s26 = scalar_lea.hbm %s6913_s9, 4096 }
  0x49   : > { %p4168_p9 = scmp.ne.s32.totalorder %s6913_s9, %s4167_s26  ;;  %p4174_p1 = scmp.lt.u32.totalorder %s4167_s26, %s6913_s9 }
  0x4b   : > { %p4170_p12 = pnand %p4168_p9, %p4440_p13 }
  0x4d   : > { %p4171_p2 = pneg %p4170_p12 }
  0x4f   : > { %p4176_p4 = pnand %p4174_p1, %p4171_p2 }
  0x51   : > { %4179 = shalt.err (!%p4176_p4)
}
  0x52   : > { %s4180_s15 = scalar_lea.vmem %s351_s13, 4096  ;;  %p4188_p3 = scmp.lt.s32.totalorder %s351_s13, %s351_s13 }
  0x53   : > { %p4181_p6 = scmp.ne.s32.totalorder %s351_s13, %s4180_s15  ;;  %p4189_p5 = scmp.lt.s32.totalorder %s4180_s15, %s4180_s15 }
  0x55   : > { %p4183_p8 = pnand %p4181_p6, %p4440_p13  ;;  %p4190_p7 = por %p4189_p5, %p4188_p3 }
  0x57   : > { %p4184_p0 = pneg %p4183_p8 }
  0x59   : > { %p4191_p10 = pnand %p4190_p7, %p4184_p0 }
  0x5b   : > { %4194 = shalt.err (!%p4191_p10)
}
  0x5c   : > { %s4306_s29 = smov 64   ;;  %s4307_s1 = smov 4  }
  0x5d   : > { %3773 = dma.hbm_to_vmem [thread:$0]  (!%p4424_p11), %s6913_s9, 4096, %s351_s13, [#allocation9], %s4306_s29, %s4306_s29, %s4307_s1  }
  0x5e   : > { %s4499_s11 = sadd.s32 1, %s4299_s20   ;;  %s36_s24 = sadd.s32 1, %s4295_s19 }
  0x5f   : > { %s33_s22 = ssub.s32 %s4299_s20, %s4499_s11  ;;  %p43_p9 = scmp.ne.s32.totalorder %s4295_s19, %s4291_s18 }
  0x60   : > { %p34_p13 = scmp.eq.s32.totalorder %s33_s22, 0  ;;  %p44_p12 = scmp.eq.s32.totalorder %s4299_s20, 0 }
  0x61   : > { %p3785_p2 = scmp.lt.s32.totalorder %s4299_s20, 2  ;;  %p7031_p4 = scmp.eq.s32.totalorder %s4396_s21, 1 }
  0x62   : > { %s4509_s16 = scalar_select %p34_p13, %s4295_s19, %s36_s24  }
  0x63   : > { %p45_p1 = por %p44_p12, %p43_p9  ;;  %p4513_p6 = por %p7031_p4, %p43_p9 }
  0x64   : > { %s367_s30 = sand.u32 1, %s4295_s19   ;;  %s3617_s12 = sshll.u32 %s4299_s20, 11 }
  0x65   : > { %s3532_s13 = sshll.u32 %s367_s30, 7  ;;  %s4522_s15 = scalar_lea.hbm %s6904_s0, %s3617_s12 }
  0x66   : > { %s371_s29 = scalar_lea.vmem [#allocation2], %s3532_s13  ;;  %p4524_p11 = pnand %p3785_p2, %p45_p1 }
  0x67   : > { %s379_s1 = sshll.u32 %s371_s29, 4  ;;  %s4530_s17 = scalar_lea.sflag [#allocation3], %s367_s30  ;;  %s4528_s1 = int_to_ptr.vmem [resolvable:$true] %s379_s1 }
  0x68   : > { %s4195_s22 = scalar_lea.hbm %s4522_s15, 2048  ;;  %p4197_p0 = pneg %p4524_p11 }
  0x69   : > { %p4196_p8 = scmp.ne.s32.totalorder %s4522_s15, %s4195_s22  ;;  %s4200_s13 = scalar_lea.hbm %s6904_s0, 4096 }
  0x6a   : > { %p4201_p7 = scmp.lt.u32.totalorder %s4522_s15, %s6904_s0  ;;  %p4202_p10 = scmp.lt.u32.totalorder %s4200_s13, %s4195_s22 }
  0x6b   : > { %p4198_p3 = pnand %p4197_p0, %p4196_p8  ;;  %p4204_p9 = scmp.lt.u32.totalorder %s4195_s22, %s4522_s15 }
  0x6c   : > { %p4203_p13 = por %p4202_p10, %p4201_p7 }
  0x6d   : > { %p4199_p5 = pneg %p4198_p3 }
  0x6e   : > { %p4205_p12 = por %p4204_p9, %p4203_p13 }
  0x70   : > { %p4206_p2 = pnand %p4205_p12, %p4199_p5 }
  0x72   : > { %4209 = shalt.err (!%p4206_p2)
}
  0x73   : > { %s4210_s30 = scalar_lea.vmem %s4528_s1, 2048  ;;  %s4308_s29 = smov [#allocation2]  }
  0x74   : > { %p4211_p1 = scmp.ne.s32.totalorder %s4528_s1, %s4210_s30  ;;  %s4215_s24 = sshll.u32 %s4308_s29, 4  ;;  %s4216_s24 = int_to_ptr.vmem [resolvable:$false] %s4215_s24 }
  0x75   : > { %s4217_s12 = scalar_lea.vmem %s4216_s24, 4096  ;;  %p4218_p3 = scmp.lt.s32.totalorder %s4528_s1, %s4216_s24 }
  0x76   : > { %p4213_p4 = pnand %p4211_p1, %p4197_p0  ;;  %p4219_p7 = scmp.lt.s32.totalorder %s4217_s12, %s4210_s30 }
  0x78   : > { %p4214_p8 = pneg %p4213_p4  ;;  %p4220_p10 = por %p4219_p7, %p4218_p3 }
  0x7a   : > { %p4221_p13 = pnand %p4220_p10, %p4214_p8 }
  0x7c   : > { %4224 = shalt.err (!%p4221_p13)
}
  0x7d   : > { %s4309_s22 = smov 128   ;;  %s4310_s13 = smov 8  }
  0x7e   : > { %3777 = dma.hbm_to_vmem [thread:$0]  (!%p4524_p11), %s4522_s15, 2048, %s4528_s1, %s4530_s17, %s4309_s22, %s4309_s22, %s4310_s13  }
  0x7f   : > { %p7034_p0 = scmp.ne.s32.totalorder %s7027_s25, 0 }
  0x81   : > { %391 = sbr.rel (%p7034_p0) target bundleno = 1394 (0x572), region = 64 }
  0x88   : > { %s4561_s14 = sand.u32 1, %s4291_s18   ;;  %p7035_p5 = scmp.ne.s32.totalorder %s7024_s23, 0 }
  0x89   : > { %s3537_s27 = sshll.u32 %s4561_s14, 7  ;;  %s394_s30 = scalar_lea.sflag [#allocation3], %s4561_s14 }
  0x8a   : > { %s4567_s29 = scalar_lea.vmem [#allocation2], %s3537_s27 }
  0x8b   : > { %4270 = dma.done.wait (%p7035_p5), %s394_s30, 2048  }
  0x8c   : > { %4272 = vsyncadd (%p7035_p5), %s394_s30, 4294965248  ;;  %p7036_p11 = scmp.eq.s32.totalorder %s4396_s21, 0 }
  0x8e   : > { %4274 = dma.done.wait (%p7036_p11), [#allocation6], 4224   ;;  %p7037_p9 = pmov %p7036_p11 }
  0x90   : > { %4276 = vsyncadd (%p7037_p9), [#allocation6], 4294963072  ;;  %p7038_p12 = pmov %p7037_p9 }
  0x91   : > { %p7039_p2 = pmov %p7037_p9 }
  0x92   : > { %4278 = dma.done.wait (%p7038_p12), [#allocation9], 4096  }
  0x93   : > { %4280 = vsyncadd (%p7039_p2), [#allocation9], 4294963200  ;;  %v467_v0 = vlaneseq  ;;  %v4603_v6 = vld [vmem:[%s4567_s29] sm:$0xff]  ;;  %v4606_v7 = vld [vmem:[%s4567_s29 + $0x78] sm:$0xff]  ;;  %s6806_s1 = scalar_lea.vmem [#allocation10], %s3537_s27  ;;  %s3619_s27 = sshll.u32 %s4396_s21, 11 }
  0x94   : > { %v476_v10 = vld [vmem:[#allocation5] sm:$0x7f]  ;;  %v477_v11 = vrot.slane %v4603_v6, 5  ;;  %v492_v12 = vrot.slane %v4606_v7, 5  ;;  %v570_v13 = vrot.slane %v4603_v6, 6  ;;  %v585_v14 = vrot.slane %v4606_v7, 6 }
  0x95   : > { %v4581_v1 = vshrl.u32 %v467_v0, 7  ;;  %v663_v17 = vrot.slane %v4603_v6, 7  ;;  %v678_v18 = vrot.slane %v4606_v7, 7  ;;  %v792_v26 = vrot.slane %v4603_v6, 1  ;;  %v4654_v27 = vld [vmem:[%s4567_s29 + $0x8] sm:$0xff]  ;;  %v4668_v36 = vld [vmem:[%s4567_s29 + $0x10] sm:$0xff] }
  0x96   : > { %v793_v33 = vrot.slane %v4654_v27, 1  ;;  %v885_v35 = vrot.slane %v4603_v6, 2  ;;  %v886_v38 = vrot.slane %v4654_v27, 2  ;;  %v6922_v40 = vrot.slane %v4603_v6, 3  ;;  %v4695_v52 = vld [vmem:[%s4567_s29 + $0x18] sm:$0xff]  ;;  %s3424_s28 = sshll.u32 %s6806_s1, 4  ;;  %s6857_s28 = int_to_ptr.vmem [resolvable:$true] %s3424_s28 }
  0x97   : > { %vm493_vm0 = vcmp.lt.s32.totalorder %v4581_v1, 3  ;;  %vm510_vm1 = vcmp.ge.s32.totalorder %v4581_v1, 3  ;;  %v4586_v2 = vsub.s32 0, %v4581_v1  ;;  %vm586_vm2 = vcmp.lt.s32.totalorder %v4581_v1, 2  ;;  %s7146_s12 = sld [smem:[#allocation67_spill]]  ;;  %s3410_s13 = scalar_lea.sflag [#allocation4], %s4561_s14 }
  0x98   : > { %vm603_vm3 = vcmp.ge.s32.totalorder %v4581_v1, 2  ;;  %v4591_v3 = vsub.s32 1, %v4581_v1  ;;  %vm679_vm4 = vcmp.lt.s32.totalorder %v4581_v1, 1  ;;  %vm696_vm5 = vcmp.ge.s32.totalorder %v4581_v1, 1  ;;  %s4225_s21 = scalar_lea.vmem %s6857_s28, 2048  ;;  %s4312_s30 = smov [#allocation10]  }
  0x99   : > { %7040 = vst [vmem:[#allocation17_spill] sm:$0xff] %v4586_v2  ;;  %v4596_v4 = vsub.s32 2, %v4581_v1  ;;  %v4599_v5 = vsub.s32 3, %v4581_v1  ;;  %vm808_vm6 = vcmp.lt.s32.totalorder %v4581_v1, 7  ;;  %v851_v8 = vsub.s32 4, %v4581_v1  ;;  %p4226_p1 = scmp.ne.s32.totalorder %s6857_s28, %s4225_s21  ;;  %s4229_s23 = sshll.u32 %s4312_s30, 4  ;;  %s4230_s23 = int_to_ptr.vmem [resolvable:$false] %s4229_s23 }
  0x9a   : > { %7041 = vst [vmem:[#allocation18_spill] sm:$0xff] %v4591_v3  ;;  %vm901_vm7 = vcmp.lt.s32.totalorder %v4581_v1, 6  ;;  %v944_v9 = vsub.s32 5, %v4581_v1  ;;  %vm994_vm8 = vcmp.lt.s32.totalorder %v4581_v1, 5  ;;  %v4617_v15 = vrot.slane %v476_v10, %v4586_v2  ;;  %s4231_s25 = scalar_lea.vmem %s4230_s23, 4096  ;;  %p4232_p3 = scmp.lt.s32.totalorder %s6857_s28, %s4230_s23 }
  0x9b   : > { %7042 = vst [vmem:[#allocation19_spill] sm:$0xff] %v4596_v4  ;;  %7043 = vst [vmem:[#allocation20_spill] sm:$0xff] %v4599_v5  ;;  %v4620_v16 = vrot.slane %v476_v10, %v4591_v3  ;;  %v509_v19 = vsel %vm493_vm0, %v492_v12, %v477_v11  ;;  %v602_v20 = vsel %vm586_vm2, %v585_v14, %v570_v13  ;;  %v979_v42 = vrot.slane %v4654_v27, 3  ;;  %p4227_p4 = pnand %p4226_p1, %p4513_p6  ;;  %p4233_p7 = scmp.lt.s32.totalorder %s4231_s25, %s4225_s21 }
  0x9c   : > { %v4637_v21 = vrot.slane %v476_v10, %v4596_v4  ;;  %v4640_v22 = vrot.slane %v476_v10, %v4599_v5  ;;  %v518_v23 = vsel %vm510_vm1, %v509_v19, 0.0  ;;  %v611_v24 = vsel %vm603_vm3, %v602_v20, 0.0 }
  0x9d   : > { %v695_v25 = vsel %vm679_vm4, %v678_v18, %v663_v17  ;;  %v538_v28 = vmul.f32 %v4617_v15, %v518_v23  ;;  %v631_v29 = vmul.f32 %v4620_v16, %v611_v24  ;;  %v4664_v34 = vrot.slane %v476_v10, %v851_v8  ;;  %s6855_s22 = scalar_lea.hbm %s7146_s12, %s3619_s27  ;;  %p4228_p8 = pneg %p4227_p4 }
  0x9e   : > { %v704_v30 = vsel %vm696_vm5, %v695_v25, 0.0  ;;  %v760_v31 = vmul.f32 %v4640_v22, %v4603_v6  ;;  %v4671_v39 = vrot.slane %v476_v10, %v944_v9  ;;  %v823_v41 = vsel %vm808_vm6, %v792_v26, %v793_v33  ;;  %v4714_v9 = vld [vmem:[%s6906_s2] ss:$0 sm:$0xff]  ;;  %p4234_p10 = por %p4233_p7, %p4232_p3 }
  0x9f   : > { %v724_v32 = vmul.f32 %v4637_v21, %v704_v30  ;;  %v647_v37 = vadd.f32 %v631_v29, %v538_v28  ;;  %v1037_v43 = vsub.s32 6, %v4581_v1  ;;  %v478_v44 = vrot.slane %v4654_v27, 5 }
  0xa0   : > { %v853_v46 = vmul.f32 %v4664_v34, %v823_v41  ;;  %v916_v47 = vsel %vm901_vm7, %v885_v35, %v886_v38  ;;  %v479_v48 = vrot.slane %v4668_v36, 5  ;;  %v1009_v50 = vsel %vm994_vm8, %v6922_v40, %v979_v42  ;;  %p4235_p13 = pnand %p4234_p10, %p4228_p8 }
  0xa1   : > { %v740_v45 = vadd.f32 %v724_v32, %v647_v37  ;;  %v946_v49 = vmul.f32 %v4671_v39, %v916_v47  ;;  %v4692_v51 = vrot.slane %v476_v10, %v1037_v43  ;;  %v571_v53 = vrot.slane %v4654_v27, 6 }
  0xa2   : > { %v507_v55 = vsel %vm493_vm0, %v478_v44, %v479_v48  ;;  %v572_v56 = vrot.slane %v4668_v36, 6  ;;  %v664_v57 = vrot.slane %v4654_v27, 7  ;;  %v665_v60 = vrot.slane %v4668_v36, 7 }
  0xa3   : > { %v776_v54 = vadd.f32 %v760_v31, %v740_v45  ;;  %v1039_v58 = vmul.f32 %v4692_v51, %v1009_v50  ;;  %v540_v59 = vmul.f32 %v4617_v15, %v507_v55  ;;  %v762_v61 = vmul.f32 %v4640_v22, %v4668_v36 }
  0xa4   : > { %v600_v63 = vsel %vm586_vm2, %v571_v53, %v572_v56  ;;  %v794_v0 = vrot.slane %v4668_v36, 1  ;;  %v795_v8 = vrot.slane %v4695_v52, 1  ;;  %v693_v19 = vsel %vm679_vm4, %v664_v57, %v665_v60 }
  0xa5   : > { %v869_v62 = vadd.f32 %v853_v46, %v776_v54  ;;  %v633_v10 = vmul.f32 %v4620_v16, %v600_v63  ;;  %v887_v20 = vrot.slane %v4668_v36, 2  ;;  %v888_v23 = vrot.slane %v4695_v52, 2 }
  0xa6   : > { %v726_v25 = vmul.f32 %v4637_v21, %v693_v19  ;;  %v821_v28 = vsel %vm808_vm6, %v794_v0, %v795_v8  ;;  %v980_v29 = vrot.slane %v4668_v36, 3  ;;  %v981_v37 = vrot.slane %v4695_v52, 3 }
  0xa7   : > { %v962_v24 = vadd.f32 %v946_v49, %v869_v62  ;;  %v649_v30 = vadd.f32 %v633_v10, %v540_v59  ;;  %v855_v31 = vmul.f32 %v4664_v34, %v821_v28  ;;  %v914_v32 = vsel %vm901_vm7, %v887_v20, %v888_v23 }
  0xa8   : > { %v948_v43 = vmul.f32 %v4671_v39, %v914_v32  ;;  %v508_v45 = vsel %vm493_vm0, %v477_v11, %v478_v44  ;;  %v601_v36 = vsel %vm586_vm2, %v570_v13, %v571_v53  ;;  %v1007_v47 = vsel %vm994_vm8, %v980_v29, %v981_v37 }
  0xa9   : > { %v1055_v41 = vadd.f32 %v1039_v58, %v962_v24  ;;  %v742_v46 = vadd.f32 %v726_v25, %v649_v30  ;;  %v539_v49 = vmul.f32 %v4617_v15, %v508_v45  ;;  %v632_v50 = vmul.f32 %v4620_v16, %v601_v36 }
  0xaa   : > { %v1041_v55 = vmul.f32 %v4692_v51, %v1007_v47  ;;  %v694_v11 = vsel %vm679_vm4, %v663_v17, %v664_v57  ;;  %v761_v13 = vmul.f32 %v4640_v22, %v4654_v27  ;;  %v822_v59 = vsel %vm808_vm6, %v793_v33, %v794_v0  ;;  %v4762_v57 = vld [vmem:[%s4567_s29 + $0x20] sm:$0xff] }
  0xab   : > { %v4743_v54 = vadd.f32 %v4714_v9, %v1055_v41  ;;  %v778_v44 = vadd.f32 %v762_v61, %v742_v46  ;;  %v648_v53 = vadd.f32 %v632_v50, %v539_v49  ;;  %v725_v58 = vmul.f32 %v4637_v21, %v694_v11 }
  0xac   : > { %v854_v62 = vmul.f32 %v4664_v34, %v822_v59  ;;  %v915_v63 = vsel %vm901_vm7, %v886_v38, %v887_v20  ;;  %v1008_v17 = vsel %vm994_vm8, %v979_v42, %v980_v29  ;;  %v480_v27 = vrot.slane %v4695_v52, 5 }
  0xad   : > { %1094 = vadd.xlane.f32.xlu0 %v4743_v54  ;;  %v871_v61 = vadd.f32 %v855_v31, %v778_v44  ;;  %v741_v10 = vadd.f32 %v725_v58, %v648_v53  ;;  %v947_v19 = vmul.f32 %v4671_v39, %v915_v63  ;;  %v1040_v33 = vmul.f32 %v4692_v51, %v1008_v17  ;;  %v4801_v53 = vld [vmem:[%s4567_s29 + $0x28] sm:$0xff] }
  0xae   : > { %v506_v0 = vsel %vm493_vm0, %v479_v48, %v480_v27  ;;  %v573_v24 = vrot.slane %v4695_v52, 6  ;;  %v666_v38 = vrot.slane %v4695_v52, 7  ;;  %v763_v42 = vmul.f32 %v4640_v22, %v4695_v52 }
  0xaf   : > { %v964_v20 = vadd.f32 %v948_v43, %v871_v61  ;;  %v777_v25 = vadd.f32 %v761_v13, %v741_v10  ;;  %v541_v28 = vmul.f32 %v4617_v15, %v506_v0  ;;  %v796_v29 = vrot.slane %v4762_v57, 1 }
  0xb0   : > { %v599_v30 = vsel %vm586_vm2, %v572_v56, %v573_v24  ;;  %v692_v31 = vsel %vm679_vm4, %v665_v60, %v666_v38  ;;  %v889_v48 = vrot.slane %v4762_v57, 2  ;;  %v982_v32 = vrot.slane %v4762_v57, 3 }
  0xb1   : > { %v1057_v41 = vadd.f32 %v1041_v55, %v964_v20  ;;  %v870_v45 = vadd.f32 %v854_v62, %v777_v25  ;;  %v634_v52 = vmul.f32 %v4620_v16, %v599_v30  ;;  %v727_v43 = vmul.f32 %v4637_v21, %v692_v31  ;;  %v4829_v31 = vld [vmem:[%s4567_s29 + $0x30] sm:$0xff] }
  0xb2   : > { %v820_v36 = vsel %vm808_vm6, %v795_v8, %v796_v29  ;;  %v913_v56 = vsel %vm901_vm7, %v888_v23, %v889_v48  ;;  %v1006_v60 = vsel %vm994_vm8, %v981_v37, %v982_v32  ;;  %v481_v46 = vrot.slane %v4762_v57, 5 }
  0xb3   : > { %v4791_v47 = vadd.f32 %v4714_v9, %v1057_v41  ;;  %v963_v49 = vadd.f32 %v947_v19, %v870_v45  ;;  %v650_v50 = vadd.f32 %v634_v52, %v541_v28  ;;  %v856_v55 = vmul.f32 %v4664_v34, %v820_v36 }
  0xb4   : > { %v949_v11 = vmul.f32 %v4671_v39, %v913_v56  ;;  %v1042_v13 = vmul.f32 %v4692_v51, %v1006_v60  ;;  %v505_v8 = vsel %vm493_vm0, %v480_v27, %v481_v46  ;;  %v574_v23 = vrot.slane %v4762_v57, 6 }
  0xb5   : > { %1098 = vadd.xlane.f32.xlu1 %v4791_v47  ;;  %v1056_v37 = vadd.f32 %v1040_v33, %v963_v49  ;;  %v743_v44 = vadd.f32 %v727_v43, %v650_v50  ;;  %v542_v58 = vmul.f32 %v4617_v15, %v505_v8  ;;  %v667_v59 = vrot.slane %v4762_v57, 7 }
  0xb6   : > { %v598_v62 = vsel %vm586_vm2, %v573_v24, %v574_v23  ;;  %v764_v63 = vmul.f32 %v4640_v22, %v4762_v57  ;;  %v797_v17 = vrot.slane %v4801_v53, 1  ;;  %v890_v27 = vrot.slane %v4801_v53, 2 }
  0xb7   : > { %v4812_v61 = vadd.f32 %v4714_v9, %v1056_v37  ;;  %v779_v10 = vadd.f32 %v763_v42, %v743_v44  ;;  %v635_v19 = vmul.f32 %v4620_v16, %v598_v62  ;;  %v691_v33 = vsel %vm679_vm4, %v666_v38, %v667_v59 }
  0xb8   : > { %v728_v0 = vmul.f32 %v4637_v21, %v691_v33  ;;  %v819_v24 = vsel %vm808_vm6, %v796_v29, %v797_v17  ;;  %v912_v57 = vsel %vm901_vm7, %v889_v48, %v890_v27  ;;  %v983_v20 = vrot.slane %v4801_v53, 3 }
  0xb9   : > { %1096 = vadd.xlane.f32.xlu0 %v4812_v61  ;;  %v872_v25 = vadd.f32 %v856_v55, %v779_v10  ;;  %v651_v28 = vadd.f32 %v635_v19, %v542_v58  ;;  %v857_v42 = vmul.f32 %v4664_v34, %v819_v24  ;;  %v950_v30 = vmul.f32 %v4671_v39, %v912_v57 }
  0xba   : > { %v1005_v38 = vsel %vm994_vm8, %v982_v32, %v983_v20  ;;  %v482_v29 = vrot.slane %v4801_v53, 5  ;;  %v575_v41 = vrot.slane %v4801_v53, 6  ;;  %v668_v48 = vrot.slane %v4801_v53, 7 }
  0xbb   : > { %v965_v45 = vadd.f32 %v949_v11, %v872_v25  ;;  %v744_v52 = vadd.f32 %v728_v0, %v651_v28  ;;  %v1043_v43 = vmul.f32 %v4692_v51, %v1005_v38  ;;  %v765_v36 = vmul.f32 %v4640_v22, %v4801_v53  ;;  %v4872_v38 = vld [vmem:[%s4567_s29 + $0x38] sm:$0xff] }
  0xbc   : > { %v504_v56 = vsel %vm493_vm0, %v481_v46, %v482_v29  ;;  %v597_v32 = vsel %vm586_vm2, %v574_v23, %v575_v41  ;;  %v690_v60 = vsel %vm679_vm4, %v667_v59, %v668_v48  ;;  %v798_v49 = vrot.slane %v4829_v31, 1 }
  0xbd   : > { %v1058_v50 = vadd.f32 %v1042_v13, %v965_v45  ;;  %v780_v55 = vadd.f32 %v764_v63, %v744_v52  ;;  %v543_v11 = vmul.f32 %v4617_v15, %v504_v56  ;;  %v636_v8 = vmul.f32 %v4620_v16, %v597_v32 }
  0xbe   : > { %v729_v37 = vmul.f32 %v4637_v21, %v690_v60  ;;  %v818_v44 = vsel %vm808_vm6, %v797_v17, %v798_v49  ;;  %v891_v46 = vrot.slane %v4829_v31, 2  ;;  %v984_v23 = vrot.slane %v4829_v31, 3 }
  0xbf   : > { %v4852_v53 = vadd.f32 %v4714_v9, %v1058_v50  ;;  %v873_v58 = vadd.f32 %v857_v42, %v780_v55  ;;  %v652_v59 = vadd.f32 %v636_v8, %v543_v11  ;;  %v858_v13 = vmul.f32 %v4664_v34, %v818_v44 }
  0xc0   : > { %v911_v62 = vsel %vm901_vm7, %v890_v27, %v891_v46  ;;  %v1004_v63 = vsel %vm994_vm8, %v983_v20, %v984_v23  ;;  %v483_v17 = vrot.slane %v4829_v31, 5  ;;  %v576_v10 = vrot.slane %v4829_v31, 6 }
  0xc1   : > { %1100 = vadd.xlane.f32.xlu1 %v4852_v53  ;;  %v966_v19 = vadd.f32 %v950_v30, %v873_v58  ;;  %v745_v33 = vadd.f32 %v729_v37, %v652_v59  ;;  %v951_v0 = vmul.f32 %v4671_v39, %v911_v62  ;;  %v1044_v24 = vmul.f32 %v4692_v51, %v1004_v63 }
  0xc2   : > { %v503_v57 = vsel %vm493_vm0, %v482_v29, %v483_v17  ;;  %v596_v27 = vsel %vm586_vm2, %v575_v41, %v576_v10  ;;  %v669_v20 = vrot.slane %v4829_v31, 7  ;;  %v766_v25 = vmul.f32 %v4640_v22, %v4829_v31 }
  0xc3   : > { %v1059_v28 = vadd.f32 %v1043_v43, %v966_v19  ;;  %v781_v42 = vadd.f32 %v765_v36, %v745_v33  ;;  %v544_v30 = vmul.f32 %v4617_v15, %v503_v57  ;;  %v637_v45 = vmul.f32 %v4620_v16, %v596_v27 }
  0xc4   : > { %v689_v52 = vsel %vm679_vm4, %v668_v48, %v669_v20  ;;  %v799_v29 = vrot.slane %v4872_v38, 1  ;;  %v892_v41 = vrot.slane %v4872_v38, 2  ;;  %v985_v56 = vrot.slane %v4872_v38, 3 }
  0xc5   : > { %v4882_v31 = vadd.f32 %v4714_v9, %v1059_v28  ;;  %v874_v43 = vadd.f32 %v858_v13, %v781_v42  ;;  %v653_v36 = vadd.f32 %v637_v45, %v544_v30  ;;  %v730_v32 = vmul.f32 %v4637_v21, %v689_v52 }
  0xc6   : > { %v817_v60 = vsel %vm808_vm6, %v798_v49, %v799_v29  ;;  %v910_v48 = vsel %vm901_vm7, %v891_v46, %v892_v41  ;;  %v1003_v50 = vsel %vm994_vm8, %v984_v23, %v985_v56  ;;  %v4892_v55 = vadd.s32 56, %v4581_v1  ;;  %v4899_v49 = vld [vmem:[%s4567_s29 + $0x40] sm:$0xff] }
  0xc7   : > { %1102 = vadd.xlane.f32.xlu0 %v4882_v31  ;;  %v967_v11 = vadd.f32 %v951_v0, %v874_v43  ;;  %v746_v8 = vadd.f32 %v730_v32, %v653_v36  ;;  %v859_v37 = vmul.f32 %v4664_v34, %v817_v60  ;;  %v952_v44 = vmul.f32 %v4671_v39, %v910_v48 }
  0xc8   : > { %v1045_v58 = vmul.f32 %v4692_v51, %v1003_v50  ;;  %v484_v46 = vrot.slane %v4872_v38, 5  ;;  %v577_v59 = vrot.slane %v4872_v38, 6  ;;  %v670_v23 = vrot.slane %v4872_v38, 7 }
  0xc9   : > { %v1060_v13 = vadd.f32 %v1044_v24, %v967_v11  ;;  %v782_v62 = vadd.f32 %v766_v25, %v746_v8  ;;  %v767_v63 = vmul.f32 %v4640_v22, %v4872_v38  ;;  %v800_v19 = vrot.slane %v4899_v49, 1 }
  0xca   : > { %v502_v33 = vsel %vm493_vm0, %v483_v17, %v484_v46  ;;  %v595_v0 = vsel %vm586_vm2, %v576_v10, %v577_v59  ;;  %v688_v57 = vsel %vm679_vm4, %v669_v20, %v670_v23  ;;  %vm832_vm9 = vcmp.lt.s32.totalorder %v4892_v55, 63 }
  0xcb   : > { %v4915_v27 = vadd.f32 %v4714_v9, %v1060_v13  ;;  %v875_v24 = vadd.f32 %v859_v37, %v782_v62  ;;  %v545_v25 = vmul.f32 %v4617_v15, %v502_v33  ;;  %v638_v28 = vmul.f32 %v4620_v16, %v595_v0  ;;  %v4948_v13 = vld [vmem:[%s4567_s29 + $0x48] sm:$0xff] }
  0xcc   : > { %v731_v42 = vmul.f32 %v4637_v21, %v688_v57  ;;  %v816_v17 = vsel %vm808_vm6, %v799_v29, %v800_v19  ;;  %v893_v10 = vrot.slane %v4899_v49, 2  ;;  %vm925_vm10 = vcmp.lt.s32.totalorder %v4892_v55, 62 }
  0xcd   : > { %1104 = vadd.xlane.f32.xlu1 %v4915_v27  ;;  %v968_v20 = vadd.f32 %v952_v44, %v875_v24  ;;  %v654_v38 = vadd.f32 %v638_v28, %v545_v25  ;;  %v840_v30 = vsel %vm832_vm9, %v816_v17, 0.0  ;;  %v986_v45 = vrot.slane %v4899_v49, 3 }
  0xce   : > { %v860_v52 = vmul.f32 %v4664_v34, %v840_v30  ;;  %v909_v43 = vsel %vm901_vm7, %v892_v41, %v893_v10  ;;  %vm1018_vm11 = vcmp.lt.s32.totalorder %v4892_v55, 61  ;;  %v485_v29 = vrot.slane %v4899_v49, 5  ;;  %v3836_v55 = vld [vmem:[#allocation7 + $0xc] ss:$16 sps:$4 sm:$0xff]  }
  0xcf   : > { %v1061_v36 = vadd.f32 %v1045_v58, %v968_v20  ;;  %v747_v32 = vadd.f32 %v731_v42, %v654_v38  ;;  %v933_v60 = vsel %vm925_vm10, %v909_v43, 0.0  ;;  %v1002_v48 = vsel %vm994_vm8, %v985_v56, %v986_v45  ;;  %1651 = vmatprep.subr.bf16.mxu1 %v3836_v55 }
  0xd0   : > { %v953_v50 = vmul.f32 %v4671_v39, %v933_v60  ;;  %v1026_v11 = vsel %vm1018_vm11, %v1002_v48, 0.0  ;;  %v501_v41 = vsel %vm493_vm0, %v484_v46, %v485_v29  ;;  %v578_v8 = vrot.slane %v4899_v49, 6 }
  0xd1   : > { %v4944_v37 = vadd.f32 %v4714_v9, %v1061_v36  ;;  %v783_v44 = vadd.f32 %v767_v63, %v747_v32  ;;  %v1046_v58 = vmul.f32 %v4692_v51, %v1026_v11  ;;  %v526_v56 = vsel %vm510_vm1, %v501_v41, 0.0 }
  0xd2   : > { %v546_v62 = vmul.f32 %v4617_v15, %v526_v56  ;;  %v594_v33 = vsel %vm586_vm2, %v577_v59, %v578_v8  ;;  %v671_v46 = vrot.slane %v4899_v49, 7  ;;  %v768_v0 = vmul.f32 %v4640_v22, %v4899_v49 }
  0xd3   : > { %1106 = vadd.xlane.f32.xlu0 %v4944_v37  ;;  %v876_v63 = vadd.f32 %v860_v52, %v783_v44  ;;  %v619_v57 = vsel %vm603_vm3, %v594_v33, 0.0  ;;  %v801_v24 = vrot.slane %v4948_v13, 1  ;;  %v894_v25 = vrot.slane %v4948_v13, 2 }
  0xd4   : > { %v639_v28 = vmul.f32 %v4620_v16, %v619_v57  ;;  %v687_v59 = vsel %vm679_vm4, %v670_v23, %v671_v46  ;;  %v987_v42 = vrot.slane %v4948_v13, 3  ;;  %v486_v49 = vrot.slane %v4948_v13, 5 }
  0xd5   : > { %v969_v17 = vadd.f32 %v953_v50, %v876_v63  ;;  %v712_v20 = vsel %vm696_vm5, %v687_v59, 0.0  ;;  %v815_v38 = vsel %vm808_vm6, %v800_v19, %v801_v24  ;;  %v908_v30 = vsel %vm901_vm7, %v893_v10, %v894_v25  ;;  %v4984_v10 = vld [vmem:[%s4567_s29 + $0x50] sm:$0xff] }
  0xd6   : > { %v655_v52 = vadd.f32 %v639_v28, %v546_v62  ;;  %v732_v43 = vmul.f32 %v4637_v21, %v712_v20  ;;  %v861_v23 = vmul.f32 %v4664_v34, %v815_v38  ;;  %v954_v36 = vmul.f32 %v4671_v39, %v908_v30 }
  0xd7   : > { %v1062_v32 = vadd.f32 %v1046_v58, %v969_v17  ;;  %v1001_v60 = vsel %vm994_vm8, %v986_v45, %v987_v42  ;;  %v500_v48 = vsel %vm493_vm0, %v485_v29, %v486_v49  ;;  %v579_v50 = vrot.slane %v4948_v13, 6 }
  0xd8   : > { %v748_v19 = vadd.f32 %v732_v43, %v655_v52  ;;  %v1047_v11 = vmul.f32 %v4692_v51, %v1001_v60  ;;  %v547_v41 = vmul.f32 %v4617_v15, %v500_v48  ;;  %v672_v44 = vrot.slane %v4948_v13, 7  ;;  %v5017_v60 = vld [vmem:[%s4567_s29 + $0x58] sm:$0xff] }
  0xd9   : > { %v4989_v56 = vadd.f32 %v4714_v9, %v1062_v32  ;;  %v593_v45 = vsel %vm586_vm2, %v578_v8, %v579_v50  ;;  %v769_v29 = vmul.f32 %v4640_v22, %v4948_v13  ;;  %v802_v58 = vrot.slane %v4984_v10, 1 }
  0xda   : > { %v784_v62 = vadd.f32 %v768_v0, %v748_v19  ;;  %v640_v33 = vmul.f32 %v4620_v16, %v593_v45  ;;  %v686_v63 = vsel %vm679_vm4, %v671_v46, %v672_v44  ;;  %v895_v57 = vrot.slane %v4984_v10, 2 }
  0xdb   : > { %1108 = vadd.xlane.f32.xlu1 %v4989_v56  ;;  %v733_v28 = vmul.f32 %v4637_v21, %v686_v63  ;;  %v814_v8 = vsel %vm808_vm6, %v801_v24, %v802_v58  ;;  %v988_v13 = vrot.slane %v4984_v10, 3  ;;  %v487_v59 = vrot.slane %v4984_v10, 5 }
  0xdc   : > { %v877_v0 = vadd.f32 %v861_v23, %v784_v62  ;;  %v656_v17 = vadd.f32 %v640_v33, %v547_v41  ;;  %v862_v20 = vmul.f32 %v4664_v34, %v814_v8  ;;  %v907_v46 = vsel %vm901_vm7, %v894_v25, %v895_v57 }
  0xdd   : > { %v955_v38 = vmul.f32 %v4671_v39, %v907_v46  ;;  %v1000_v30 = vsel %vm994_vm8, %v987_v42, %v988_v13  ;;  %v499_v52 = vsel %vm493_vm0, %v486_v49, %v487_v59  ;;  %v580_v24 = vrot.slane %v4984_v10, 6 }
  0xde   : > { %v970_v43 = vadd.f32 %v954_v36, %v877_v0  ;;  %v749_v32 = vadd.f32 %v733_v28, %v656_v17  ;;  %v1048_v23 = vmul.f32 %v4692_v51, %v1000_v30  ;;  %v548_v48 = vmul.f32 %v4617_v15, %v499_v52 }
  0xdf   : > { %v592_v25 = vsel %vm586_vm2, %v579_v50, %v580_v24  ;;  %v673_v19 = vrot.slane %v4984_v10, 7  ;;  %v770_v42 = vmul.f32 %v4640_v22, %v4984_v10  ;;  %v803_v49 = vrot.slane %v5017_v60, 1 }
  0xe0   : > { %v1063_v41 = vadd.f32 %v1047_v11, %v970_v43  ;;  %v785_v45 = vadd.f32 %v769_v29, %v749_v32  ;;  %v641_v36 = vmul.f32 %v4620_v16, %v592_v25  ;;  %v896_v62 = vrot.slane %v5017_v60, 2  ;;  %v5049_v43 = vld [vmem:[%s4567_s29 + $0x60] sm:$0xff] }
  0xe1   : > { %v685_v33 = vsel %vm679_vm4, %v672_v44, %v673_v19  ;;  %v813_v63 = vsel %vm808_vm6, %v802_v58, %v803_v49  ;;  %v989_v50 = vrot.slane %v5017_v60, 3  ;;  %v488_v28 = vrot.slane %v5017_v60, 5 }
  0xe2   : > { %v5035_v10 = vadd.f32 %v4714_v9, %v1063_v41  ;;  %v878_v11 = vadd.f32 %v862_v20, %v785_v45  ;;  %v657_v29 = vadd.f32 %v641_v36, %v548_v48  ;;  %v734_v8 = vmul.f32 %v4637_v21, %v685_v33 }
  0xe3   : > { %v863_v0 = vmul.f32 %v4664_v34, %v813_v63  ;;  %v906_v44 = vsel %vm901_vm7, %v895_v57, %v896_v62  ;;  %v999_v58 = vsel %vm994_vm8, %v988_v13, %v989_v50  ;;  %v498_v17 = vsel %vm493_vm0, %v487_v59, %v488_v28 }
  0xe4   : > { %1110 = vadd.xlane.f32.xlu0 %v5035_v10  ;;  %v971_v46 = vadd.f32 %v955_v38, %v878_v11  ;;  %v750_v30 = vadd.f32 %v734_v8, %v657_v29  ;;  %v956_v20 = vmul.f32 %v4671_v39, %v906_v44  ;;  %v1049_v52 = vmul.f32 %v4692_v51, %v999_v58 }
  0xe5   : > { %v549_v32 = vmul.f32 %v4617_v15, %v498_v17  ;;  %v581_v57 = vrot.slane %v5017_v60, 6  ;;  %v674_v48 = vrot.slane %v5017_v60, 7  ;;  %v771_v13 = vmul.f32 %v4640_v22, %v5017_v60 }
  0xe6   : > { %v1064_v59 = vadd.f32 %v1048_v23, %v971_v46  ;;  %v786_v25 = vadd.f32 %v770_v42, %v750_v30  ;;  %v804_v38 = vrot.slane %v5049_v43, 1  ;;  %v897_v41 = vrot.slane %v5049_v43, 2 }
  0xe7   : > { %v591_v45 = vsel %vm586_vm2, %v580_v24, %v581_v57  ;;  %v684_v36 = vsel %vm679_vm4, %v673_v19, %v674_v48  ;;  %v990_v33 = vrot.slane %v5049_v43, 3  ;;  %v489_v63 = vrot.slane %v5049_v43, 5 }
  0xe8   : > { %v5065_v11 = vadd.f32 %v4714_v9, %v1064_v59  ;;  %v879_v23 = vadd.f32 %v863_v0, %v786_v25  ;;  %v642_v60 = vmul.f32 %v4620_v16, %v591_v45  ;;  %v735_v42 = vmul.f32 %v4637_v21, %v684_v36 }
  0xe9   : > { %v812_v29 = vsel %vm808_vm6, %v803_v49, %v804_v38  ;;  %v905_v24 = vsel %vm901_vm7, %v896_v62, %v897_v41  ;;  %v998_v19 = vsel %vm994_vm8, %v989_v50, %v990_v33  ;;  %v497_v8 = vsel %vm493_vm0, %v488_v28, %v489_v63  ;;  %v5082_v49 = vld [vmem:[%s4567_s29 + $0x68] sm:$0xff] }
  0xea   : > { %1112 = vadd.xlane.f32.xlu1 %v5065_v11  ;;  %v972_v44 = vadd.f32 %v956_v20, %v879_v23  ;;  %v658_v0 = vadd.f32 %v642_v60, %v549_v32  ;;  %v864_v58 = vmul.f32 %v4664_v34, %v812_v29  ;;  %v957_v17 = vmul.f32 %v4671_v39, %v905_v24 }
  0xeb   : > { %v1050_v46 = vmul.f32 %v4692_v51, %v998_v19  ;;  %v550_v62 = vmul.f32 %v4617_v15, %v497_v8  ;;  %v582_v30 = vrot.slane %v5049_v43, 6  ;;  %v675_v50 = vrot.slane %v5049_v43, 7 }
  0xec   : > { %v1065_v59 = vadd.f32 %v1049_v52, %v972_v44  ;;  %v751_v28 = vadd.f32 %v735_v42, %v658_v0  ;;  %v772_v20 = vmul.f32 %v4640_v22, %v5049_v43  ;;  %v805_v32 = vrot.slane %v5082_v49, 1 }
  0xed   : > { %v590_v25 = vsel %vm586_vm2, %v581_v57, %v582_v30  ;;  %v683_v45 = vsel %vm679_vm4, %v674_v48, %v675_v50  ;;  %v898_v36 = vrot.slane %v5082_v49, 2  ;;  %v991_v23 = vrot.slane %v5082_v49, 3 }
  0xee   : > { %v5097_v60 = vadd.f32 %v4714_v9, %v1065_v59  ;;  %v787_v52 = vadd.f32 %v771_v13, %v751_v28  ;;  %v643_v42 = vmul.f32 %v4620_v16, %v590_v25  ;;  %v736_v43 = vmul.f32 %v4637_v21, %v683_v45  ;;  %v465_v25 = vld [vmem:[%s4567_s29 + $0x70] sm:$0xff] }
  0xef   : > { %v811_v29 = vsel %vm808_vm6, %v804_v38, %v805_v32  ;;  %v904_v57 = vsel %vm901_vm7, %v897_v41, %v898_v36  ;;  %v997_v48 = vsel %vm994_vm8, %v990_v33, %v991_v23  ;;  %v490_v24 = vrot.slane %v5082_v49, 5 }
  0xf0   : > { %1114 = vadd.xlane.f32.xlu0 %v5097_v60  ;;  %v880_v19 = vadd.f32 %v864_v58, %v787_v52  ;;  %v659_v13 = vadd.f32 %v643_v42, %v550_v62  ;;  %v865_v8 = vmul.f32 %v4664_v34, %v811_v29  ;;  %v958_v44 = vmul.f32 %v4671_v39, %v904_v57 }
  0xf1   : > { %v1051_v0 = vmul.f32 %v4692_v51, %v997_v48  ;;  %v496_v38 = vsel %vm493_vm0, %v489_v63, %v490_v24  ;;  %v583_v41 = vrot.slane %v5082_v49, 6  ;;  %v676_v59 = vrot.slane %v5082_v49, 7 }
  0xf2   : > { %v973_v33 = vadd.f32 %v957_v17, %v880_v19  ;;  %v752_v28 = vadd.f32 %v736_v43, %v659_v13  ;;  %v551_v45 = vmul.f32 %v4617_v15, %v496_v38  ;;  %v773_v58 = vmul.f32 %v4640_v22, %v5082_v49 }
  0xf3   : > { %v589_v62 = vsel %vm586_vm2, %v582_v30, %v583_v41  ;;  %v682_v52 = vsel %vm679_vm4, %v675_v50, %v676_v59  ;;  %v806_v42 = vrot.slane %v465_v25, 1  ;;  %v899_v63 = vrot.slane %v465_v25, 2 }
  0xf4   : > { %v1066_v29 = vadd.f32 %v1050_v46, %v973_v33  ;;  %v788_v57 = vadd.f32 %v772_v20, %v752_v28  ;;  %v644_v48 = vmul.f32 %v4620_v16, %v589_v62  ;;  %v737_v17 = vmul.f32 %v4637_v21, %v682_v52 }
  0xf5   : > { %v810_v43 = vsel %vm808_vm6, %v805_v32, %v806_v42  ;;  %v903_v49 = vsel %vm901_vm7, %v898_v36, %v899_v63  ;;  %v992_v19 = vrot.slane %v465_v25, 3  ;;  %v491_v13 = vrot.slane %v465_v25, 5 }
  0xf6   : > { %v5131_v30 = vadd.f32 %v4714_v9, %v1066_v29  ;;  %v881_v50 = vadd.f32 %v865_v8, %v788_v57  ;;  %v660_v38 = vadd.f32 %v644_v48, %v551_v45  ;;  %v866_v46 = vmul.f32 %v4664_v34, %v810_v43  ;;  %v4094_v48 = vld [vmem:[%s4567_s29 + $0x78] sm:$0xff] }
  0xf7   : > { %v959_v20 = vmul.f32 %v4671_v39, %v903_v49  ;;  %v996_v33 = vsel %vm994_vm8, %v991_v23, %v992_v19  ;;  %v495_v32 = vsel %vm493_vm0, %v490_v24, %v491_v13  ;;  %v584_v28 = vrot.slane %v465_v25, 6 }
  0xf8   : > { %1116 = vadd.xlane.f32.xlu1 %v5131_v30  ;;  %v974_v36 = vadd.f32 %v958_v44, %v881_v50  ;;  %v753_v62 = vadd.f32 %v737_v17, %v660_v38  ;;  %v1052_v52 = vmul.f32 %v4692_v51, %v996_v33  ;;  %v552_v8 = vmul.f32 %v4617_v15, %v495_v32 }
  0xf9   : > { %v588_v45 = vsel %vm586_vm2, %v583_v41, %v584_v28  ;;  %v677_v29 = vrot.slane %v465_v25, 7  ;;  %v774_v57 = vmul.f32 %v4640_v22, %v465_v25  ;;  %v807_v23 = vrot.slane %v4094_v48, 1 }
  0xfa   : > { %v1067_v43 = vadd.f32 %v1051_v0, %v974_v36  ;;  %v789_v49 = vadd.f32 %v773_v58, %v753_v62  ;;  %v645_v24 = vmul.f32 %v4620_v16, %v588_v45  ;;  %v900_v40 = vrot.slane %v4094_v48, 2 }
  0xfb   : > { %v681_v44 = vsel %vm679_vm4, %v676_v59, %v677_v29  ;;  %v809_v17 = vsel %vm808_vm6, %v806_v42, %v807_v23  ;;  %v993_v50 = vrot.slane %v4094_v48, 3  ;;  %v494_v41 = vsel %vm493_vm0, %v491_v13, %v492_v12 }
  0xfc   : > { %v5156_v25 = vadd.f32 %v4714_v9, %v1067_v43  ;;  %v882_v0 = vadd.f32 %v866_v46, %v789_v49  ;;  %v661_v58 = vadd.f32 %v645_v24, %v552_v8  ;;  %v738_v38 = vmul.f32 %v4637_v21, %v681_v44 }
  0xfd   : > { %v867_v33 = vmul.f32 %v4664_v34, %v809_v17  ;;  %v902_v59 = vsel %vm901_vm7, %v899_v63, %v900_v40  ;;  %v995_v36 = vsel %vm994_vm8, %v992_v19, %v993_v50  ;;  %v553_v12 = vmul.f32 %v4617_v15, %v494_v41  ;;  %v3839_v41 = vld [vmem:[#allocation7 + $0x8] ss:$16 sps:$4 sm:$0xff]  }
  0xfe   : > { %1118 = vadd.xlane.f32.xlu0 %v5156_v25  ;;  %v975_v42 = vadd.f32 %v959_v20, %v882_v0  ;;  %v754_v32 = vadd.f32 %v738_v38, %v661_v58  ;;  %v960_v13 = vmul.f32 %v4671_v39, %v902_v59  ;;  %v587_v46 = vsel %vm586_vm2, %v584_v28, %v585_v14  ;;  %v3842_v0 = vld [vmem:[#allocation7 + $0x2c] ss:$16 sps:$4 sm:$0xff]  }
  0xff   : > { %v680_v63 = vsel %vm679_vm4, %v677_v29, %v678_v18  ;;  %v824_v20 = vsel %vm808_vm6, %v807_v23, %v792_v26  ;;  %v646_v15 = vmul.f32 %v4620_v16, %v587_v46  ;;  %v1053_v45 = vmul.f32 %v4692_v51, %v995_v36  ;;  %1652 = vmatpush1.bf16.msra.mxu1 %v3839_v41 }
 0x100   : > { %v1068_v19 = vadd.f32 %v1052_v52, %v975_v42  ;;  %v790_v62 = vadd.f32 %v774_v57, %v754_v32  ;;  %v739_v8 = vmul.f32 %v4637_v21, %v680_v63  ;;  %v775_v14 = vmul.f32 %v4094_v48, %v4640_v22  ;;  %1653 = vmatprep.subr.bf16.mxu1 %v3842_v0  ;;  %v3863_v0 = vld [vmem:[#allocation7 + $0x88] ss:$16 sps:$4 sm:$0xff]  }
 0x101   : > { %v848_v7 = vsel %vm832_vm9, %v824_v20, 0.0  ;;  %v917_v18 = vsel %vm901_vm7, %v900_v40, %v885_v35  ;;  %v662_v52 = vadd.f32 %v646_v15, %v553_v12  ;;  %v7044_v16 = vrot.slane %v4603_v6, 3 }
 0x102   : > { %v5190_v26 = vadd.f32 %v4714_v9, %v1068_v19  ;;  %v883_v28 = vadd.f32 %v867_v33, %v790_v62  ;;  %v941_v22 = vsel %vm925_vm10, %v917_v18, 0.0  ;;  %v868_v48 = vmul.f32 %v4664_v34, %v848_v7  ;;  %v3834_v34 = vld [vmem:[#allocation7 + $0x4] ss:$16 sps:$4 sm:$0xff]   ;;  %v3845_v19 = vld [vmem:[#allocation7 + $0x28] ss:$16 sps:$4 sm:$0xff]  }
 0x103   : > { %v1010_v21 = vsel %vm994_vm8, %v993_v50, %v7044_v16  ;;  %v755_v57 = vadd.f32 %v739_v8, %v662_v52  ;;  %v961_v43 = vmul.f32 %v4671_v39, %v941_v22  ;;  %v3838_v50 = vld [vmem:[#allocation7] ss:$16 sps:$4 sm:$0xff]   ;;  %v3840_v39 = vld [vmem:[#allocation7 + $0x24] ss:$16 sps:$4 sm:$0xff]   ;;  %1538 = vmatprep.subr.bf16.mxu0 %v3834_v34  ;;  %v3848_v8 = vld [vmem:[#allocation7 + $0x4c] ss:$16 sps:$4 sm:$0xff]   ;;  %1654 = vmatpush1.bf16.msra.mxu1 %v3845_v19 }
 0x104   : > { %1120 = vadd.xlane.f32.xlu1 %v5190_v26  ;;  %v976_v29 = vadd.f32 %v960_v13, %v883_v28  ;;  %v1034_v35 = vsel %vm1018_vm11, %v1010_v21, 0.0  ;;  %1539 = vmatpush1.bf16.msra.mxu0 %v3838_v50  ;;  %v3846_v62 = vld [vmem:[#allocation7 + $0x44] ss:$16 sps:$4 sm:$0xff]   ;;  %v3850_v16 = vld [vmem:[#allocation7 + $0x40] ss:$16 sps:$4 sm:$0xff]  }
 0x105   : > { %v791_v23 = vadd.f32 %v775_v14, %v755_v57  ;;  %v1054_v49 = vmul.f32 %v4692_v51, %v1034_v35  ;;  %1540 = vmatprep.subr.bf16.mxu0 %v3840_v39  ;;  %1655 = vmatprep.subr.bf16.mxu1 %v3848_v8  ;;  %v3851_v21 = vld [vmem:[#allocation7 + $0x48] ss:$16 sps:$4 sm:$0xff]   ;;  %v3852_v22 = vld [vmem:[#allocation7 + $0x64] ss:$16 sps:$4 sm:$0xff]   ;;  %v3854_v57 = vld [vmem:[#allocation7 + $0x6c] ss:$16 sps:$4 sm:$0xff]  }
 0x106   : > { %v1069_v40 = vadd.f32 %v1053_v45, %v976_v29  ;;  %v3862_v39 = vld [vmem:[#allocation7 + $0x80] ss:$16 sps:$4 sm:$0xff]   ;;  %v3870_v19 = vld [vmem:[#allocation7 + $0xc4] ss:$16 sps:$4 sm:$0xff]  }
 0x107   : > { %v884_v1 = vadd.f32 %v868_v48, %v791_v23  ;;  %1656 = vmatpush1.bf16.msra.mxu1 %v3851_v21 }
 0x108   : > { %v5204_v6 = vadd.f32 %v4714_v9, %v1069_v40  ;;  %1657 = vmatprep.subr.bf16.mxu1 %v3854_v57 }
 0x109   : > { %v977_v24 = vadd.f32 %v961_v43, %v884_v1  ;;  %v3856_v1 = vld [vmem:[#allocation7 + $0x60] ss:$16 sps:$4 sm:$0xff]  }
 0x10a   : > { %1122 = vadd.xlane.f32.xlu0 %v5204_v6 }
 0x10b   : > { %v1070_v44 = vadd.f32 %v1054_v49, %v977_v24  ;;  %v3857_v49 = vld [vmem:[#allocation7 + $0x68] ss:$16 sps:$4 sm:$0xff]   ;;  %v3858_v24 = vld [vmem:[#allocation7 + $0x84] ss:$16 sps:$4 sm:$0xff]  }
 0x10c   : > { %1658 = vmatpush1.bf16.msra.mxu1 %v3857_v49 }
 0x10d   : > { %v5209_v17 = vadd.f32 %v4714_v9, %v1070_v44  ;;  %v3860_v44 = vld [vmem:[#allocation7 + $0x8c] ss:$16 sps:$4 sm:$0xff]  }
 0x10e   : > { %1659 = vmatprep.subr.bf16.mxu1 %v3860_v44 }
 0x10f   : > { %1124 = vadd.xlane.f32.xlu1 %v5209_v17 }
 0x110   : > { %1660 = vmatpush1.bf16.msra.mxu1 %v3863_v0 }
 0x13a   : > { %v1095_v51 = vpop.xlane.xlu0 %1094 }
 0x13b   : > { %v1126_v58 = vmul.f32 0.0078125, %v1095_v51  ;;  %v3864_v51 = vld [vmem:[#allocation7 + $0xa4] ss:$16 sps:$4 sm:$0xff]  }
 0x13d   : > { %v5213_v38 = vsub.f32 %v4743_v54, %v1126_v58 }
 0x13f   : > { %v1158_v9 = vmul.f32 %v5213_v38, %v5213_v38 }
 0x141   : > { %1174 = vadd.xlane.f32.xlu0 %v1158_v9  ;;  %v3866_v9 = vld [vmem:[#allocation7 + $0xac] ss:$16 sps:$4 sm:$0xff]  }
 0x142   : > { %v1099_v33 = vpop.xlane.xlu1 %1098  ;;  %1661 = vmatprep.subr.bf16.mxu1 %v3866_v9 }
 0x143   : > { %v1128_v59 = vmul.f32 0.0078125, %v1099_v33 }
 0x145   : > { %v5218_v42 = vsub.f32 %v4791_v47, %v1128_v59  ;;  %v3844_v47 = vld [vmem:[#allocation7 + $0x20] ss:$16 sps:$4 sm:$0xff]  }
 0x146   : > { %v1097_v32 = vpop.xlane.xlu0 %1096  ;;  %1541 = vmatpush1.bf16.msra.mxu0 %v3844_v47  ;;  %v3869_v47 = vld [vmem:[#allocation7 + $0xa8] ss:$16 sps:$4 sm:$0xff]  }
 0x147   : > { %v1127_v36 = vmul.f32 0.0078125, %v1097_v32  ;;  %v1160_v12 = vmul.f32 %v5218_v42, %v5218_v42  ;;  %1542 = vmatprep.subr.bf16.mxu0 %v3846_v62  ;;  %1662 = vmatpush1.bf16.msra.mxu1 %v3869_v47  ;;  %v5305_v47 = vld [vmem:[%s6908_s4] ss:$0 sm:$0xff] }
 0x149   : > { %v5223_v13 = vsub.f32 %v4812_v61, %v1127_v36  ;;  %1178 = vadd.xlane.f32.xlu0 %v1160_v12 }
 0x14a   : > { %1543 = vmatpush1.bf16.msra.mxu0 %v3850_v16  ;;  %v3876_v16 = vld [vmem:[#allocation7 + $0xe4] ss:$16 sps:$4 sm:$0xff]  }
 0x14b   : > { %v1159_v54 = vmul.f32 %v5223_v13, %v5223_v13  ;;  %1544 = vmatprep.subr.bf16.mxu0 %v3852_v22  ;;  %v3878_v22 = vld [vmem:[#allocation7 + $0xec] ss:$16 sps:$4 sm:$0xff]  }
 0x14d   : > { %1176 = vadd.xlane.f32.xlu1 %v1159_v54 }
 0x14e   : > { %v1101_v46 = vpop.xlane.xlu1 %1100  ;;  %1545 = vmatpush1.bf16.msra.mxu0 %v3856_v1  ;;  %v4311_v1 = vmov 0  }
 0x14f   : > { %v1129_v63 = vmul.f32 0.0078125, %v1101_v46  ;;  %1546 = vmatprep.subr.bf16.mxu0 %v3858_v24  ;;  %1570 = vmatprep.mubr.bf16.mxu0 %v4311_v1 }
 0x150   : > { %1683 = vmatprep.mubr.bf16.mxu1 %v4311_v1 }
 0x151   : > { %v5228_v20 = vsub.f32 %v4852_v53, %v1129_v63  ;;  %v3868_v63 = vld [vmem:[#allocation7 + $0xa0] ss:$16 sps:$4 sm:$0xff]  }
 0x152   : > { %1547 = vmatpush1.bf16.msra.mxu0 %v3862_v39 }
 0x153   : > { %v1161_v15 = vmul.f32 %v5228_v20, %v5228_v20  ;;  %1548 = vmatprep.subr.bf16.mxu0 %v3864_v51 }
 0x154   : > { %v1103_v45 = vpop.xlane.xlu0 %1102 }
 0x155   : > { %v1130_v61 = vmul.f32 0.0078125, %v1103_v45  ;;  %1180 = vadd.xlane.f32.xlu1 %v1161_v15  ;;  %v3872_v15 = vld [vmem:[#allocation7 + $0xcc] ss:$16 sps:$4 sm:$0xff]  }
 0x156   : > { %1549 = vmatpush1.bf16.msra.mxu0 %v3868_v63  ;;  %1663 = vmatprep.subr.bf16.mxu1 %v3872_v15 }
 0x157   : > { %v5233_v14 = vsub.f32 %v4882_v31, %v1130_v61  ;;  %1550 = vmatprep.subr.bf16.mxu0 %v3870_v19 }
 0x159   : > { %v1162_v53 = vmul.f32 %v5233_v14, %v5233_v14 }
 0x15a   : > { %v1105_v7 = vpop.xlane.xlu1 %1104 }
 0x15b   : > { %v1131_v18 = vmul.f32 0.0078125, %v1105_v7  ;;  %1182 = vadd.xlane.f32.xlu0 %v1162_v53 }
 0x15d   : > { %v5238_v28 = vsub.f32 %v4915_v27, %v1131_v18  ;;  %v3874_v18 = vld [vmem:[#allocation7 + $0xc0] ss:$16 sps:$4 sm:$0xff]  }
 0x15e   : > { %1551 = vmatpush1.bf16.msra.mxu0 %v3874_v18 }
 0x15f   : > { %v1163_v52 = vmul.f32 %v5238_v28, %v5238_v28  ;;  %1552 = vmatprep.subr.bf16.mxu0 %v3876_v16 }
 0x160   : > { %v1107_v29 = vpop.xlane.xlu0 %1106 }
 0x161   : > { %v1132_v48 = vmul.f32 0.0078125, %v1107_v29  ;;  %1184 = vadd.xlane.f32.xlu1 %v1163_v52  ;;  %v3875_v52 = vld [vmem:[#allocation7 + $0xc8] ss:$16 sps:$4 sm:$0xff]  }
 0x162   : > { %1664 = vmatpush1.bf16.msra.mxu1 %v3875_v52 }
 0x163   : > { %v5243_v31 = vsub.f32 %v4944_v37, %v1132_v48  ;;  %1665 = vmatprep.subr.bf16.mxu1 %v3878_v22 }
 0x165   : > { %v1164_v27 = vmul.f32 %v5243_v31, %v5243_v31 }
 0x167   : > { %1186 = vadd.xlane.f32.xlu0 %v1164_v27 }
 0x168   : > { %v1109_v35 = vpop.xlane.xlu1 %1108 }
 0x169   : > { %v1133_v40 = vmul.f32 0.0078125, %v1109_v35 }
 0x16b   : > { %v5248_v23 = vsub.f32 %v4989_v56, %v1133_v40  ;;  %v3880_v40 = vld [vmem:[#allocation7 + $0xe0] ss:$16 sps:$4 sm:$0xff]  }
 0x16c   : > { %1553 = vmatpush1.bf16.msra.mxu0 %v3880_v40 }
 0x16d   : > { %v1165_v43 = vmul.f32 %v5248_v23, %v5248_v23 }
 0x16f   : > { %1188 = vadd.xlane.f32.xlu1 %v1165_v43  ;;  %v3881_v43 = vld [vmem:[#allocation7 + $0xe8] ss:$16 sps:$4 sm:$0xff]  }
 0x170   : > { %1666 = vmatpush1.bf16.msra.mxu1 %v3881_v43 }
 0x171   : > { %v1111_v37 = vpop.xlane.xlu0 %1110 }
 0x172   : > { %v1134_v34 = vmul.f32 0.0078125, %v1111_v37 }
 0x174   : > { %v5253_v55 = vsub.f32 %v5035_v10, %v1134_v34 }
 0x176   : > { %v1166_v56 = vmul.f32 %v5253_v55, %v5253_v55 }
 0x177   : > { %v1113_v50 = vpop.xlane.xlu1 %1112 }
 0x178   : > { %v1135_v41 = vmul.f32 0.0078125, %v1113_v50  ;;  %1190 = vadd.xlane.f32.xlu0 %v1166_v56 }
 0x17a   : > { %v5258_v58 = vsub.f32 %v5065_v11, %v1135_v41 }
 0x17c   : > { %v1167_v33 = vmul.f32 %v5258_v58, %v5258_v58 }
 0x17d   : > { %v1115_v10 = vpop.xlane.xlu0 %1114 }
 0x17e   : > { %v1136_v59 = vmul.f32 0.0078125, %v1115_v10  ;;  %1192 = vadd.xlane.f32.xlu1 %v1167_v33  ;;  %v5298_v33 = vld [vmem:[%s6907_s3] ss:$0 sm:$0xff] }
 0x180   : > { %v5263_v32 = vsub.f32 %v5097_v60, %v1136_v59 }
 0x182   : > { %v1168_v36 = vmul.f32 %v5263_v32, %v5263_v32 }
 0x184   : > { %1194 = vadd.xlane.f32.xlu0 %v1168_v36 }
 0x185   : > { %v1117_v11 = vpop.xlane.xlu1 %1116 }
 0x186   : > { %v1137_v12 = vmul.f32 0.0078125, %v1117_v11 }
 0x188   : > { %v5268_v54 = vsub.f32 %v5131_v30, %v1137_v12 }
 0x18a   : > { %v1169_v46 = vmul.f32 %v5268_v54, %v5268_v54 }
 0x18b   : > { %v1119_v62 = vpop.xlane.xlu0 %1118 }
 0x18c   : > { %v1138_v8 = vmul.f32 0.0078125, %v1119_v62  ;;  %1196 = vadd.xlane.f32.xlu1 %v1169_v46 }
 0x18e   : > { %v5273_v60 = vsub.f32 %v5156_v25, %v1138_v8 }
 0x190   : > { %v1170_v30 = vmul.f32 %v5273_v60, %v5273_v60 }
 0x191   : > { %v1121_v45 = vpop.xlane.xlu1 %1120 }
 0x192   : > { %v1139_v61 = vmul.f32 0.0078125, %v1121_v45  ;;  %1198 = vadd.xlane.f32.xlu0 %v1170_v30 }
 0x194   : > { %v5278_v53 = vsub.f32 %v5190_v26, %v1139_v61 }
 0x196   : > { %v1171_v7 = vmul.f32 %v5278_v53, %v5278_v53 }
 0x197   : > { %v1123_v21 = vpop.xlane.xlu0 %1122 }
 0x198   : > { %v1140_v25 = vmul.f32 0.0078125, %v1123_v21  ;;  %1200 = vadd.xlane.f32.xlu1 %v1171_v7 }
 0x19a   : > { %v5283_v29 = vsub.f32 %v5204_v6, %v1140_v25 }
 0x19c   : > { %v1172_v26 = vmul.f32 %v5283_v29, %v5283_v29  ;;  %v1125_v57 = vpop.xlane.xlu1 %1124 }
 0x19d   : > { %v1141_v48 = vmul.f32 0.0078125, %v1125_v57 }
 0x19e   : > { %1202 = vadd.xlane.f32.xlu0 %v1172_v26 }
 0x19f   : > { %v5288_v27 = vsub.f32 %v5209_v17, %v1141_v48 }
 0x1a1   : > { %v1173_v35 = vmul.f32 %v5288_v27, %v5288_v27 }
 0x1a3   : > { %1204 = vadd.xlane.f32.xlu1 %v1173_v35 }
 0x1ce   : > { %v1175_v6 = vpop.xlane.xlu0 %1174 }
 0x1cf   : > { %v1206_v49 = vmul.f32 0.0078125, %v1175_v6 }
 0x1d1   : > { %v1222_v24 = vadd.f32 1e-06, %v1206_v49 }
 0x1d3   : > { %3914 = vrsqrt.f32 %v1222_v24 }
 0x1d6   : > { %v1179_v44 = vpop.xlane.xlu0 %1178 }
 0x1d7   : > { %v1208_v17 = vmul.f32 0.0078125, %v1179_v44 }
 0x1d9   : > { %v1224_v50 = vadd.f32 1e-06, %v1208_v17 }
 0x1da   : > { %v1177_v37 = vpop.xlane.xlu1 %1176 }
 0x1db   : > { %v1207_v34 = vmul.f32 0.0078125, %v1177_v37 }
 0x1dd   : > { %v1223_v56 = vadd.f32 1e-06, %v1207_v34  ;;  %v3915_v39 = vpop.eup %3914 }
 0x1de   : > { %v1254_v9 = vmul.f32 %v3915_v39, %v5213_v38 }
 0x1df   : > { %3916 = vrsqrt.f32 %v1223_v56 }
 0x1e0   : > { %3918 = vrsqrt.f32 %v1224_v50  ;;  %v1277_v12 = vmul.f32 %v5298_v33, %v1254_v9 }
 0x1e2   : > { %v1181_v41 = vpop.xlane.xlu1 %1180  ;;  %v1300_v62 = vadd.f32 %v5305_v47, %v1277_v12 }
 0x1e3   : > { %v1209_v0 = vmul.f32 0.0078125, %v1181_v41 }
 0x1e5   : > { %v1225_v51 = vadd.f32 1e-06, %v1209_v0 }
 0x1e7   : > { %3920 = vrsqrt.f32 %v1225_v51 }
 0x1e8   : > { %v1183_v10 = vpop.xlane.xlu0 %1182 }
 0x1e9   : > { %v3917_v59 = vpop.eup %3916  ;;  %v1210_v36 = vmul.f32 0.0078125, %v1183_v10 }
 0x1ea   : > { %v1255_v11 = vmul.f32 %v3917_v59, %v5223_v13  ;;  %v3919_v46 = vpop.eup %3918 }
 0x1eb   : > { %v1226_v63 = vadd.f32 1e-06, %v1210_v36  ;;  %v1256_v8 = vmul.f32 %v3919_v46, %v5218_v42 }
 0x1ec   : > { %v1278_v38 = vmul.f32 %v5298_v33, %v1255_v11 }
 0x1ed   : > { %3922 = vrsqrt.f32 %v1226_v63  ;;  %v1279_v18 = vmul.f32 %v5298_v33, %v1256_v8 }
 0x1ee   : > { %v1185_v19 = vpop.xlane.xlu1 %1184  ;;  %v1301_v15 = vadd.f32 %v5305_v47, %v1278_v38 }
 0x1ef   : > { %v1211_v13 = vmul.f32 0.0078125, %v1185_v19  ;;  %v1302_v42 = vadd.f32 %v5305_v47, %v1279_v18 }
 0x1f0   : > { %v1316_v30 = vpack.c.bf16 %v1301_v15, %v1300_v62 }
 0x1f1   : > { %v3921_v45 = vpop.eup %3920  ;;  %v1227_v61 = vadd.f32 1e-06, %v1211_v13 }
 0x1f2   : > { %1571 = vmatmul.mubr.bf16.vlgmr.msra.gmra.mrb[0].mxu0 %v1316_v30  ;;  %1684 = vmatmul.mubr.bf16.vlgmr.msra.gmra.mrb[0].mxu1 %v1316_v30  ;;  %v1257_v7 = vmul.f32 %v3921_v45, %v5228_v20 }
 0x1f3   : > { %3924 = vrsqrt.f32 %v1227_v61  ;;  %1580 = vmatprep.mubr.bf16.mxu0 %v4311_v1  ;;  %1693 = vmatprep.mubr.bf16.mxu1 %v4311_v1 }
 0x1f4   : > { %v1187_v52 = vpop.xlane.xlu0 %1186  ;;  %v1280_v16 = vmul.f32 %v5298_v33, %v1257_v7 }
 0x1f5   : > { %v1212_v21 = vmul.f32 0.0078125, %v1187_v52 }
 0x1f6   : > { %v1303_v22 = vadd.f32 %v5305_v47, %v1280_v16 }
 0x1f7   : > { %v3923_v25 = vpop.eup %3922  ;;  %v1228_v26 = vadd.f32 1e-06, %v1212_v21 }
 0x1f8   : > { %v1317_v57 = vpack.c.bf16 %v1303_v22, %v1302_v42  ;;  %v1258_v20 = vmul.f32 %v3923_v25, %v5233_v14 }
 0x1f9   : > { %3926 = vrsqrt.f32 %v1228_v26 }
 0x1fa   : > { %1581 = vmatmul.mubr.bf16.gmra.mrb[4].mxu0 %v1317_v57  ;;  %1694 = vmatmul.mubr.bf16.gmra.mrb[4].mxu1 %v1317_v57  ;;  %v1281_v6 = vmul.f32 %v5298_v33, %v1258_v20 }
 0x1fb   : > { %1590 = vmatprep.mubr.bf16.mxu0 %v4311_v1  ;;  %1703 = vmatprep.mubr.bf16.mxu1 %v4311_v1 }
 0x1fc   : > { %v1189_v48 = vpop.xlane.xlu1 %1188  ;;  %v1304_v44 = vadd.f32 %v5305_v47, %v1281_v6 }
 0x1fd   : > { %v3925_v35 = vpop.eup %3924  ;;  %v1213_v40 = vmul.f32 0.0078125, %v1189_v48 }
 0x1fe   : > { %v1259_v43 = vmul.f32 %v3925_v35, %v5238_v28 }
 0x1ff   : > { %v1229_v49 = vadd.f32 1e-06, %v1213_v40 }
 0x200   : > { %v1282_v24 = vmul.f32 %v5298_v33, %v1259_v43 }
 0x201   : > { %3928 = vrsqrt.f32 %v1229_v49 }
 0x202   : > { %v1305_v14 = vadd.f32 %v5305_v47, %v1282_v24 }
 0x203   : > { %v3927_v37 = vpop.eup %3926 }
 0x204   : > { %v1318_v17 = vpack.c.bf16 %v1305_v14, %v1304_v44  ;;  %v1260_v50 = vmul.f32 %v3927_v37, %v5243_v31 }
 0x205   : > { %v1191_v34 = vpop.xlane.xlu0 %1190 }
 0x206   : > { %v1214_v56 = vmul.f32 0.0078125, %v1191_v34  ;;  %1591 = vmatmul.mubr.bf16.gmra.mrb[8].mxu0 %v1318_v17  ;;  %1704 = vmatmul.mubr.bf16.gmra.mrb[8].mxu1 %v1318_v17  ;;  %v1283_v9 = vmul.f32 %v5298_v33, %v1260_v50 }
 0x207   : > { %1600 = vmatprep.mubr.bf16.mxu0 %v4311_v1  ;;  %1713 = vmatprep.mubr.bf16.mxu1 %v4311_v1 }
 0x208   : > { %v1230_v28 = vadd.f32 1e-06, %v1214_v56  ;;  %v1306_v36 = vadd.f32 %v5305_v47, %v1283_v9 }
 0x20a   : > { %3930 = vrsqrt.f32 %v1230_v28 }
 0x20b   : > { %v3929_v41 = vpop.eup %3928  ;;  %v1193_v39 = vpop.xlane.xlu1 %1192 }
 0x20c   : > { %v1215_v0 = vmul.f32 0.0078125, %v1193_v39  ;;  %v1261_v51 = vmul.f32 %v3929_v41, %v5248_v23 }
 0x20e   : > { %v1231_v10 = vadd.f32 1e-06, %v1215_v0  ;;  %v1284_v59 = vmul.f32 %v5298_v33, %v1261_v51 }
 0x210   : > { %3932 = vrsqrt.f32 %v1231_v10  ;;  %v1307_v11 = vadd.f32 %v5305_v47, %v1284_v59 }
 0x211   : > { %v1195_v12 = vpop.xlane.xlu0 %1194 }
 0x212   : > { %v1216_v46 = vmul.f32 0.0078125, %v1195_v12  ;;  %v1319_v63 = vpack.c.bf16 %v1307_v11, %v1306_v36 }
 0x214   : > { %v3931_v31 = vpop.eup %3930  ;;  %v1232_v38 = vadd.f32 1e-06, %v1216_v46  ;;  %1601 = vmatmul.mubr.bf16.gmra.mrb[12].mxu0 %v1319_v63  ;;  %1714 = vmatmul.mubr.bf16.gmra.mrb[12].mxu1 %v1319_v63 }
 0x215   : > { %1610 = vmatprep.mubr.bf16.mxu0 %v4311_v1  ;;  %1723 = vmatprep.mubr.bf16.mxu1 %v4311_v1  ;;  %v1262_v23 = vmul.f32 %v3931_v31, %v5253_v55 }
 0x216   : > { %3934 = vrsqrt.f32 %v1232_v38 }
 0x217   : > { %v1285_v13 = vmul.f32 %v5298_v33, %v1262_v23 }
 0x219   : > { %v1197_v19 = vpop.xlane.xlu1 %1196  ;;  %v1308_v7 = vadd.f32 %v5305_v47, %v1285_v13 }
 0x21a   : > { %v3933_v62 = vpop.eup %3932  ;;  %v1217_v15 = vmul.f32 0.0078125, %v1197_v19 }
 0x21b   : > { %v1263_v8 = vmul.f32 %v3933_v62, %v5258_v58 }
 0x21c   : > { %v1233_v30 = vadd.f32 1e-06, %v1217_v15 }
 0x21d   : > { %v1286_v45 = vmul.f32 %v5298_v33, %v1263_v8 }
 0x21e   : > { %3936 = vrsqrt.f32 %v1233_v30 }
 0x21f   : > { %v1199_v61 = vpop.xlane.xlu0 %1198  ;;  %v1309_v18 = vadd.f32 %v5305_v47, %v1286_v45 }
 0x220   : > { %v1218_v52 = vmul.f32 0.0078125, %v1199_v61  ;;  %v3935_v55 = vpop.eup %3934 }
 0x221   : > { %v1320_v16 = vpack.c.bf16 %v1309_v18, %v1308_v7  ;;  %v1264_v42 = vmul.f32 %v3935_v55, %v5263_v32 }
 0x222   : > { %v1234_v21 = vadd.f32 1e-06, %v1218_v52 }
 0x223   : > { %1611 = vmatmul.mubr.bf16.gmra.mrb[16].mxu0 %v1320_v16  ;;  %1724 = vmatmul.mubr.bf16.gmra.mrb[16].mxu1 %v1320_v16  ;;  %v1287_v20 = vmul.f32 %v5298_v33, %v1264_v42 }
 0x224   : > { %3938 = vrsqrt.f32 %v1234_v21  ;;  %1620 = vmatprep.mubr.bf16.mxu0 %v4311_v1  ;;  %1733 = vmatprep.mubr.bf16.mxu1 %v4311_v1 }
 0x225   : > { %v1201_v58 = vpop.xlane.xlu1 %1200  ;;  %v1310_v43 = vadd.f32 %v5305_v47, %v1287_v20 }
 0x226   : > { %v1219_v22 = vmul.f32 0.0078125, %v1201_v58 }
 0x228   : > { %v3937_v25 = vpop.eup %3936  ;;  %v1235_v26 = vadd.f32 1e-06, %v1219_v22 }
 0x229   : > { %v1265_v57 = vmul.f32 %v3937_v25, %v5268_v54 }
 0x22a   : > { %3940 = vrsqrt.f32 %v1235_v26 }
 0x22b   : > { %v1203_v48 = vpop.xlane.xlu0 %1202  ;;  %v1288_v35 = vmul.f32 %v5298_v33, %v1265_v57 }
 0x22c   : > { %v1220_v40 = vmul.f32 0.0078125, %v1203_v48 }
 0x22d   : > { %v1311_v6 = vadd.f32 %v5305_v47, %v1288_v35 }
 0x22e   : > { %v3939_v49 = vpop.eup %3938  ;;  %v1236_v24 = vadd.f32 1e-06, %v1220_v40 }
 0x22f   : > { %v1321_v44 = vpack.c.bf16 %v1311_v6, %v1310_v43  ;;  %v1266_v54 = vmul.f32 %v3939_v49, %v5273_v60 }
 0x230   : > { %3942 = vrsqrt.f32 %v1236_v24  ;;  %v1205_v32 = vpop.xlane.xlu1 %1204 }
 0x231   : > { %1621 = vmatmul.mubr.bf16.gmra.mrb[20].mxu0 %v1321_v44  ;;  %1734 = vmatmul.mubr.bf16.gmra.mrb[20].mxu1 %v1321_v44  ;;  %v1221_v14 = vmul.f32 0.0078125, %v1205_v32  ;;  %v1289_v56 = vmul.f32 %v5298_v33, %v1266_v54 }
 0x232   : > { %1630 = vmatprep.mubr.bf16.mxu0 %v4311_v1  ;;  %1743 = vmatprep.mubr.bf16.mxu1 %v4311_v1 }
 0x233   : > { %v1237_v37 = vadd.f32 1e-06, %v1221_v14  ;;  %v1312_v50 = vadd.f32 %v5305_v47, %v1289_v56 }
 0x234   : > { %v3941_v17 = vpop.eup %3940 }
 0x235   : > { %v1267_v34 = vmul.f32 %v3941_v17, %v5278_v53  ;;  %3944 = vrsqrt.f32 %v1237_v37 }
 0x237   : > { %v1290_v28 = vmul.f32 %v5298_v33, %v1267_v34 }
 0x239   : > { %v1313_v41 = vadd.f32 %v5305_v47, %v1290_v28 }
 0x23a   : > { %v3943_v39 = vpop.eup %3942 }
 0x23b   : > { %v1322_v60 = vpack.c.bf16 %v1313_v41, %v1312_v50  ;;  %v1268_v0 = vmul.f32 %v3943_v39, %v5283_v29  ;;  %v1356_v29 = vld [vmem:[%s6910_s6] sm:$0xf] }
 0x23c   : > { %v5376_v12 = vrot.slane %v1356_v29, %v4591_v3 }
 0x23d   : > { %1631 = vmatmul.mubr.bf16.gmra.mrb[24].mxu0 %v1322_v60  ;;  %1744 = vmatmul.mubr.bf16.gmra.mrb[24].mxu1 %v1322_v60  ;;  %v1291_v9 = vmul.f32 %v5298_v33, %v1268_v0 }
 0x23e   : > { %1640 = vmatprep.mubr.bf16.mxu0 %v4311_v1  ;;  %1753 = vmatprep.mubr.bf16.mxu1 %v4311_v1  ;;  %v5370_v1 = vrot.slane %v1356_v29, %v4586_v2 }
 0x23f   : > { %v3945_v53 = vpop.eup %3944  ;;  %v1314_v59 = vadd.f32 %v5305_v47, %v1291_v9 }
 0x240   : > { %v1269_v51 = vmul.f32 %v3945_v53, %v5288_v27  ;;  %v5373_v27 = vrot.slane %v1356_v29, %v4596_v4 }
 0x242   : > { %v1292_v10 = vmul.f32 %v5298_v33, %v1269_v51  ;;  %v5379_v33 = vrot.slane %v1356_v29, %v4599_v5 }
 0x244   : > { %v1315_v36 = vadd.f32 %v5305_v47, %v1292_v10 }
 0x246   : > { %v1323_v11 = vpack.c.bf16 %v1315_v36, %v1314_v59 }
 0x248   : > { %1641 = vmatmul.mubr.bf16.gmra.mrb[28].mxu0 %v1323_v11  ;;  %1754 = vmatmul.mubr.bf16.gmra.mrb[28].mxu1 %v1323_v11 }
 0x2c5   : > { %v1572_v47 = vpop.f32.mrb[0].mxu0  ;;  %v1685_v46 = vpop.f32.mrb[0].mxu1 }
 0x2c6   : > { %v5382_v63 = vadd.f32 %v1572_v47, %v5370_v1  ;;  %v5385_v31 = vadd.f32 %v1685_v46, %v5373_v27  ;;  %v1574_v38 = vpop.f32.mrb[1].mxu0  ;;  %v1687_v23 = vpop.f32.mrb[1].mxu1 }
 0x2c7   : > { %v5388_v19 = vadd.f32 %v1574_v38, %v5376_v12  ;;  %v5391_v62 = vadd.f32 %v1687_v23, %v5379_v33  ;;  %v1576_v15 = vpop.f32.mrb[2].mxu0  ;;  %v1689_v8 = vpop.f32.mrb[2].mxu1 }
 0x2c8   : > { %v1764_v13 = vmul.f32 %v5382_v63, %v5382_v63  ;;  %v1766_v30 = vmul.f32 %v5385_v31, %v5385_v31  ;;  %v5398_v45 = vadd.f32 %v1576_v15, %v5370_v1  ;;  %v5401_v61 = vadd.f32 %v1689_v8, %v5373_v27  ;;  %v1578_v7 = vpop.f32.mrb[3].mxu0  ;;  %v1691_v18 = vpop.f32.mrb[3].mxu1 }
 0x2c9   : > { %v1765_v52 = vmul.f32 %v5388_v19, %v5388_v19  ;;  %v1767_v16 = vmul.f32 %v5391_v62, %v5391_v62  ;;  %v5408_v55 = vadd.f32 %v1578_v7, %v5376_v12  ;;  %v5411_v21 = vadd.f32 %v1691_v18, %v5379_v33 }
 0x2ca   : > { %v1828_v58 = vmul.f32 %v1764_v13, %v5382_v63  ;;  %v1830_v42 = vmul.f32 %v1766_v30, %v5385_v31  ;;  %v1768_v22 = vmul.f32 %v5398_v45, %v5398_v45  ;;  %v1770_v25 = vmul.f32 %v5401_v61, %v5401_v61 }
 0x2cb   : > { %v1829_v26 = vmul.f32 %v1765_v52, %v5388_v19  ;;  %v1831_v57 = vmul.f32 %v1767_v16, %v5391_v62  ;;  %v1769_v20 = vmul.f32 %v5408_v55, %v5408_v55  ;;  %v1771_v48 = vmul.f32 %v5411_v21, %v5411_v21 }
 0x2cc   : > { %v1892_v35 = vmul.f32 0.044715, %v1828_v58  ;;  %v1894_v40 = vmul.f32 0.044715, %v1830_v42  ;;  %v1832_v43 = vmul.f32 %v1768_v22, %v5398_v45  ;;  %v1834_v6 = vmul.f32 %v1770_v25, %v5401_v61 }
 0x2cd   : > { %v1893_v49 = vmul.f32 0.044715, %v1829_v26  ;;  %v1895_v24 = vmul.f32 0.044715, %v1831_v57  ;;  %v1833_v44 = vmul.f32 %v1769_v20, %v5408_v55  ;;  %v1835_v32 = vmul.f32 %v1771_v48, %v5411_v21  ;;  %v1582_v54 = vpop.f32.mrb[4].mxu0  ;;  %v1695_v14 = vpop.f32.mrb[4].mxu1 }
 0x2ce   : > { %v1956_v17 = vadd.f32 %v1892_v35, %v5382_v63  ;;  %v1958_v37 = vadd.f32 %v1894_v40, %v5385_v31  ;;  %v1896_v34 = vmul.f32 0.044715, %v1832_v43  ;;  %v1898_v56 = vmul.f32 0.044715, %v1834_v6  ;;  %v1584_v28 = vpop.f32.mrb[5].mxu0  ;;  %v1697_v50 = vpop.f32.mrb[5].mxu1 }
 0x2cf   : > { %v1957_v41 = vadd.f32 %v1893_v49, %v5388_v19  ;;  %v1959_v39 = vadd.f32 %v1895_v24, %v5391_v62  ;;  %v1897_v60 = vmul.f32 0.044715, %v1833_v44  ;;  %v1899_v0 = vmul.f32 0.044715, %v1835_v32  ;;  %v1586_v53 = vpop.f32.mrb[6].mxu0  ;;  %v1699_v51 = vpop.f32.mrb[6].mxu1 }
 0x2d0   : > { %v2020_v9 = vmul.f32 0.7978846, %v1956_v17  ;;  %v2022_v10 = vmul.f32 0.7978846, %v1958_v37  ;;  %v1960_v59 = vadd.f32 %v1896_v34, %v5398_v45  ;;  %v1962_v36 = vadd.f32 %v1898_v56, %v5401_v61  ;;  %v1588_v11 = vpop.f32.mrb[7].mxu0  ;;  %v5435_v29 = vpop.f32.mrb[7].mxu1 }
 0x2d1   : > { %v2021_v47 = vmul.f32 0.7978846, %v1957_v41  ;;  %v2023_v46 = vmul.f32 0.7978846, %v1959_v39  ;;  %v1961_v38 = vadd.f32 %v1897_v60, %v5408_v55  ;;  %v1963_v23 = vadd.f32 %v1899_v0, %v5411_v21 }
 0x2d2   : > { %3946 = vtanh.f32 %v2020_v9  ;;  %v2024_v15 = vmul.f32 0.7978846, %v1960_v59  ;;  %v2026_v8 = vmul.f32 0.7978846, %v1962_v36  ;;  %v5440_v13 = vadd.f32 %v1582_v54, %v5370_v1 }
 0x2d3   : > { %3948 = vtanh.f32 %v2022_v10  ;;  %v2025_v30 = vmul.f32 0.7978846, %v1961_v38  ;;  %v2027_v7 = vmul.f32 0.7978846, %v1963_v23  ;;  %v5443_v18 = vadd.f32 %v1695_v14, %v5373_v27 }
 0x2d4   : > { %3950 = vtanh.f32 %v2021_v47  ;;  %v1772_v52 = vmul.f32 %v5440_v13, %v5440_v13  ;;  %v5448_v16 = vadd.f32 %v1584_v28, %v5376_v12  ;;  %v5451_v58 = vadd.f32 %v1697_v50, %v5379_v33 }
 0x2d5   : > { %3952 = vtanh.f32 %v2023_v46  ;;  %v1774_v42 = vmul.f32 %v5443_v18, %v5443_v18  ;;  %v5456_v22 = vadd.f32 %v1586_v53, %v5370_v1  ;;  %v5459_v25 = vadd.f32 %v1699_v51, %v5373_v27 }
 0x2d6   : > { %3954 = vtanh.f32 %v2024_v15  ;;  %v1836_v26 = vmul.f32 %v1772_v52, %v5440_v13  ;;  %v1773_v57 = vmul.f32 %v5448_v16, %v5448_v16  ;;  %v1775_v20 = vmul.f32 %v5451_v58, %v5451_v58 }
 0x2d7   : > { %3956 = vtanh.f32 %v2026_v8  ;;  %v1838_v48 = vmul.f32 %v1774_v42, %v5443_v18  ;;  %v1776_v35 = vmul.f32 %v5456_v22, %v5456_v22  ;;  %v1778_v40 = vmul.f32 %v5459_v25, %v5459_v25 }
 0x2d8   : > { %3958 = vtanh.f32 %v2025_v30  ;;  %v1900_v43 = vmul.f32 0.044715, %v1836_v26  ;;  %v1837_v6 = vmul.f32 %v1773_v57, %v5448_v16  ;;  %v1839_v49 = vmul.f32 %v1775_v20, %v5451_v58 }
 0x2d9   : > { %3960 = vtanh.f32 %v2027_v7  ;;  %v1902_v24 = vmul.f32 0.044715, %v1838_v48  ;;  %v1840_v44 = vmul.f32 %v1776_v35, %v5456_v22  ;;  %v1842_v32 = vmul.f32 %v1778_v40, %v5459_v25  ;;  %v5475_v54 = vpop.f32.mrb[8].mxu0  ;;  %v5477_v14 = vpop.f32.mrb[8].mxu1 }
 0x2da   : > { %v1964_v17 = vadd.f32 %v1900_v43, %v5440_v13  ;;  %v1901_v37 = vmul.f32 0.044715, %v1837_v6  ;;  %v1903_v34 = vmul.f32 0.044715, %v1839_v49  ;;  %v5480_v56 = vpop.f32.mrb[9].mxu0  ;;  %v5482_v28 = vpop.f32.mrb[9].mxu1  ;;  %v5492_v59 = vadd.f32 %v1588_v11, %v5376_v12 }
 0x2db   : > { %v1966_v50 = vadd.f32 %v1902_v24, %v5443_v18  ;;  %v1904_v41 = vmul.f32 0.044715, %v1840_v44  ;;  %v1906_v39 = vmul.f32 0.044715, %v1842_v32  ;;  %v5485_v60 = vpop.f32.mrb[10].mxu0  ;;  %v5487_v0 = vpop.f32.mrb[10].mxu1 }
 0x2dc   : > { %v3947_v53 = vpop.eup %3946  ;;  %v2028_v51 = vmul.f32 0.7978846, %v1964_v17  ;;  %v1965_v9 = vadd.f32 %v1901_v37, %v5448_v16  ;;  %v1967_v10 = vadd.f32 %v1903_v34, %v5451_v58  ;;  %v5494_v36 = vpop.f32.mrb[11].mxu0  ;;  %v1777_v17 = vmul.f32 %v5492_v59, %v5492_v59 }
 0x2dd   : > { %v5496_v47 = vpop.f32.mrb[11].mxu1  ;;  %v3949_v46 = vpop.eup %3948  ;;  %v2148_v38 = vadd.f32 1.0, %v3947_v53  ;;  %v2030_v23 = vmul.f32 0.7978846, %v1966_v50  ;;  %v1968_v15 = vadd.f32 %v1904_v41, %v5456_v22  ;;  %v1970_v8 = vadd.f32 %v1906_v39, %v5459_v25 }
 0x2de   : > { %v3951_v30 = vpop.eup %3950  ;;  %v2150_v7 = vadd.f32 1.0, %v3949_v46  ;;  %3962 = vtanh.f32 %v2028_v51  ;;  %v2029_v52 = vmul.f32 0.7978846, %v1965_v9  ;;  %v2031_v42 = vmul.f32 0.7978846, %v1967_v10 }
 0x2df   : > { %v3953_v26 = vpop.eup %3952  ;;  %v2212_v57 = vmul.f32 0.5, %v2148_v38  ;;  %v2149_v11 = vadd.f32 1.0, %v3951_v30  ;;  %3964 = vtanh.f32 %v2030_v23  ;;  %v2032_v20 = vmul.f32 0.7978846, %v1968_v15 }
 0x2e0   : > { %v3955_v48 = vpop.eup %3954  ;;  %v2214_v35 = vmul.f32 0.5, %v2150_v7  ;;  %v2151_v40 = vadd.f32 1.0, %v3953_v26  ;;  %3966 = vtanh.f32 %v2029_v52  ;;  %v2034_v24 = vmul.f32 0.7978846, %v1970_v8 }
 0x2e1   : > { %v3957_v43 = vpop.eup %3956  ;;  %v2213_v6 = vmul.f32 0.5, %v2149_v11  ;;  %v2152_v49 = vadd.f32 1.0, %v3955_v48  ;;  %3968 = vtanh.f32 %v2031_v42  ;;  %v5504_v37 = vadd.f32 %v5435_v29, %v5379_v33 }
 0x2e2   : > { %v3959_v44 = vpop.eup %3958  ;;  %v2154_v32 = vadd.f32 1.0, %v3957_v43  ;;  %3970 = vtanh.f32 %v2032_v20  ;;  %v5507_v50 = vmul.f32 %v2212_v57, %v5382_v63  ;;  %v5510_v41 = vmul.f32 %v2214_v35, %v5385_v31 }
 0x2e3   : > { %v3961_v34 = vpop.eup %3960  ;;  %v2216_v39 = vmul.f32 0.5, %v2152_v49  ;;  %v2153_v53 = vadd.f32 1.0, %v3959_v44  ;;  %v5513_v51 = vmul.f32 %v2213_v6, %v5388_v19  ;;  %v2215_v9 = vmul.f32 0.5, %v2151_v40 }
 0x2e4   : > { %7045 = vst [vmem:[#allocation21_spill] sm:$0xff] %v5507_v50  ;;  %7046 = vst [vmem:[#allocation22_spill] sm:$0xff] %v5510_v41  ;;  %v2218_v10 = vmul.f32 0.5, %v2154_v32  ;;  %v2155_v46 = vadd.f32 1.0, %v3961_v34  ;;  %3972 = vtanh.f32 %v2034_v24  ;;  %v1841_v31 = vmul.f32 %v1777_v17, %v5492_v59 }
 0x2e5   : > { %7047 = vst [vmem:[#allocation23_spill] sm:$0xff] %v5513_v51  ;;  %v5516_v38 = vmul.f32 %v2216_v39, %v5398_v45  ;;  %v2217_v29 = vmul.f32 0.5, %v2153_v53  ;;  %v2340_v15 = vmul.f32 %v5507_v50, %v5507_v50  ;;  %v2342_v19 = vmul.f32 %v5510_v41, %v5510_v41 }
 0x2e6   : > { %v5519_v23 = vmul.f32 %v2218_v10, %v5401_v61  ;;  %v2219_v63 = vmul.f32 0.5, %v2155_v46  ;;  %v1779_v45 = vmul.f32 %v5504_v37, %v5504_v37  ;;  %v2341_v52 = vmul.f32 %v5513_v51, %v5513_v51 }
 0x2e7   : > { %7048 = vst [vmem:[#allocation24_spill] sm:$0xff] %v5516_v38  ;;  %v5527_v8 = vmul.f32 %v2217_v29, %v5408_v55  ;;  %v5531_v30 = vpop.f32.mrb[12].mxu0  ;;  %v5533_v7 = vpop.f32.mrb[12].mxu1  ;;  %v5538_v42 = vmul.f32 %v2215_v9, %v5391_v62  ;;  %v1905_v57 = vmul.f32 0.044715, %v1841_v31  ;;  %v2344_v48 = vmul.f32 %v5516_v38, %v5516_v38 }
 0x2e8   : > { %7049 = vst [vmem:[#allocation25_spill] sm:$0xff] %v5519_v23  ;;  %v3963_v61 = vpop.eup %3962  ;;  %v5541_v26 = vmul.f32 %v2219_v63, %v5411_v21  ;;  %v5543_v55 = vpop.f32.mrb[13].mxu0  ;;  %v1843_v40 = vmul.f32 %v1779_v45, %v5504_v37  ;;  %v5552_v43 = vadd.f32 %v5475_v54, %v5370_v1  ;;  %v2346_v49 = vmul.f32 %v5519_v23, %v5519_v23 }
 0x2e9   : > { %7050 = vst [vmem:[#allocation26_spill] sm:$0xff] %v5527_v8  ;;  %7051 = vst [vmem:[#allocation27_spill] sm:$0xff] %v5538_v42  ;;  %v5545_v11 = vpop.f32.mrb[13].mxu1  ;;  %v3965_v20 = vpop.eup %3964  ;;  %v2156_v35 = vadd.f32 1.0, %v3963_v61  ;;  %v1969_v44 = vadd.f32 %v1905_v57, %v5492_v59  ;;  %v5563_v32 = vadd.f32 %v5477_v14, %v5373_v27  ;;  %v2345_v39 = vmul.f32 %v5527_v8, %v5527_v8 }
 0x2ea   : > { %7052 = vst [vmem:[#allocation28_spill] sm:$0xff] %v5541_v26  ;;  %v5554_v62 = vpop.f32.mrb[14].mxu0  ;;  %v5556_v21 = vpop.f32.mrb[14].mxu1  ;;  %v2158_v24 = vadd.f32 1.0, %v3965_v20  ;;  %v1907_v10 = vmul.f32 0.044715, %v1843_v40  ;;  %v2347_v29 = vmul.f32 %v5541_v26, %v5541_v26  ;;  %v1780_v40 = vmul.f32 %v5552_v43, %v5552_v43 }
 0x2eb   : > { %v3967_v6 = vpop.eup %3966  ;;  %v5565_v17 = vpop.f32.mrb[15].mxu0  ;;  %v2220_v53 = vmul.f32 0.5, %v2156_v35  ;;  %v2033_v45 = vmul.f32 0.7978846, %v1969_v44 }
 0x2ec   : > { %v5567_v34 = vpop.f32.mrb[15].mxu1  ;;  %v3969_v54 = vpop.eup %3968  ;;  %v2157_v9 = vadd.f32 1.0, %v3967_v6  ;;  %v2222_v63 = vmul.f32 0.5, %v2158_v24  ;;  %v1971_v20 = vadd.f32 %v1907_v10, %v5504_v37  ;;  %v1844_v10 = vmul.f32 %v1780_v40, %v5552_v43 }
 0x2ed   : > { %v3971_v46 = vpop.eup %3970  ;;  %v2159_v31 = vadd.f32 1.0, %v3969_v54  ;;  %v5574_v14 = vmul.f32 %v2220_v53, %v5440_v13  ;;  %3974 = vtanh.f32 %v2033_v45  ;;  %v2343_v53 = vmul.f32 %v5538_v42, %v5538_v42 }
 0x2ee   : > { %v2221_v61 = vmul.f32 0.5, %v2157_v9  ;;  %v2160_v57 = vadd.f32 1.0, %v3971_v46  ;;  %v5578_v23 = vmul.f32 %v2222_v63, %v5443_v18  ;;  %v3973_v6 = vpop.eup %3972  ;;  %v2035_v54 = vmul.f32 0.7978846, %v1971_v20 }
 0x2ef   : > { %7053 = vst [vmem:[#allocation29_spill] sm:$0xff] %v5574_v14  ;;  %v2223_v35 = vmul.f32 0.5, %v2159_v31  ;;  %v2348_v24 = vmul.f32 %v5574_v14, %v5574_v14  ;;  %v2404_v46 = vadd.f32 %v2344_v48, %v2340_v15  ;;  %v2430_v63 = vadd.f32 %v2346_v49, %v2342_v19 }
 0x2f0   : > { %7054 = vst [vmem:[#allocation30_spill] sm:$0xff] %v5578_v23  ;;  %v5585_v44 = vmul.f32 %v2221_v61, %v5448_v16  ;;  %v2224_v13 = vmul.f32 0.5, %v2160_v57  ;;  %v2350_v18 = vmul.f32 %v5578_v23, %v5578_v23  ;;  %v2162_v31 = vadd.f32 1.0, %v3973_v6 }
 0x2f1   : > { %v5592_v9 = vmul.f32 %v2223_v35, %v5451_v58  ;;  %3976 = vtanh.f32 %v2035_v54  ;;  %v2417_v45 = vadd.f32 %v2345_v39, %v2341_v52  ;;  %v2443_v16 = vadd.f32 %v2347_v29, %v2343_v53 }
 0x2f2   : > { %7055 = vst [vmem:[#allocation31_spill] sm:$0xff] %v5585_v44  ;;  %v2349_v61 = vmul.f32 %v5585_v44, %v5585_v44  ;;  %v1908_v57 = vmul.f32 0.044715, %v1844_v10  ;;  %v2405_v20 = vadd.f32 %v2404_v46, %v2348_v24  ;;  %v5598_v14 = vmul.f32 %v2224_v13, %v5456_v22 }
 0x2f3   : > { %7056 = vst [vmem:[#allocation32_spill] sm:$0xff] %v5592_v9  ;;  %v1782_v58 = vmul.f32 %v5563_v32, %v5563_v32  ;;  %v5604_v35 = vadd.f32 %v5480_v56, %v5376_v12  ;;  %v5606_v15 = vadd.f32 %v2430_v63, %v2350_v18  ;;  %v2351_v19 = vmul.f32 %v5592_v9, %v5592_v9 }
 0x2f4   : > { %7057 = vst [vmem:[#allocation33_spill] sm:$0xff] %v5598_v14  ;;  %v1972_v52 = vadd.f32 %v1908_v57, %v5552_v43  ;;  %v5613_v48 = vadd.f32 %v5482_v28, %v5379_v33  ;;  %v2226_v22 = vmul.f32 0.5, %v2162_v31  ;;  %v5620_v56 = vadd.f32 %v5485_v60, %v5370_v1 }
 0x2f5   : > { %v1846_v49 = vmul.f32 %v1782_v58, %v5563_v32  ;;  %v1781_v39 = vmul.f32 %v5604_v35, %v5604_v35  ;;  %v5622_v29 = vadd.f32 %v2417_v45, %v2349_v61  ;;  %v5628_v28 = vadd.f32 %v5487_v0, %v5373_v27 }
 0x2f6   : > { %v2036_v40 = vmul.f32 0.7978846, %v1972_v52  ;;  %v1783_v6 = vmul.f32 %v5613_v48, %v5613_v48  ;;  %v5630_v24 = vpop.f32.mrb[16].mxu0  ;;  %v5632_v13 = vpop.f32.mrb[16].mxu1  ;;  %v1784_v60 = vmul.f32 %v5620_v56, %v5620_v56  ;;  %v5639_v18 = vadd.f32 %v5494_v36, %v5376_v12 }
 0x2f7   : > { %v1910_v54 = vmul.f32 0.044715, %v1846_v49  ;;  %v1845_v53 = vmul.f32 %v1781_v39, %v5604_v35  ;;  %v5641_v10 = vpop.f32.mrb[17].mxu0  ;;  %v5643_v46 = vpop.f32.mrb[17].mxu1  ;;  %v2352_v63 = vmul.f32 %v5598_v14, %v5598_v14  ;;  %v1786_v45 = vmul.f32 %v5628_v28, %v5628_v28 }
 0x2f8   : > { %v3975_v0 = vpop.eup %3974  ;;  %3978 = vtanh.f32 %v2036_v40  ;;  %v1847_v31 = vmul.f32 %v1783_v6, %v5613_v48  ;;  %v5650_v61 = vpop.f32.mrb[18].mxu0  ;;  %v1848_v49 = vmul.f32 %v1784_v60, %v5620_v56  ;;  %v5660_v40 = vadd.f32 %v2443_v16, %v2351_v19 }
 0x2f9   : > { %v5652_v57 = vpop.f32.mrb[18].mxu1  ;;  %v2161_v36 = vadd.f32 1.0, %v3975_v0  ;;  %v1974_v58 = vadd.f32 %v1910_v54, %v5563_v32  ;;  %v1909_v52 = vmul.f32 0.044715, %v1845_v53  ;;  %v5656_v39 = vpop.f32.mrb[19].mxu0  ;;  %v1850_v14 = vmul.f32 %v1786_v45, %v5628_v28 }
 0x2fa   : > { %v5658_v23 = vpop.f32.mrb[19].mxu1  ;;  %v1911_v6 = vmul.f32 0.044715, %v1847_v31  ;;  %v1785_v9 = vmul.f32 %v5639_v18, %v5639_v18  ;;  %v1912_v54 = vmul.f32 0.044715, %v1848_v49  ;;  %v5668_v53 = vadd.f32 %v5496_v47, %v5379_v33 }
 0x2fb   : > { %v3977_v44 = vpop.eup %3976  ;;  %v2038_v41 = vmul.f32 0.7978846, %v1974_v58  ;;  %v1973_v0 = vadd.f32 %v1909_v52, %v5604_v35  ;;  %v1914_v16 = vmul.f32 0.044715, %v1850_v14  ;;  %v2225_v31 = vmul.f32 0.5, %v2161_v36 }
 0x2fc   : > { %v2163_v60 = vadd.f32 1.0, %v3977_v44  ;;  %v1975_v38 = vadd.f32 %v1911_v6, %v5613_v48  ;;  %v1849_v19 = vmul.f32 %v1785_v9, %v5639_v18  ;;  %v1976_v50 = vadd.f32 %v1912_v54, %v5620_v56 }
 0x2fd   : > { %3980 = vtanh.f32 %v2038_v41  ;;  %v2037_v45 = vmul.f32 0.7978846, %v1973_v0  ;;  %v1978_v52 = vadd.f32 %v1914_v16, %v5628_v28  ;;  %v5675_v42 = vmul.f32 %v2226_v22, %v5459_v25 }
 0x2fe   : > { %v2227_v26 = vmul.f32 0.5, %v2163_v60  ;;  %v2039_v58 = vmul.f32 0.7978846, %v1975_v38  ;;  %v1913_v49 = vmul.f32 0.044715, %v1849_v19  ;;  %v1787_v14 = vmul.f32 %v5668_v53, %v5668_v53 }
 0x2ff   : > { %7058 = vst [vmem:[#allocation34_spill] sm:$0xff] %v5675_v42  ;;  %3982 = vtanh.f32 %v2037_v45  ;;  %v2040_v47 = vmul.f32 0.7978846, %v1976_v50  ;;  %v5679_v44 = vadd.f32 %v2405_v20, %v2352_v63  ;;  %v2042_v41 = vmul.f32 0.7978846, %v1978_v52 }
 0x300   : > { %3984 = vtanh.f32 %v2039_v58  ;;  %v1977_v9 = vadd.f32 %v1913_v49, %v5639_v18  ;;  %v5683_v36 = vmul.f32 %v2225_v31, %v5492_v59  ;;  %v1851_v38 = vmul.f32 %v1787_v14, %v5668_v53 }
 0x301   : > { %3986 = vtanh.f32 %v2040_v47  ;;  %v5688_v25 = vadd.f32 %v5531_v30, %v5370_v1  ;;  %v5691_v22 = vmul.f32 %v2227_v26, %v5504_v37  ;;  %v5695_v63 = vadd.f32 %v5533_v7, %v5373_v27 }
 0x302   : > { %7059 = vst [vmem:[#allocation35_spill] sm:$0xff] %v5683_v36  ;;  %v3979_v50 = vpop.eup %3978  ;;  %3988 = vtanh.f32 %v2042_v41  ;;  %v2041_v20 = vmul.f32 0.7978846, %v1977_v9  ;;  %v1915_v59 = vmul.f32 0.044715, %v1851_v38  ;;  %v5701_v54 = vadd.f32 %v5543_v55, %v5376_v12 }
 0x303   : > { %7060 = vst [vmem:[#allocation36_spill] sm:$0xff] %v5691_v22  ;;  %v2164_v6 = vadd.f32 1.0, %v3979_v50  ;;  %v1788_v0 = vmul.f32 %v5688_v25, %v5688_v25  ;;  %v2354_v30 = vmul.f32 %v5675_v42, %v5675_v42  ;;  %v1790_v37 = vmul.f32 %v5695_v63, %v5695_v63 }
 0x304   : > { %3990 = vtanh.f32 %v2041_v20  ;;  %v5709_v7 = vadd.f32 %v5545_v11, %v5379_v33  ;;  %v5711_v26 = vpop.f32.mrb[20].mxu0  ;;  %v5713_v60 = vpop.f32.mrb[20].mxu1  ;;  %v1979_v19 = vadd.f32 %v1915_v59, %v5668_v53  ;;  %v1789_v31 = vmul.f32 %v5701_v54, %v5701_v54 }
 0x305   : > { %v2228_v16 = vmul.f32 0.5, %v2164_v6  ;;  %v1852_v55 = vmul.f32 %v1788_v0, %v5688_v25  ;;  %v5719_v45 = vpop.f32.mrb[21].mxu0  ;;  %v5721_v58 = vpop.f32.mrb[21].mxu1  ;;  %v2353_v11 = vmul.f32 %v5683_v36, %v5683_v36  ;;  %v1854_v52 = vmul.f32 %v1790_v37, %v5695_v63 }
 0x306   : > { %v1791_v49 = vmul.f32 %v5709_v7, %v5709_v7  ;;  %v5730_v47 = vadd.f32 %v5554_v62, %v5370_v1  ;;  %v5732_v14 = vpop.f32.mrb[22].mxu0  ;;  %v5734_v41 = vpop.f32.mrb[22].mxu1  ;;  %v2355_v38 = vmul.f32 %v5691_v22, %v5691_v22  ;;  %v2043_v50 = vmul.f32 0.7978846, %v1979_v19 }
 0x307   : > { %v3981_v9 = vpop.eup %3980  ;;  %v1916_v20 = vmul.f32 0.044715, %v1852_v55  ;;  %v1853_v6 = vmul.f32 %v1789_v31, %v5701_v54  ;;  %v5739_v59 = vpop.f32.mrb[23].mxu0  ;;  %v1918_v42 = vmul.f32 0.044715, %v1854_v52  ;;  %v5746_v36 = vadd.f32 %v5556_v21, %v5373_v27 }
 0x308   : > { %7061 = vst [vmem:[#allocation37_spill] sm:$0xff] %v5739_v59  ;;  %v5741_v0 = vpop.f32.mrb[23].mxu1  ;;  %v2166_v37 = vadd.f32 1.0, %v3981_v9  ;;  %v1855_v62 = vmul.f32 %v1791_v49, %v5709_v7  ;;  %v5749_v51 = vmul.f32 %v2228_v16, %v5552_v43  ;;  %3992 = vtanh.f32 %v2043_v50 }
 0x309   : > { %7062 = vst [vmem:[#allocation38_spill] sm:$0xff] %v5741_v0  ;;  %v3983_v8 = vpop.eup %3982  ;;  %v1980_v19 = vadd.f32 %v1916_v20, %v5688_v25  ;;  %v1917_v55 = vmul.f32 0.044715, %v1853_v6  ;;  %v1982_v9 = vadd.f32 %v1918_v42, %v5695_v63  ;;  %v1792_v52 = vmul.f32 %v5730_v47, %v5730_v47 }
 0x30a   : > { %7063 = vst [vmem:[#allocation39_spill] sm:$0xff] %v5749_v51  ;;  %v3985_v31 = vpop.eup %3984  ;;  %v2230_v22 = vmul.f32 0.5, %v2166_v37  ;;  %v2165_v4 = vadd.f32 1.0, %v3983_v8  ;;  %v1919_v3 = vmul.f32 0.044715, %v1855_v62  ;;  %v2356_v59 = vmul.f32 %v5749_v51, %v5749_v51 }
 0x30b   : > { %v3987_v49 = vpop.eup %3986  ;;  %v2167_v2 = vadd.f32 1.0, %v3985_v31  ;;  %v2044_v21 = vmul.f32 0.7978846, %v1980_v19  ;;  %v1981_v5 = vadd.f32 %v1917_v55, %v5701_v54  ;;  %v2046_v6 = vmul.f32 0.7978846, %v1982_v9 }
 0x30c   : > { %v3989_v43 = vpop.eup %3988  ;;  %v5757_v16 = vmul.f32 %v2230_v22, %v5563_v32  ;;  %v2229_v50 = vmul.f32 0.5, %v2165_v4  ;;  %v2168_v20 = vadd.f32 1.0, %v3987_v49  ;;  %v2419_v22 = vadd.f32 %v5622_v29, %v2353_v11 }
 0x30d   : > { %v2231_v37 = vmul.f32 0.5, %v2167_v2  ;;  %v2170_v8 = vadd.f32 1.0, %v3989_v43  ;;  %3994 = vtanh.f32 %v2044_v21  ;;  %v2045_v42 = vmul.f32 0.7978846, %v1981_v5 }
 0x30e   : > { %7064 = vst [vmem:[#allocation40_spill] sm:$0xff] %v5757_v16  ;;  %v3991_v0 = vpop.eup %3990  ;;  %v5762_v19 = vmul.f32 %v2229_v50, %v5604_v35  ;;  %v2232_v55 = vmul.f32 0.5, %v2168_v20  ;;  %3996 = vtanh.f32 %v2046_v6  ;;  %v2432_v2 = vadd.f32 %v5606_v15, %v2354_v30 }
 0x30f   : > { %v5765_v62 = vmul.f32 %v2231_v37, %v5613_v48  ;;  %v2234_v32 = vmul.f32 0.5, %v2170_v8  ;;  %v2169_v4 = vadd.f32 1.0, %v3991_v0  ;;  %3998 = vtanh.f32 %v2045_v42 }
 0x310   : > { %7065 = vst [vmem:[#allocation41_spill] sm:$0xff] %v5762_v19  ;;  %v2358_v5 = vmul.f32 %v5757_v16, %v5757_v16  ;;  %v1983_v31 = vadd.f32 %v1919_v3, %v5709_v7  ;;  %v5772_v9 = vpop.f32.mrb[24].mxu0  ;;  %v5774_v35 = vpop.f32.mrb[24].mxu1  ;;  %v2357_v48 = vmul.f32 %v5762_v19, %v5762_v19  ;;  %v5779_v49 = vmul.f32 %v2232_v55, %v5620_v56 }
 0x311   : > { %7066 = vst [vmem:[#allocation42_spill] sm:$0xff] %v5765_v62  ;;  %v2233_v0 = vmul.f32 0.5, %v2169_v4  ;;  %v1856_v15 = vmul.f32 %v1792_v52, %v5730_v47  ;;  %v5782_v30 = vpop.f32.mrb[25].mxu0  ;;  %v5784_v29 = vpop.f32.mrb[25].mxu1  ;;  %v2445_v11 = vadd.f32 %v5660_v40, %v2355_v38  ;;  %v2359_v3 = vmul.f32 %v5765_v62, %v5765_v62 }
 0x312   : > { %7067 = vst [vmem:[#allocation43_spill] sm:$0xff] %v5779_v49  ;;  %v2047_v21 = vmul.f32 0.7978846, %v1983_v31  ;;  %v1794_v43 = vmul.f32 %v5746_v36, %v5746_v36  ;;  %v5791_v50 = vpop.f32.mrb[26].mxu0  ;;  %v5793_v56 = vpop.f32.mrb[26].mxu1  ;;  %v2407_v52 = vadd.f32 %v5679_v44, %v2356_v59  ;;  %v5797_v6 = vmul.f32 %v2234_v32, %v5628_v28 }
 0x313   : > { %v3993_v20 = vpop.eup %3992  ;;  %v5800_v37 = vmul.f32 %v2233_v0, %v5639_v18  ;;  %v1920_v40 = vmul.f32 0.044715, %v1856_v15  ;;  %v5802_v38 = vpop.f32.mrb[27].mxu0  ;;  %v2433_v42 = vadd.f32 %v2432_v2, %v2358_v5  ;;  %v2420_v31 = vadd.f32 %v2419_v22, %v2357_v48 }
 0x314   : > { %7068 = vst [vmem:[#allocation44_spill] sm:$0xff] %v5797_v6  ;;  %v5804_v8 = vpop.f32.mrb[27].mxu1  ;;  %v2171_v55 = vadd.f32 1.0, %v3993_v20  ;;  %4000 = vtanh.f32 %v2047_v21  ;;  %v1858_v4 = vmul.f32 %v1794_v43, %v5746_v36  ;;  %v2360_v44 = vmul.f32 %v5779_v49, %v5779_v49 }
 0x315   : > { %7069 = vst [vmem:[#allocation45_spill] sm:$0xff] %v5800_v37  ;;  %v1984_v28 = vadd.f32 %v1920_v40, %v5730_v47  ;;  %v5812_v18 = vadd.f32 %v5565_v17, %v5376_v12  ;;  %v5814_v59 = vadd.f32 %v2445_v11, %v2359_v3  ;;  %v5818_v2 = vadd.f32 %v5567_v34, %v5379_v33 }
 0x316   : > { %v1922_v32 = vmul.f32 0.044715, %v1858_v4  ;;  %v5822_v5 = vadd.f32 %v5630_v24, %v5370_v1  ;;  %v2362_v48 = vmul.f32 %v5797_v6, %v5797_v6  ;;  %v2361_v0 = vmul.f32 %v5800_v37, %v5800_v37 }
 0x317   : > { %v3995_v22 = vpop.eup %3994  ;;  %v2048_v17 = vmul.f32 0.7978846, %v1984_v28  ;;  %v1793_v15 = vmul.f32 %v5812_v18, %v5812_v18  ;;  %v2235_v3 = vmul.f32 0.5, %v2171_v55  ;;  %v1795_v24 = vmul.f32 %v5818_v2, %v5818_v2 }
 0x318   : > { %v3997_v11 = vpop.eup %3996  ;;  %v2172_v21 = vadd.f32 1.0, %v3995_v22  ;;  %v1986_v34 = vadd.f32 %v1922_v32, %v5746_v36  ;;  %v1796_v4 = vmul.f32 %v5822_v5, %v5822_v5  ;;  %v5838_v55 = vadd.f32 %v5632_v13, %v5373_v27 }
 0x319   : > { %v3999_v43 = vpop.eup %3998  ;;  %v2174_v20 = vadd.f32 1.0, %v3997_v11  ;;  %4002 = vtanh.f32 %v2048_v17  ;;  %v1857_v40 = vmul.f32 %v1793_v15, %v5812_v18  ;;  %v1859_v49 = vmul.f32 %v1795_v24, %v5818_v2 }
 0x31a   : > { %v2236_v28 = vmul.f32 0.5, %v2172_v21  ;;  %v2173_v6 = vadd.f32 1.0, %v3999_v43  ;;  %v2050_v16 = vmul.f32 0.7978846, %v1986_v34  ;;  %v1860_v51 = vmul.f32 %v1796_v4, %v5822_v5 }
 0x31b   : > { %v2238_v22 = vmul.f32 0.5, %v2174_v20  ;;  %v1921_v32 = vmul.f32 0.044715, %v1857_v40  ;;  %v5843_v17 = vmul.f32 %v2235_v3, %v5668_v53  ;;  %v5848_v21 = vpop.f32.mrb[28].mxu0  ;;  %v5850_v34 = vpop.f32.mrb[28].mxu1 }
 0x31c   : > { %v5846_v15 = vmul.f32 %v2236_v28, %v5688_v25  ;;  %v2237_v11 = vmul.f32 0.5, %v2173_v6  ;;  %4004 = vtanh.f32 %v2050_v16  ;;  %v1923_v24 = vmul.f32 0.044715, %v1859_v49  ;;  %v5856_v40 = vpop.f32.mrb[29].mxu0  ;;  %v5858_v53 = vpop.f32.mrb[29].mxu1 }
 0x31d   : > { %7070 = vst [vmem:[#allocation46_spill] sm:$0xff] %v5843_v17  ;;  %v5853_v13 = vmul.f32 %v2238_v22, %v5695_v63  ;;  %v1985_v43 = vadd.f32 %v1921_v32, %v5812_v18  ;;  %v1924_v20 = vmul.f32 0.044715, %v1860_v51  ;;  %v2408_v25 = vadd.f32 %v2407_v52, %v2360_v44  ;;  %v5868_v4 = vpop.f32.mrb[30].mxu0  ;;  %v5870_v49 = vpop.f32.mrb[30].mxu1 }
 0x31e   : > { %7071 = vst [vmem:[#allocation47_spill] sm:$0xff] %v5846_v15  ;;  %v4001_v3 = vpop.eup %4000  ;;  %v2364_v16 = vmul.f32 %v5846_v15, %v5846_v15  ;;  %v1798_v6 = vmul.f32 %v5838_v55, %v5838_v55  ;;  %v5866_v63 = vadd.f32 %v5641_v10, %v5376_v12  ;;  %v2434_v51 = vadd.f32 %v2433_v42, %v2362_v48  ;;  %v5873_v52 = vpop.f32.mrb[31].mxu0 }
 0x31f   : > { %7072 = vst [vmem:[#allocation48_spill] sm:$0xff] %v5853_v13  ;;  %v2175_v28 = vadd.f32 1.0, %v4001_v3  ;;  %v2049_v22 = vmul.f32 0.7978846, %v1985_v43  ;;  %v1987_v32 = vadd.f32 %v1923_v24, %v5818_v2  ;;  %v5875_v44 = vpop.f32.mrb[31].mxu1  ;;  %v5877_v15 = vadd.f32 %v2420_v31, %v2361_v0 }
 0x320   : > { %7073 = vst [vmem:[#allocation49_spill] sm:$0xff] %v5875_v44  ;;  %v5881_v62 = vmul.f32 %v5843_v17, %v5843_v17  ;;  %v1988_v10 = vadd.f32 %v1924_v20, %v5822_v5  ;;  %v1862_v37 = vmul.f32 %v1798_v6, %v5838_v55  ;;  %v2366_v42 = vmul.f32 %v5853_v13, %v5853_v13 }
 0x321   : > { %v5888_v48 = vmul.f32 %v2237_v11, %v5701_v54  ;;  %4006 = vtanh.f32 %v2049_v22  ;;  %v2051_v43 = vmul.f32 0.7978846, %v1987_v32  ;;  %v2409_v24 = vadd.f32 %v2408_v25, %v2364_v16 }
 0x322   : > { %v2052_v3 = vmul.f32 0.7978846, %v1988_v10  ;;  %v1926_v31 = vmul.f32 0.044715, %v1862_v37  ;;  %v1797_v0 = vmul.f32 %v5866_v63, %v5866_v63  ;;  %v2239_v19 = vmul.f32 0.5, %v2175_v28 }
 0x323   : > { %7074 = vst [vmem:[#allocation50_spill] sm:$0xff] %v5888_v48  ;;  %v4003_v17 = vpop.eup %4002  ;;  %4008 = vtanh.f32 %v2051_v43  ;;  %v5894_v20 = vadd.f32 %v5643_v46, %v5379_v33  ;;  %v5898_v6 = vadd.f32 %v5650_v61, %v5370_v1  ;;  %v2365_v25 = vmul.f32 %v5888_v48, %v5888_v48 }
 0x324   : > { %v2176_v54 = vadd.f32 1.0, %v4003_v17  ;;  %4010 = vtanh.f32 %v2052_v3  ;;  %v1990_v11 = vadd.f32 %v1926_v31, %v5838_v55  ;;  %v1861_v37 = vmul.f32 %v1797_v0, %v5866_v63 }
 0x325   : > { %v1799_v16 = vmul.f32 %v5894_v20, %v5894_v20  ;;  %v1800_v46 = vmul.f32 %v5898_v6, %v5898_v6  ;;  %v5910_v28 = vadd.f32 %v5652_v57, %v5373_v27  ;;  %v5914_v10 = vadd.f32 %v5656_v39, %v5376_v12 }
 0x326   : > { %v4005_v61 = vpop.eup %4004  ;;  %v2240_v17 = vmul.f32 0.5, %v2176_v54  ;;  %v2054_v22 = vmul.f32 0.7978846, %v1990_v11  ;;  %v1925_v32 = vmul.f32 0.044715, %v1861_v37  ;;  %v5917_v43 = vmul.f32 %v2239_v19, %v5709_v7 }
 0x327   : > { %v2178_v3 = vadd.f32 1.0, %v4005_v61  ;;  %v1863_v31 = vmul.f32 %v1799_v16, %v5894_v20  ;;  %v1864_v0 = vmul.f32 %v1800_v46, %v5898_v6  ;;  %v1802_v54 = vmul.f32 %v5910_v28, %v5910_v28 }
 0x328   : > { %7075 = vst [vmem:[#allocation51_spill] sm:$0xff] %v5917_v43  ;;  %v5922_v13 = vmul.f32 %v2240_v17, %v5730_v47  ;;  %4012 = vtanh.f32 %v2054_v22  ;;  %v1989_v57 = vadd.f32 %v1925_v32, %v5866_v63  ;;  %v1801_v7 = vmul.f32 %v5914_v10, %v5914_v10 }
 0x329   : > { %v2242_v11 = vmul.f32 0.5, %v2178_v3  ;;  %v1927_v39 = vmul.f32 0.044715, %v1863_v31  ;;  %v1928_v37 = vmul.f32 0.044715, %v1864_v0  ;;  %v2435_v19 = vadd.f32 %v2434_v51, %v2366_v42 }
 0x32a   : > { %7076 = vst [vmem:[#allocation52_spill] sm:$0xff] %v5922_v13  ;;  %v2368_v16 = vmul.f32 %v5922_v13, %v5922_v13  ;;  %v2053_v46 = vmul.f32 0.7978846, %v1989_v57  ;;  %v1866_v47 = vmul.f32 %v1802_v54, %v5910_v28  ;;  %v1865_v3 = vmul.f32 %v1801_v7, %v5914_v10 }
 0x32b   : > { %v4007_v61 = vpop.eup %4006  ;;  %v5933_v17 = vmul.f32 %v2242_v11, %v5746_v36  ;;  %v1991_v22 = vadd.f32 %v1927_v39, %v5894_v20  ;;  %v1992_v32 = vadd.f32 %v1928_v37, %v5898_v6  ;;  %v2367_v31 = vmul.f32 %v5917_v43, %v5917_v43 }
 0x32c   : > { %v2410_v51 = vadd.f32 %v2409_v24, %v2368_v16  ;;  %v2177_v42 = vadd.f32 1.0, %v4007_v61  ;;  %4014 = vtanh.f32 %v2053_v46  ;;  %v1930_v13 = vmul.f32 0.044715, %v1866_v47 }
 0x32d   : > { %7077 = vst [vmem:[#allocation53_spill] sm:$0xff] %v5933_v17  ;;  %v4009_v0 = vpop.eup %4008  ;;  %v2370_v57 = vmul.f32 %v5933_v17, %v5933_v17  ;;  %v2055_v54 = vmul.f32 0.7978846, %v1991_v22  ;;  %v5944_v36 = vadd.f32 %v5658_v23, %v5379_v33  ;;  %v2056_v48 = vmul.f32 0.7978846, %v1992_v32 }
 0x32e   : > { %v4011_v11 = vpop.eup %4010  ;;  %v2411_v39 = vrot.slane %v2410_v51, 4  ;;  %v2241_v37 = vmul.f32 0.5, %v2177_v42  ;;  %v2179_v7 = vadd.f32 1.0, %v4009_v0  ;;  %v2447_v24 = vadd.f32 %v5814_v59, %v5881_v62 }
 0x32f   : > { %v2422_v16 = vadd.f32 %v5877_v15, %v2365_v25  ;;  %v2436_v46 = vadd.f32 %v2435_v19, %v2370_v57  ;;  %v1929_v61 = vmul.f32 0.044715, %v1865_v3  ;;  %4016 = vtanh.f32 %v2055_v54 }
 0x330   : > { %v2412_v43 = vadd.f32 %v2411_v39, %v2410_v51  ;;  %v5950_v22 = vmul.f32 %v2241_v37, %v5812_v18  ;;  %v2243_v47 = vmul.f32 0.5, %v2179_v7  ;;  %v2448_v23 = vadd.f32 %v2447_v24, %v2367_v31 }
 0x331   : > { %v2437_v17 = vrot.slane %v2436_v46, 4  ;;  %v2180_v44 = vadd.f32 1.0, %v4011_v11  ;;  %v1994_v42 = vadd.f32 %v1930_v13, %v5910_v28  ;;  %4018 = vtanh.f32 %v2056_v48 }
 0x332   : > { %v4013_v0 = vpop.eup %4012  ;;  %v2369_v32 = vmul.f32 %v5950_v22, %v5950_v22  ;;  %v5956_v62 = vmul.f32 %v2243_v47, %v5818_v2  ;;  %v1803_v59 = vmul.f32 %v5944_v36, %v5944_v36  ;;  %v2413_v18 = vrot.slane %v2412_v43, 2  ;;  %v3882_v47 = vld [vmem:[#allocation8 + $0x40] sm:$0xff]  }
 0x333   : > { %v2438_v15 = vadd.f32 %v2437_v17, %v2436_v46  ;;  %v1993_v25 = vadd.f32 %v1929_v61, %v5914_v10  ;;  %v2182_v13 = vadd.f32 1.0, %v4013_v0  ;;  %v2244_v31 = vmul.f32 0.5, %v2180_v44  ;;  %v3884_v0 = vld [vmem:[#allocation8 + $0xc0] sm:$0xff]   ;;  %3620 = vmatprep.subr.bf16.mxu0 %v3882_v47 }
 0x334   : > { %v2423_v19 = vadd.f32 %v2422_v16, %v2369_v32  ;;  %v2371_v3 = vmul.f32 %v5956_v62, %v5956_v62  ;;  %v2058_v51 = vmul.f32 0.7978846, %v1994_v42  ;;  %v1867_v57 = vmul.f32 %v1803_v59, %v5944_v36  ;;  %v3883_v42 = vld [vmem:[#allocation8] sm:$0xff]   ;;  %v3886_v59 = vld [vmem:[#allocation8 + $0x48] sm:$0xff]   ;;  %3684 = vmatprep.subr.bf16.mxu1 %v3884_v0 }
 0x335   : > { %v2439_v2 = vrot.slane %v2438_v15, 2  ;;  %v5966_v39 = vadd.f32 %v5711_v26, %v5370_v1  ;;  %v2414_v17 = vadd.f32 %v2413_v18, %v2412_v43  ;;  %v2057_v7 = vmul.f32 0.7978846, %v1993_v25  ;;  %v3885_v32 = vld [vmem:[#allocation8 + $0x80] sm:$0xff]   ;;  %v3888_v25 = vld [vmem:[#allocation8 + $0xc8] sm:$0xff]   ;;  %3621 = vmatpush3.bf16.msra.mxu0 %v3883_v42 }
 0x336   : > { %v4015_v54 = vpop.eup %4014  ;;  %v2424_v11 = vrot.slane %v2423_v19, 4  ;;  %v2449_v48 = vadd.f32 %v2448_v23, %v2371_v3  ;;  %v1931_v24 = vmul.f32 0.044715, %v1867_v57  ;;  %v2246_v61 = vmul.f32 0.5, %v2182_v13  ;;  %3685 = vmatpush3.bf16.msra.mxu1 %v3885_v32  ;;  %v3889_v57 = vld [vmem:[#allocation8 + $0x88] sm:$0xff]   ;;  %3622 = vmatprep.subr.bf16.mxu0 %v3886_v59 }
 0x337   : > { %v2181_v37 = vadd.f32 1.0, %v4015_v54  ;;  %v1804_v44 = vmul.f32 %v5966_v39, %v5966_v39  ;;  %4020 = vtanh.f32 %v2058_v51  ;;  %v2440_v3 = vadd.f32 %v2439_v2, %v2438_v15  ;;  %v3887_v51 = vld [vmem:[#allocation8 + $0x8] sm:$0xff]   ;;  %3686 = vmatprep.subr.bf16.mxu1 %v3888_v25  ;;  %v3896_v25 = vld [vmem:[#allocation8 + $0xd8] sm:$0xff]  }
 0x338   : > { %v2425_v16 = vadd.f32 %v2424_v11, %v2423_v19  ;;  %v2450_v46 = vrot.slane %v2449_v48, 4  ;;  %v1995_v23 = vadd.f32 %v1931_v24, %v5944_v36  ;;  %v5973_v13 = vmul.f32 %v2244_v31, %v5822_v5 }
 0x339   : > { %v4017_v26 = vpop.eup %4016  ;;  %v2245_v43 = vmul.f32 0.5, %v2181_v37  ;;  %v1868_v18 = vmul.f32 %v1804_v44, %v5966_v39  ;;  %4022 = vtanh.f32 %v2057_v7  ;;  %v2415_v11 = vrot.slane %v2414_v17, 1  ;;  %v3890_v37 = vld [vmem:[#allocation8 + $0x50] sm:$0xff]   ;;  %3623 = vmatpush3.bf16.msra.mxu0 %v3887_v51 }
 0x33a   : > { %v2426_v19 = vrot.slane %v2425_v16, 2  ;;  %7078 = vst [vmem:[#allocation54_spill] sm:$0xff] %v5973_v13  ;;  %v2451_v24 = vadd.f32 %v2450_v46, %v2449_v48  ;;  %v5976_v15 = vmul.f32 %v2246_v61, %v5838_v55  ;;  %v3892_v44 = vld [vmem:[#allocation8 + $0xd0] sm:$0xff]   ;;  %v2183_v47 = vadd.f32 1.0, %v4017_v26  ;;  %3687 = vmatpush3.bf16.msra.mxu1 %v3889_v57  ;;  %3624 = vmatprep.subr.bf16.mxu0 %v3890_v37 }
 0x33b   : > { %v4019_v54 = vpop.eup %4018  ;;  %v1932_v2 = vmul.f32 0.044715, %v1868_v18  ;;  %v2059_v0 = vmul.f32 0.7978846, %v1995_v23  ;;  %v5980_v5 = vadd.f32 %v5713_v60, %v5373_v27  ;;  %v2441_v31 = vrot.slane %v2440_v3, 1  ;;  %v3891_v61 = vld [vmem:[#allocation8 + $0x10] sm:$0xff]   ;;  %3688 = vmatprep.subr.bf16.mxu1 %v3892_v44 }
 0x33c   : > { %7079 = vst [vmem:[#allocation55_spill] sm:$0xff] %v5976_v15  ;;  %v5983_v7 = vmul.f32 %v2245_v43, %v5866_v63  ;;  %v5985_v42 = vadd.f32 %v2426_v19, %v2425_v16  ;;  %v2184_v48 = vadd.f32 1.0, %v4019_v54  ;;  %v3893_v23 = vld [vmem:[#allocation8 + $0x90] sm:$0xff]   ;;  %v5990_v32 = vadd.f32 %v2415_v11, %v2414_v17  ;;  %v3894_v16 = vld [vmem:[#allocation8 + $0x58] sm:$0xff]  }
 0x33d   : > { %v1996_v55 = vadd.f32 %v1932_v2, %v5966_v39  ;;  %v1806_v46 = vmul.f32 %v5980_v5, %v5980_v5  ;;  %v2452_v60 = vrot.slane %v2451_v24, 2  ;;  %v5994_v59 = vmul.f32 %v5973_v13, %v5973_v13  ;;  %3625 = vmatpush3.bf16.msra.mxu0 %v3891_v61  ;;  %v3897_v44 = vld [vmem:[#allocation8 + $0x98] sm:$0xff]  }
 0x33e   : > { %v5998_v63 = vmul.f32 %v5976_v15, %v5976_v15  ;;  %v2247_v26 = vmul.f32 0.5, %v2183_v47  ;;  %4024 = vtanh.f32 %v2059_v0  ;;  %v6001_v17 = vadd.f32 %v2441_v31, %v2440_v3  ;;  %3689 = vmatpush3.bf16.msra.mxu1 %v3893_v23  ;;  %v3895_v3 = vld [vmem:[#allocation8 + $0x18] sm:$0xff]   ;;  %3626 = vmatprep.subr.bf16.mxu0 %v3894_v16  ;;  %v3898_v31 = vld [vmem:[#allocation8 + $0x60] sm:$0xff]  }
 0x33f   : > { %v2060_v43 = vmul.f32 0.7978846, %v1996_v55  ;;  %v1870_v18 = vmul.f32 %v1806_v46, %v5980_v5  ;;  %v6005_v19 = vmul.f32 %v5983_v7, %v5983_v7  ;;  %v6009_v51 = vadd.f32 %v5719_v45, %v5376_v12  ;;  %v7081_v23 = vld [vmem:[#allocation37_spill] sm:$0xff]  ;;  %3690 = vmatprep.subr.bf16.mxu1 %v3896_v25 }
 0x340   : > { %v6013_v57 = vadd.f32 %v5721_v58, %v5379_v33  ;;  %v2428_v11 = vrot.slane %v5985_v42, 1  ;;  %v2248_v2 = vmul.f32 0.5, %v2184_v48  ;;  %v6016_v47 = vadd.f32 %v2452_v60, %v2451_v24  ;;  %v3900_v48 = vld [vmem:[#allocation8 + $0xe0] sm:$0xff]  }
 0x341   : > { %v4021_v54 = vpop.eup %4020  ;;  %4026 = vtanh.f32 %v2060_v43  ;;  %v1934_v37 = vmul.f32 0.044715, %v1870_v18  ;;  %v1805_v45 = vmul.f32 %v6009_v51, %v6009_v51  ;;  %v6024_v58 = vadd.f32 %v5732_v14, %v5370_v1  ;;  %3627 = vmatpush3.bf16.msra.mxu0 %v3895_v3  ;;  %v3899_v25 = vld [vmem:[#allocation8 + $0x20] sm:$0xff]  }
 0x342   : > { %v1807_v0 = vmul.f32 %v6013_v57, %v6013_v57  ;;  %v6027_v46 = vmul.f32 %v2247_v26, %v5894_v20  ;;  %v6032_v61 = vadd.f32 %v5734_v41, %v5373_v27  ;;  %v6036_v60 = vadd.f32 %v7081_v23, %v5376_v12  ;;  %3691 = vmatpush3.bf16.msra.mxu1 %v3897_v44 }
 0x343   : > { %v4023_v55 = vpop.eup %4022  ;;  %v1998_v24 = vadd.f32 %v1934_v37, %v5980_v5  ;;  %v2186_v14 = vadd.f32 1.0, %v4021_v54  ;;  %v1869_v16 = vmul.f32 %v1805_v45, %v6009_v51  ;;  %v1808_v20 = vmul.f32 %v6024_v58, %v6024_v58  ;;  %v3901_v54 = vld [vmem:[#allocation8 + $0xa0] sm:$0xff]   ;;  %3628 = vmatprep.subr.bf16.mxu0 %v3898_v31  ;;  %3692 = vmatprep.subr.bf16.mxu1 %v3900_v48 }
 0x344   : > { %7080 = vst [vmem:[#allocation56_spill] sm:$0xff] %v6027_v46  ;;  %v1871_v43 = vmul.f32 %v1807_v0, %v6013_v57  ;;  %v6043_v26 = vmul.f32 %v2248_v2, %v5898_v6  ;;  %v1810_v41 = vmul.f32 %v6032_v61, %v6032_v61  ;;  %v1809_v37 = vmul.f32 %v6036_v60, %v6036_v60 }
 0x345   : > { %v2062_v18 = vmul.f32 0.7978846, %v1998_v24  ;;  %v2185_v45 = vadd.f32 1.0, %v4023_v55  ;;  %v1933_v23 = vmul.f32 0.044715, %v1869_v16  ;;  %v1872_v15 = vmul.f32 %v1808_v20, %v6024_v58  ;;  %v7083_v24 = vld [vmem:[#allocation38_spill] sm:$0xff]  ;;  %3629 = vmatpush3.bf16.msra.mxu0 %v3899_v25 }
 0x346   : > { %7082 = vst [vmem:[#allocation37_spill] sm:$0xff] %v6043_v26  ;;  %v1935_v0 = vmul.f32 0.044715, %v1871_v43  ;;  %v1874_v6 = vmul.f32 %v1810_v41, %v6032_v61  ;;  %v1873_v2 = vmul.f32 %v1809_v37, %v6036_v60  ;;  %v6054_v13 = vadd.f32 %v7083_v24, %v5379_v33  ;;  %3693 = vmatpush3.bf16.msra.mxu1 %v3901_v54 }
 0x347   : > { %4028 = vtanh.f32 %v2062_v18  ;;  %v6057_v3 = vadd.f32 %v2428_v11, %v5985_v42  ;;  %v1997_v44 = vadd.f32 %v1933_v23, %v6009_v51  ;;  %v1936_v16 = vmul.f32 0.044715, %v1872_v15 }
 0x348   : > { %v1999_v55 = vadd.f32 %v1935_v0, %v6013_v57  ;;  %v4025_v43 = vpop.eup %4024  ;;  %v1938_v31 = vmul.f32 0.044715, %v1874_v6  ;;  %v1937_v48 = vmul.f32 0.044715, %v1873_v2  ;;  %v1811_v20 = vmul.f32 %v6054_v13, %v6054_v13 }
 0x349   : > { %v6065_v18 = vadd.f32 %v5772_v9, %v5370_v1  ;;  %v2061_v11 = vmul.f32 0.7978846, %v1997_v44  ;;  %v2000_v37 = vadd.f32 %v1936_v16, %v6024_v58  ;;  %v2250_v9 = vmul.f32 0.5, %v2186_v14 }
 0x34a   : > { %v2063_v41 = vmul.f32 0.7978846, %v1999_v55  ;;  %v2002_v15 = vadd.f32 %v1938_v31, %v6032_v61  ;;  %v2001_v0 = vadd.f32 %v1937_v48, %v6036_v60  ;;  %v1875_v6 = vmul.f32 %v1811_v20, %v6054_v13 }
 0x34b   : > { %v4027_v23 = vpop.eup %4026  ;;  %v1812_v2 = vmul.f32 %v6065_v18, %v6065_v18  ;;  %v2187_v24 = vadd.f32 1.0, %v4025_v43  ;;  %4030 = vtanh.f32 %v2061_v11  ;;  %v2064_v25 = vmul.f32 0.7978846, %v2000_v37 }
 0x34c   : > { %4032 = vtanh.f32 %v2063_v41  ;;  %v2066_v54 = vmul.f32 0.7978846, %v2002_v15  ;;  %v2065_v44 = vmul.f32 0.7978846, %v2001_v0  ;;  %v1939_v55 = vmul.f32 0.044715, %v1875_v6 }
 0x34d   : > { %v2249_v42 = vmul.f32 0.5, %v2185_v45  ;;  %v2188_v16 = vadd.f32 1.0, %v4027_v23  ;;  %4034 = vtanh.f32 %v2064_v25  ;;  %v1876_v31 = vmul.f32 %v1812_v2, %v6065_v18 }
 0x34e   : > { %4036 = vtanh.f32 %v2066_v54  ;;  %v2003_v48 = vadd.f32 %v1939_v55, %v6054_v13  ;;  %v6078_v20 = vadd.f32 %v5774_v35, %v5373_v27  ;;  %v6082_v14 = vadd.f32 %v5782_v30, %v5376_v12 }
 0x34f   : > { %v2251_v43 = vmul.f32 0.5, %v2187_v24  ;;  %4038 = vtanh.f32 %v2065_v44  ;;  %v1940_v11 = vmul.f32 0.044715, %v1876_v31  ;;  %v6086_v45 = vadd.f32 %v5784_v29, %v5379_v33 }
 0x350   : > { %v2067_v37 = vmul.f32 0.7978846, %v2003_v48  ;;  %v1814_v23 = vmul.f32 %v6078_v20, %v6078_v20  ;;  %v1813_v35 = vmul.f32 %v6082_v14, %v6082_v14  ;;  %v6094_v15 = vadd.f32 %v5791_v50, %v5370_v1 }
 0x351   : > { %v4029_v41 = vpop.eup %4028  ;;  %v2252_v30 = vmul.f32 0.5, %v2188_v16  ;;  %v2004_v6 = vadd.f32 %v1940_v11, %v6065_v18  ;;  %v1815_v29 = vmul.f32 %v6086_v45, %v6086_v45  ;;  %v6100_v2 = vmul.f32 %v2250_v9, %v5910_v28 }
 0x352   : > { %v2190_v0 = vadd.f32 1.0, %v4029_v41  ;;  %v1878_v24 = vmul.f32 %v1814_v23, %v6078_v20  ;;  %v1877_v25 = vmul.f32 %v1813_v35, %v6082_v14  ;;  %v1816_v54 = vmul.f32 %v6094_v15, %v6094_v15 }
 0x353   : > { %7084 = vst [vmem:[#allocation38_spill] sm:$0xff] %v6100_v2  ;;  %v6107_v50 = vmul.f32 %v2249_v42, %v5914_v10  ;;  %v2068_v55 = vmul.f32 0.7978846, %v2004_v6  ;;  %v1879_v16 = vmul.f32 %v1815_v29, %v6086_v45  ;;  %v6111_v31 = vmul.f32 %v2251_v43, %v5944_v36 }
 0x354   : > { %v2254_v44 = vmul.f32 0.5, %v2190_v0  ;;  %4040 = vtanh.f32 %v2067_v37  ;;  %v1942_v28 = vmul.f32 0.044715, %v1878_v24  ;;  %v1941_v9 = vmul.f32 0.044715, %v1877_v25 }
 0x355   : > { %7085 = vst [vmem:[#allocation57_spill] sm:$0xff] %v6111_v31  ;;  %v4031_v48 = vpop.eup %4030  ;;  %v6114_v11 = vmul.f32 %v2252_v30, %v5966_v39  ;;  %4042 = vtanh.f32 %v2068_v55  ;;  %v1943_v41 = vmul.f32 0.044715, %v1879_v16  ;;  %v1880_v23 = vmul.f32 %v1816_v54, %v6094_v15 }
 0x356   : > { %v4033_v10 = vpop.eup %4032  ;;  %v2189_v42 = vadd.f32 1.0, %v4031_v48  ;;  %v2006_v35 = vadd.f32 %v1942_v28, %v6078_v20  ;;  %v2005_v0 = vadd.f32 %v1941_v9, %v6082_v14  ;;  %v6121_v36 = vadd.f32 %v5793_v56, %v5373_v27 }
 0x357   : > { %7086 = vst [vmem:[#allocation58_spill] sm:$0xff] %v6114_v11  ;;  %v4035_v43 = vpop.eup %4034  ;;  %v2375_v37 = vmul.f32 %v6027_v46, %v6027_v46  ;;  %v2376_v39 = vmul.f32 %v6043_v26, %v6043_v26  ;;  %v6128_v30 = vmul.f32 %v2254_v44, %v5980_v5  ;;  %v2191_v6 = vadd.f32 1.0, %v4033_v10 }
 0x358   : > { %v4037_v29 = vpop.eup %4036  ;;  %v2253_v24 = vmul.f32 0.5, %v2189_v42  ;;  %v2192_v25 = vadd.f32 1.0, %v4035_v43  ;;  %v2070_v54 = vmul.f32 0.7978846, %v2006_v35  ;;  %v2007_v55 = vadd.f32 %v1943_v41, %v6086_v45 }
 0x359   : > { %7087 = vst [vmem:[#allocation59_spill] sm:$0xff] %v6128_v30  ;;  %v4039_v16 = vpop.eup %4038  ;;  %v7088_v56 = vrot.slane %v6016_v47, 1  ;;  %v2378_v9 = vmul.f32 %v6100_v2, %v6100_v2  ;;  %v2377_v5 = vmul.f32 %v6107_v50, %v6107_v50  ;;  %v1944_v44 = vmul.f32 0.044715, %v1880_v23 }
 0x35a   : > { %v2379_v48 = vmul.f32 %v6111_v31, %v6111_v31  ;;  %v2380_v10 = vmul.f32 %v6114_v11, %v6114_v11  ;;  %v2069_v41 = vmul.f32 0.7978846, %v2005_v0  ;;  %v1818_v42 = vmul.f32 %v6121_v36, %v6121_v36 }
 0x35b   : > { %v6134_v28 = vadd.f32 %v7088_v56, %v6016_v47  ;;  %v2382_v47 = vmul.f32 %v6128_v30, %v6128_v30  ;;  %v2255_v35 = vmul.f32 0.5, %v2191_v6  ;;  %v2194_v43 = vadd.f32 1.0, %v4037_v29 }
 0x35c   : > { %4044 = vtanh.f32 %v2070_v54  ;;  %v2456_v56 = vadd.f32 %v2376_v39, %v5994_v59  ;;  %v6150_v23 = vmul.f32 %v2253_v24, %v6009_v51  ;;  %v2256_v2 = vmul.f32 0.5, %v2192_v25 }
 0x35d   : > { %v2071_v26 = vmul.f32 0.7978846, %v2007_v55  ;;  %v2482_v31 = vadd.f32 %v2378_v9, %v5998_v63  ;;  %v2193_v11 = vadd.f32 1.0, %v4039_v16  ;;  %v2008_v0 = vadd.f32 %v1944_v44, %v6094_v15 }
 0x35e   : > { %v6156_v46 = vadd.f32 %v5802_v38, %v5376_v12  ;;  %v4041_v30 = vpop.eup %4040  ;;  %v2469_v6 = vadd.f32 %v2377_v5, %v6005_v19  ;;  %v2495_v29 = vadd.f32 %v2379_v48, %v2375_v37  ;;  %4046 = vtanh.f32 %v2069_v41 }
 0x35f   : > { %v1882_v59 = vmul.f32 %v1818_v42, %v6121_v36  ;;  %v4043_v51 = vpop.eup %4042  ;;  %v2457_v39 = vadd.f32 %v2456_v56, %v2380_v10  ;;  %v2483_v24 = vadd.f32 %v2482_v31, %v2382_v47  ;;  %v6161_v25 = vmul.f32 %v2255_v35, %v6013_v57 }
 0x360   : > { %v2258_v63 = vmul.f32 0.5, %v2194_v43  ;;  %v2381_v54 = vmul.f32 %v6150_v23, %v6150_v23  ;;  %v6166_v38 = vmul.f32 %v2256_v2, %v6024_v58  ;;  %4048 = vtanh.f32 %v2071_v26 }
 0x361   : > { %v1946_v55 = vmul.f32 0.044715, %v1882_v59  ;;  %v2257_v19 = vmul.f32 0.5, %v2193_v11  ;;  %v2072_v37 = vmul.f32 0.7978846, %v2008_v0  ;;  %v1817_v16 = vmul.f32 %v6156_v46, %v6156_v46 }
 0x362   : > { %v6172_v31 = vadd.f32 %v5804_v8, %v5379_v33  ;;  %v2195_v57 = vadd.f32 1.0, %v4041_v30  ;;  %v2196_v9 = vadd.f32 1.0, %v4043_v51  ;;  %v6177_v44 = vadd.f32 %v5848_v21, %v5370_v1 }
 0x363   : > { %v2010_v5 = vadd.f32 %v1946_v55, %v6121_v36  ;;  %v2383_v58 = vmul.f32 %v6161_v25, %v6161_v25  ;;  %v6182_v26 = vmul.f32 %v2258_v63, %v6032_v61  ;;  %v1881_v2 = vmul.f32 %v1817_v16, %v6156_v46 }
 0x364   : > { %v1819_v8 = vmul.f32 %v6172_v31, %v6172_v31  ;;  %v2470_v11 = vadd.f32 %v2469_v6, %v2381_v54  ;;  %v1820_v48 = vmul.f32 %v6177_v44, %v6177_v44  ;;  %v6191_v21 = vadd.f32 %v5850_v34, %v5373_v27 }
 0x365   : > { %v2074_v30 = vmul.f32 0.7978846, %v2010_v5  ;;  %v6194_v41 = vmul.f32 %v2257_v19, %v6036_v60  ;;  %4050 = vtanh.f32 %v2072_v37  ;;  %v1945_v61 = vmul.f32 0.044715, %v1881_v2 }
 0x366   : > { %v4045_v10 = vpop.eup %4044  ;;  %v1883_v42 = vmul.f32 %v1819_v8, %v6172_v31  ;;  %v2259_v47 = vmul.f32 0.5, %v2195_v57  ;;  %v2260_v35 = vmul.f32 0.5, %v2196_v9  ;;  %v1884_v43 = vmul.f32 %v1820_v48, %v6177_v44 }
 0x367   : > { %4052 = vtanh.f32 %v2074_v30  ;;  %v6198_v56 = vadd.f32 %v2495_v29, %v2383_v58  ;;  %v2384_v0 = vmul.f32 %v6166_v38, %v6166_v38  ;;  %v2009_v34 = vadd.f32 %v1945_v61, %v6156_v46 }
 0x368   : > { %v1947_v6 = vmul.f32 0.044715, %v1883_v42  ;;  %v4047_v59 = vpop.eup %4046  ;;  %v2386_v60 = vmul.f32 %v6182_v26, %v6182_v26  ;;  %v2198_v51 = vadd.f32 1.0, %v4045_v10  ;;  %v1948_v63 = vmul.f32 0.044715, %v1884_v43 }
 0x369   : > { %v1822_v54 = vmul.f32 %v6191_v21, %v6191_v21  ;;  %v2385_v55 = vmul.f32 %v6194_v41, %v6194_v41  ;;  %v2073_v29 = vmul.f32 0.7978846, %v2009_v34  ;;  %v6212_v37 = vadd.f32 %v5856_v40, %v5376_v12 }
 0x36a   : > { %v2011_v19 = vadd.f32 %v1947_v6, %v6172_v31  ;;  %v4049_v16 = vpop.eup %4048  ;;  %v6215_v57 = vmul.f32 %v2259_v47, %v6054_v13  ;;  %v6218_v9 = vmul.f32 %v2260_v35, %v6065_v18  ;;  %v2012_v5 = vadd.f32 %v1948_v63, %v6177_v44 }
 0x36b   : > { %v1886_v58 = vmul.f32 %v1822_v54, %v6191_v21  ;;  %v6222_v2 = vadd.f32 %v2457_v39, %v2384_v0  ;;  %v2197_v8 = vadd.f32 1.0, %v4047_v59  ;;  %4054 = vtanh.f32 %v2073_v29 }
 0x36c   : > { %v2075_v30 = vmul.f32 0.7978846, %v2011_v19  ;;  %v6224_v48 = vadd.f32 %v2483_v24, %v2386_v60  ;;  %v2262_v40 = vmul.f32 0.5, %v2198_v51  ;;  %v2076_v10 = vmul.f32 0.7978846, %v2012_v5  ;;  %v7089_v5 = vld [vmem:[#allocation49_spill] sm:$0xff] }
 0x36d   : > { %v1950_v61 = vmul.f32 0.044715, %v1886_v58  ;;  %v6226_v42 = vadd.f32 %v2470_v11, %v2385_v55  ;;  %v2199_v13 = vadd.f32 1.0, %v4049_v16  ;;  %v1821_v18 = vmul.f32 %v6212_v37, %v6212_v37 }
 0x36e   : > { %4056 = vtanh.f32 %v2075_v30  ;;  %v6232_v47 = vmul.f32 %v6215_v57, %v6215_v57  ;;  %v6236_v39 = vmul.f32 %v6218_v9, %v6218_v9  ;;  %v2261_v43 = vmul.f32 0.5, %v2197_v8 }
 0x36f   : > { %4058 = vtanh.f32 %v2076_v10  ;;  %v2014_v24 = vadd.f32 %v1950_v61, %v6191_v21  ;;  %v4051_v35 = vpop.eup %4050  ;;  %v1885_v11 = vmul.f32 %v1821_v18, %v6212_v37  ;;  %v6242_v0 = vadd.f32 %v5858_v53, %v5379_v33 }
 0x370   : > { %v6246_v34 = vadd.f32 %v5868_v4, %v5370_v1  ;;  %v6249_v59 = vmul.f32 %v2262_v40, %v6078_v20  ;;  %v6253_v51 = vadd.f32 %v5870_v49, %v5373_v27  ;;  %v6257_v63 = vadd.f32 %v5873_v52, %v5376_v12 }
 0x371   : > { %v4053_v6 = vpop.eup %4052  ;;  %v2078_v60 = vmul.f32 0.7978846, %v2014_v24  ;;  %v2263_v54 = vmul.f32 0.5, %v2199_v13  ;;  %v1949_v53 = vmul.f32 0.044715, %v1885_v11  ;;  %v1823_v55 = vmul.f32 %v6242_v0, %v6242_v0 }
 0x372   : > { %v1824_v1 = vmul.f32 %v6246_v34, %v6246_v34  ;;  %v2200_v4 = vadd.f32 1.0, %v4051_v35  ;;  %v1826_v20 = vmul.f32 %v6253_v51, %v6253_v51  ;;  %v1825_v27 = vmul.f32 %v6257_v63, %v6257_v63 }
 0x373   : > { %4060 = vtanh.f32 %v2078_v60  ;;  %v2202_v49 = vadd.f32 1.0, %v4053_v6  ;;  %v2013_v12 = vadd.f32 %v1949_v53, %v6212_v37  ;;  %v1887_v52 = vmul.f32 %v1823_v55, %v6242_v0 }
 0x374   : > { %v1888_v29 = vmul.f32 %v1824_v1, %v6246_v34  ;;  %v1890_v19 = vmul.f32 %v1826_v20, %v6253_v51  ;;  %v1889_v16 = vmul.f32 %v1825_v27, %v6257_v63  ;;  %v6274_v58 = vadd.f32 %v7089_v5, %v5379_v33 }
 0x375   : > { %4062 = vrsqrt.f32 %v5990_v32  ;;  %v4055_v8 = vpop.eup %4054  ;;  %v6278_v30 = vmul.f32 %v2261_v43, %v6082_v14  ;;  %v2077_v40 = vmul.f32 0.7978846, %v2013_v12  ;;  %v1951_v10 = vmul.f32 0.044715, %v1887_v52 }
 0x376   : > { %v1952_v61 = vmul.f32 0.044715, %v1888_v29  ;;  %v2264_v13 = vmul.f32 0.5, %v2200_v4  ;;  %v2201_v18 = vadd.f32 1.0, %v4055_v8  ;;  %v1954_v24 = vmul.f32 0.044715, %v1890_v19 }
 0x377   : > { %v1953_v35 = vmul.f32 0.044715, %v1889_v16  ;;  %4064 = vtanh.f32 %v2077_v40  ;;  %v2015_v6 = vadd.f32 %v1951_v10, %v6242_v0  ;;  %v1827_v60 = vmul.f32 %v6274_v58, %v6274_v58 }
 0x378   : > { %v4057_v11 = vpop.eup %4056  ;;  %v2016_v33 = vadd.f32 %v1952_v61, %v6246_v34  ;;  %v2266_v55 = vmul.f32 0.5, %v2202_v49  ;;  %v2018_v43 = vadd.f32 %v1954_v24, %v6253_v51  ;;  %v2265_v4 = vmul.f32 0.5, %v2201_v18 }
 0x379   : > { %v4059_v53 = vpop.eup %4058  ;;  %v2203_v14 = vadd.f32 1.0, %v4057_v11  ;;  %v2017_v1 = vadd.f32 %v1953_v35, %v6257_v63  ;;  %v2079_v27 = vmul.f32 0.7978846, %v2015_v6  ;;  %v6287_v52 = vmul.f32 %v2263_v54, %v6086_v45 }
 0x37a   : > { %v2204_v20 = vadd.f32 1.0, %v4059_v53  ;;  %v2080_v12 = vmul.f32 0.7978846, %v2016_v33  ;;  %v2082_v19 = vmul.f32 0.7978846, %v2018_v43  ;;  %v6290_v5 = vmul.f32 %v2264_v13, %v6094_v15 }
 0x37b   : > { %v2267_v29 = vmul.f32 0.5, %v2203_v14  ;;  %v2081_v16 = vmul.f32 0.7978846, %v2017_v1  ;;  %4066 = vtanh.f32 %v2079_v27  ;;  %v1891_v49 = vmul.f32 %v1827_v60, %v6274_v58 }
 0x37c   : > { %v2268_v8 = vmul.f32 0.5, %v2204_v20  ;;  %v2390_v10 = vmul.f32 %v6249_v59, %v6249_v59  ;;  %v2389_v61 = vmul.f32 %v6278_v30, %v6278_v30  ;;  %v6298_v45 = vmul.f32 %v2266_v55, %v6121_v36 }
 0x37d   : > { %v4061_v40 = vpop.eup %4060  ;;  %4068 = vtanh.f32 %v2080_v12  ;;  %v6301_v54 = vmul.f32 %v2265_v4, %v6156_v46  ;;  %v1955_v13 = vmul.f32 0.044715, %v1891_v49  ;;  %v2497_v24 = vadd.f32 %v6198_v56, %v6232_v47 }
 0x37e   : > { %v2206_v15 = vadd.f32 1.0, %v4061_v40  ;;  %4070 = vtanh.f32 %v2082_v19  ;;  %v2391_v35 = vmul.f32 %v6287_v52, %v6287_v52  ;;  %v6308_v11 = vmul.f32 %v2267_v29, %v6172_v31 }
 0x37f   : > { %v4063_v18 = vpop.eup %4062  ;;  %4072 = vtanh.f32 %v2081_v16  ;;  %v2459_v36 = vadd.f32 %v6222_v2, %v6236_v39  ;;  %v2392_v46 = vmul.f32 %v6290_v5, %v6290_v5  ;;  %v6315_v6 = vmul.f32 %v2268_v8, %v6177_v44 }
 0x380   : > { %v2019_v33 = vadd.f32 %v1955_v13, %v6274_v58  ;;  %v2485_v56 = vadd.f32 %v6224_v48, %v2390_v10  ;;  %v2270_v47 = vmul.f32 0.5, %v2206_v15  ;;  %v2509_v60 = vmul.f32 %v4063_v18, %v5990_v32 }
 0x381   : > { %7090 = vst [vmem:[#allocation49_spill] sm:$0xff] %v6315_v6  ;;  %4074 = vrsqrt.f32 %v6057_v3  ;;  %v4065_v31 = vpop.eup %4064  ;;  %v2472_v53 = vadd.f32 %v6226_v42, %v2389_v61  ;;  %v2394_v2 = vmul.f32 %v6298_v45, %v6298_v45  ;;  %v2393_v39 = vmul.f32 %v6301_v54, %v6301_v54 }
 0x382   : > { %v2083_v44 = vmul.f32 0.7978846, %v2019_v33  ;;  %v2498_v55 = vadd.f32 %v2497_v24, %v2391_v35  ;;  %v2395_v14 = vmul.f32 %v6308_v11, %v6308_v11  ;;  %v2205_v48 = vadd.f32 1.0, %v4065_v31 }
 0x383   : > { %4076 = vrsqrt.f32 %v6001_v17  ;;  %v2460_v43 = vadd.f32 %v2459_v36, %v2392_v46  ;;  %v2396_v1 = vmul.f32 %v6315_v6, %v6315_v6  ;;  %vm2510_vm12 = vcmp.eq.f32.partialorder %v5990_v32, inf }
 0x384   : > { %4078 = vtanh.f32 %v2083_v44  ;;  %v6333_v42 = vmul.f32 %v2270_v47, %v6191_v21  ;;  %v2269_v4 = vmul.f32 0.5, %v2205_v48  ;;  %v2511_v20 = vsel %vm2510_vm12, %v5990_v32, %v2509_v60 }
 0x385   : > { %4080 = vrsqrt.f32 %v6134_v28  ;;  %v4067_v27 = vpop.eup %4066  ;;  %v2486_v12 = vadd.f32 %v2485_v56, %v2394_v2  ;;  %v2473_v29 = vadd.f32 %v2472_v53, %v2393_v39  ;;  %vm2512_vm13 = vcmp.eq.f32.partialorder %v5990_v32, 0.0 }
 0x386   : > { %7091 = vst [vmem:[#allocation60_spill] sm:$0xff] %v6333_v42  ;;  %v2513_v19 = vand.u32 2147483648, %v5990_v32  ;;  %v2499_v8 = vadd.f32 %v2498_v55, %v2395_v14  ;;  %v6340_v49 = vmul.f32 %v2269_v4, %v6212_v37  ;;  %v2207_v40 = vadd.f32 1.0, %v4067_v27 }
 0x387   : > { %v4069_v16 = vpop.eup %4068  ;;  %vm2517_vm14 = vcmp.eq.f32.partialorder %v6057_v3, inf  ;;  %v2461_v10 = vadd.f32 %v2460_v43, %v2396_v1  ;;  %vm2519_vm15 = vcmp.eq.f32.partialorder %v6057_v3, 0.0  ;;  %v2398_v18 = vmul.f32 %v6333_v42, %v6333_v42 }
 0x388   : > { %v4071_v21 = vpop.eup %4070  ;;  %v2208_v61 = vadd.f32 1.0, %v4069_v16  ;;  %v6343_v15 = vsel %vm2512_vm13, %v2513_v19, %v2511_v20  ;;  %v2397_v32 = vmul.f32 %v6340_v49, %v6340_v49  ;;  %v2271_v24 = vmul.f32 0.5, %v2207_v40 }
 0x389   : > { %v4073_v13 = vpop.eup %4072  ;;  %v2210_v37 = vadd.f32 1.0, %v4071_v21  ;;  %v2520_v46 = vand.u32 2147483648, %v6057_v3  ;;  %vm2524_vm0 = vcmp.eq.f32.partialorder %v6001_v17, inf  ;;  %vm2526_vm1 = vcmp.eq.f32.partialorder %v6001_v17, 0.0 }
 0x38a   : > { %v2272_v35 = vmul.f32 0.5, %v2208_v61  ;;  %v2209_v36 = vadd.f32 1.0, %v4073_v13  ;;  %v6353_v56 = vmul.f32 %v2271_v24, %v6242_v0  ;;  %v2527_v60 = vand.u32 2147483648, %v6001_v17 }
 0x38b   : > { %v4075_v33 = vpop.eup %4074  ;;  %v2274_v47 = vmul.f32 0.5, %v2210_v37  ;;  %vm2531_vm2 = vcmp.eq.f32.partialorder %v6134_v28, inf  ;;  %v2487_v44 = vadd.f32 %v2486_v12, %v2398_v18  ;;  %v2474_v55 = vadd.f32 %v2473_v29, %v2397_v32 }
 0x38c   : > { %7092 = vst [vmem:[#allocation61_spill] sm:$0xff] %v6353_v56  ;;  %v6358_v31 = vmul.f32 %v2272_v35, %v6246_v34  ;;  %v2273_v53 = vmul.f32 0.5, %v2209_v36  ;;  %v2516_v2 = vmul.f32 %v4075_v33, %v6057_v3  ;;  %vm2533_vm3 = vcmp.eq.f32.partialorder %v6134_v28, 0.0 }
 0x38d   : > { %v4077_v39 = vpop.eup %4076  ;;  %v6363_v14 = vmul.f32 %v2274_v47, %v6253_v51  ;;  %v2399_v51 = vmul.f32 %v6353_v56, %v6353_v56  ;;  %v2534_v61 = vand.u32 2147483648, %v6134_v28  ;;  %v7109_v56 = vld [vmem:[#allocation31_spill] sm:$0xff] }
 0x38e   : > { %7093 = vst [vmem:[#allocation62_spill] sm:$0xff] %v6358_v31  ;;  %v4079_v0 = vpop.eup %4078  ;;  %v2400_v48 = vmul.f32 %v6358_v31, %v6358_v31  ;;  %v6369_v34 = vmul.f32 %v2273_v53, %v6257_v63  ;;  %v2518_v43 = vsel %vm2517_vm14, %v6057_v3, %v2516_v2  ;;  %v2523_v1 = vmul.f32 %v4077_v39, %v6001_v17 }
 0x38f   : > { %7094 = vst [vmem:[#allocation63_spill] sm:$0xff] %v6363_v14  ;;  %v4081_v4 = vpop.eup %4080  ;;  %v2402_v20 = vmul.f32 %v6363_v14, %v6363_v14  ;;  %v2211_v27 = vadd.f32 1.0, %v4079_v0  ;;  %v6381_v12 = vsel %vm2519_vm15, %v2520_v46, %v2518_v43  ;;  %v2500_v24 = vadd.f32 %v2499_v8, %v2399_v51 }
 0x390   : > { %7095 = vst [vmem:[#allocation64_spill] sm:$0xff] %v6369_v34  ;;  %v2462_v63 = vadd.f32 %v2461_v10, %v2400_v48  ;;  %v2401_v29 = vmul.f32 %v6369_v34, %v6369_v34  ;;  %v2525_v19 = vsel %vm2524_vm0, %v6001_v17, %v2523_v1  ;;  %v2530_v16 = vmul.f32 %v4081_v4, %v6134_v28 }
 0x391   : > { %v2488_v40 = vadd.f32 %v2487_v44, %v2402_v20  ;;  %v2275_v21 = vmul.f32 0.5, %v2211_v27  ;;  %v2564_v13 = vadd.f32 %v6381_v12, %v6343_v15  ;;  %v6394_v10 = vsel %vm2526_vm1, %v2527_v60, %v2525_v19 }
 0x392   : > { %v2463_v3 = vrot.slane %v2462_v63, 4  ;;  %v2475_v18 = vadd.f32 %v2474_v55, %v2401_v29  ;;  %v2532_v32 = vsel %vm2531_vm2, %v6134_v28, %v2530_v16 }
 0x393   : > { %v2489_v37 = vrot.slane %v2488_v40, 4  ;;  %v6400_v35 = vmul.f32 %v2275_v21, %v6274_v58  ;;  %v2565_v36 = vadd.f32 %v2564_v13, %v6394_v10  ;;  %v6405_v47 = vsel %vm2533_vm3, %v2534_v61, %v2532_v32 }
 0x394   : > { %v2464_v46 = vadd.f32 %v2463_v3, %v2462_v63  ;;  %v2476_v33 = vrot.slane %v2475_v18, 4 }
 0x395   : > { %7096 = vst [vmem:[#allocation65_spill] sm:$0xff] %v6400_v35  ;;  %v2490_v17 = vadd.f32 %v2489_v37, %v2488_v40  ;;  %v2403_v60 = vmul.f32 %v6400_v35, %v6400_v35  ;;  %v2566_v53 = vadd.f32 %v2565_v36, %v6405_v47 }
 0x396   : > { %v2465_v2 = vrot.slane %v2464_v46, 2  ;;  %v2477_v8 = vadd.f32 %v2476_v33, %v2475_v18 }
 0x397   : > { %v2491_v39 = vrot.slane %v2490_v17, 2  ;;  %v2501_v44 = vadd.f32 %v2500_v24, %v2403_v60  ;;  %2567 = vadd.xlane.f32.xlu0 %v2566_v53 }
 0x398   : > { %v2466_v58 = vadd.f32 %v2465_v2, %v2464_v46  ;;  %v2478_v55 = vrot.slane %v2477_v8, 2 }
 0x399   : > { %v2492_v0 = vadd.f32 %v2491_v39, %v2490_v17  ;;  %v2502_v48 = vrot.slane %v2501_v44, 4 }
 0x39a   : > { %v2467_v43 = vrot.slane %v2466_v58, 1  ;;  %v2479_v1 = vadd.f32 %v2478_v55, %v2477_v8 }
 0x39b   : > { %v2493_v28 = vrot.slane %v2492_v0, 1  ;;  %v2503_v4 = vadd.f32 %v2502_v48, %v2501_v44 }
 0x39c   : > { %v2468_v51 = vadd.f32 %v2467_v43, %v2466_v58  ;;  %v2480_v20 = vrot.slane %v2479_v1, 1 }
 0x39d   : > { %v2494_v27 = vadd.f32 %v2493_v28, %v2492_v0  ;;  %v2504_v63 = vrot.slane %v2503_v4, 2  ;;  %v3903_v28 = vld [vmem:[#allocation8 + $0x28] sm:$0xff]  }
 0x39e   : > { %v2481_v29 = vadd.f32 %v2480_v20, %v2479_v1  ;;  %4082 = vrsqrt.f32 %v2468_v51  ;;  %vm2538_vm4 = vcmp.eq.f32.partialorder %v2468_v51, inf  ;;  %v2541_v18 = vand.u32 2147483648, %v2468_v51  ;;  %v3902_v1 = vld [vmem:[#allocation8 + $0x68] sm:$0xff]   ;;  %v3906_v20 = vld [vmem:[#allocation8 + $0x70] sm:$0xff]  }
 0x39f   : > { %v2505_v19 = vadd.f32 %v2504_v63, %v2503_v4  ;;  %4084 = vrsqrt.f32 %v2494_v27  ;;  %vm2540_vm5 = vcmp.eq.f32.partialorder %v2468_v51, 0.0  ;;  %vm2552_vm7 = vcmp.eq.f32.partialorder %v2494_v27, inf  ;;  %v3904_v4 = vld [vmem:[#allocation8 + $0xe8] sm:$0xff]   ;;  %3630 = vmatprep.subr.bf16.mxu0 %v3902_v1  ;;  %v3907_v63 = vld [vmem:[#allocation8 + $0x30] sm:$0xff]  }
 0x3a0   : > { %4086 = vrsqrt.f32 %v2481_v29  ;;  %vm2545_vm6 = vcmp.eq.f32.partialorder %v2481_v29, inf  ;;  %v2548_v46 = vand.u32 2147483648, %v2481_v29  ;;  %vm2547_vm8 = vcmp.eq.f32.partialorder %v2481_v29, 0.0  ;;  %3631 = vmatpush3.bf16.msra.mxu0 %v3903_v28  ;;  %3694 = vmatprep.subr.bf16.mxu1 %v3904_v4  ;;  %v7100_v28 = vld [vmem:[#allocation19_spill] sm:$0xff] }
 0x3a1   : > { %v2506_v16 = vrot.slane %v2505_v19, 1  ;;  %v2555_v53 = vand.u32 2147483648, %v2494_v27  ;;  %vm2554_vm9 = vcmp.eq.f32.partialorder %v2494_v27, 0.0  ;;  %3632 = vmatprep.subr.bf16.mxu0 %v3906_v20 }
 0x3a3   : > { %v2507_v40 = vadd.f32 %v2506_v16, %v2505_v19  ;;  %v3910_v19 = vld [vmem:[#allocation8 + $0x78] sm:$0xff]  }
 0x3a4   : > { %v3912_v16 = vld [vmem:[#allocation8 + $0xf8] sm:$0xff]   ;;  %3633 = vmatpush3.bf16.msra.mxu0 %v3907_v63 }
 0x3a5   : > { %4088 = vrsqrt.f32 %v2507_v40  ;;  %vm2559_vm10 = vcmp.eq.f32.partialorder %v2507_v40, inf  ;;  %v2562_v58 = vand.u32 2147483648, %v2507_v40  ;;  %vm2561_vm11 = vcmp.eq.f32.partialorder %v2507_v40, 0.0  ;;  %3634 = vmatprep.subr.bf16.mxu0 %v3910_v19  ;;  %v7104_v63 = vld [vmem:[#allocation28_spill] sm:$0xff]  ;;  %v7105_v19 = vld [vmem:[#allocation21_spill] sm:$0xff] }
 0x3a8   : > { %v4083_v21 = vpop.eup %4082 }
 0x3a9   : > { %v4085_v61 = vpop.eup %4084  ;;  %v2537_v13 = vmul.f32 %v4083_v21, %v2468_v51  ;;  %v3913_v21 = vld [vmem:[#allocation8 + $0xb8] sm:$0xff]  }
 0x3aa   : > { %v4087_v3 = vpop.eup %4086  ;;  %v2551_v32 = vmul.f32 %v4085_v61, %v2494_v27 }
 0x3ab   : > { %v2539_v24 = vsel %vm2538_vm4, %v2468_v51, %v2537_v13  ;;  %v2544_v37 = vmul.f32 %v4087_v3, %v2481_v29  ;;  %v3905_v51 = vld [vmem:[#allocation8 + $0xa8] sm:$0xff]  }
 0x3ac   : > { %v6410_v36 = vsel %vm2540_vm5, %v2541_v18, %v2539_v24  ;;  %v2553_v17 = vsel %vm2552_vm7, %v2494_v27, %v2551_v32  ;;  %v3908_v27 = vld [vmem:[#allocation8 + $0xf0] sm:$0xff]   ;;  %3695 = vmatpush3.bf16.msra.mxu1 %v3905_v51  ;;  %v2588_v18 = vld [vmem:[%s6911_s7] sm:$0xf] }
 0x3ad   : > { %v2546_v33 = vsel %vm2545_vm6, %v2481_v29, %v2544_v37  ;;  %v6416_v39 = vsel %vm2554_vm9, %v2555_v53, %v2553_v17  ;;  %v3909_v29 = vld [vmem:[#allocation8 + $0xb0] sm:$0xff]   ;;  %3696 = vmatprep.subr.bf16.mxu1 %v3908_v27  ;;  %v2738_v32 = vld [vmem:[%s6912_s8] sm:$0xf]  ;;  %v7097_v37 = vld [vmem:[#allocation18_spill] sm:$0xff]  ;;  %v6459_v4 = vrot.slane %v2588_v18, %v7100_v28 }
 0x3ae   : > { %v6412_v60 = vsel %vm2547_vm8, %v2548_v46, %v2546_v33  ;;  %v6429_v46 = vrot.slane %v2588_v18, %v7097_v37  ;;  %v6432_v33 = vrot.slane %v2738_v32, %v7097_v37  ;;  %v7098_v17 = vld [vmem:[#allocation20_spill] sm:$0xff] }
 0x3af   : > { %v4089_v2 = vpop.eup %4088  ;;  %v2569_v8 = vadd.f32 %v6412_v60, %v6410_v36  ;;  %v6435_v53 = vrot.slane %v2588_v18, %v7098_v17 }
 0x3b0   : > { %v2558_v44 = vmul.f32 %v4089_v2, %v2507_v40  ;;  %3697 = vmatpush3.bf16.msra.mxu1 %v3909_v29  ;;  %v7099_v2 = vld [vmem:[#allocation17_spill] sm:$0xff] }
 0x3b1   : > { %v2570_v55 = vadd.f32 %v2569_v8, %v6416_v39  ;;  %3698 = vmatprep.subr.bf16.mxu1 %v3912_v16  ;;  %v6438_v8 = vrot.slane %v2588_v18, %v7099_v2  ;;  %v6456_v1 = vrot.slane %v2738_v32, %v7099_v2 }
 0x3b2   : > { %v2560_v0 = vsel %vm2559_vm10, %v2507_v40, %v2558_v44  ;;  %v3911_v40 = vld [vmem:[#allocation8 + $0x38] sm:$0xff]  }
 0x3b3   : > { %v6419_v48 = vsel %vm2561_vm11, %v2562_v58, %v2560_v0  ;;  %3635 = vmatpush3.bf16.msra.mxu0 %v3911_v40  ;;  %v7106_v40 = vld [vmem:[#allocation24_spill] sm:$0xff] }
 0x3b4   : > { %v2571_v43 = vadd.f32 %v2570_v55, %v6419_v48  ;;  %3699 = vmatpush3.bf16.msra.mxu1 %v3913_v21 }
 0x3b6   : > { %2572 = vadd.xlane.f32.xlu1 %v2571_v43  ;;  %v6453_v43 = vrot.slane %v2738_v32, %v7098_v17 }
 0x424   : > { %v2568_v61 = vpop.xlane.xlu0 %2567 }
 0x425   : > { %v2574_v13 = vmul.f32 0.001953125, %v2568_v61  ;;  %v7107_v61 = vld [vmem:[#allocation22_spill] sm:$0xff] }
 0x427   : > { %v2576_v3 = vadd.f32 1e-06, %v2574_v13 }
 0x429   : > { %4090 = vrcp.f32 %v2576_v3  ;;  %v7108_v3 = vld [vmem:[#allocation25_spill] sm:$0xff] }
 0x433   : > { %v4091_v24 = vpop.eup %4090 }
 0x434   : > { %v6441_v44 = vmul.f32 %v4091_v24, %v6343_v15  ;;  %v6444_v58 = vmul.f32 %v4091_v24, %v6394_v10  ;;  %v6447_v55 = vmul.f32 %v4091_v24, %v6381_v12  ;;  %v6450_v0 = vmul.f32 %v4091_v24, %v6405_v47  ;;  %v7101_v10 = vld [vmem:[#allocation23_spill] sm:$0xff]  ;;  %v7102_v12 = vld [vmem:[#allocation26_spill] sm:$0xff] }
 0x435   : > { %v6462_v15 = vrot.slane %v2738_v32, %v7100_v28  ;;  %v7103_v47 = vld [vmem:[#allocation27_spill] sm:$0xff] }
 0x436   : > { %v2590_v51 = vmul.f32 %v6447_v55, %v7101_v10  ;;  %v2594_v20 = vmul.f32 %v6447_v55, %v7102_v12  ;;  %v2592_v27 = vmul.f32 %v6450_v0, %v7103_v47  ;;  %v2596_v29 = vmul.f32 %v6450_v0, %v7104_v63 }
 0x437   : > { %v2589_v16 = vmul.f32 %v6441_v44, %v7105_v19  ;;  %v2593_v21 = vmul.f32 %v6441_v44, %v7106_v40  ;;  %v2591_v13 = vmul.f32 %v6444_v58, %v7107_v61  ;;  %v2595_v18 = vmul.f32 %v6444_v58, %v7108_v3 }
 0x438   : > { %v2675_v32 = vmul.f32 %v6429_v46, %v2590_v51  ;;  %v2679_v24 = vmul.f32 %v6429_v46, %v2594_v20  ;;  %v2677_v37 = vmul.f32 %v6435_v53, %v2592_v27  ;;  %v2681_v17 = vmul.f32 %v6435_v53, %v2596_v29 }
 0x439   : > { %v2674_v2 = vmul.f32 %v6438_v8, %v2589_v16  ;;  %v2678_v28 = vmul.f32 %v6438_v8, %v2593_v21  ;;  %v2676_v14 = vmul.f32 %v6459_v4, %v2591_v13  ;;  %v2680_v42 = vmul.f32 %v6459_v4, %v2595_v18 }
 0x43a   : > { %v2761_v31 = vadd.f32 %v6432_v33, %v2675_v32  ;;  %v2765_v6 = vadd.f32 %v6432_v33, %v2679_v24  ;;  %v2763_v51 = vadd.f32 %v6453_v43, %v2677_v37  ;;  %v2767_v20 = vadd.f32 %v6453_v43, %v2681_v17 }
 0x43b   : > { %v2760_v27 = vadd.f32 %v6456_v1, %v2674_v2  ;;  %v2764_v29 = vadd.f32 %v6456_v1, %v2678_v28  ;;  %v2762_v16 = vadd.f32 %v6462_v15, %v2676_v14  ;;  %v2766_v21 = vadd.f32 %v6462_v15, %v2680_v42 }
 0x43c   : > { %v2825_v13 = vadd.f32 %v2761_v31, %v7101_v10  ;;  %v2829_v18 = vadd.f32 %v2765_v6, %v7102_v12  ;;  %v2827_v32 = vadd.f32 %v2763_v51, %v7103_v47  ;;  %v2831_v24 = vadd.f32 %v2767_v20, %v7104_v63  ;;  %v7110_v31 = vld [vmem:[#allocation35_spill] sm:$0xff]  ;;  %v7111_v47 = vld [vmem:[#allocation32_spill] sm:$0xff]  ;;  %v7113_v51 = vld [vmem:[#allocation29_spill] sm:$0xff] }
 0x43d   : > { %v2824_v37 = vadd.f32 %v2760_v27, %v7105_v19  ;;  %v2828_v17 = vadd.f32 %v2764_v29, %v7106_v40  ;;  %v2826_v2 = vadd.f32 %v2762_v16, %v7107_v61  ;;  %v2830_v28 = vadd.f32 %v2766_v21, %v7108_v3  ;;  %v7112_v19 = vld [vmem:[#allocation36_spill] sm:$0xff]  ;;  %v7114_v16 = vld [vmem:[#allocation33_spill] sm:$0xff] }
 0x43e   : > { %v2889_v35 = vpack.c.bf16 %v2829_v18, %v2825_v13  ;;  %v2891_v14 = vpack.c.bf16 %v2831_v24, %v2827_v32  ;;  %v2598_v42 = vmul.f32 %v6447_v55, %v7109_v56  ;;  %v2602_v6 = vmul.f32 %v6447_v55, %v7110_v31  ;;  %v7115_v32 = vld [vmem:[#allocation30_spill] sm:$0xff] }
 0x43f   : > { %v2888_v10 = vpack.c.bf16 %v2828_v17, %v2824_v37  ;;  %v2890_v12 = vpack.c.bf16 %v2830_v28, %v2826_v2  ;;  %v2600_v63 = vmul.f32 %v6450_v0, %v7111_v47  ;;  %v2604_v40 = vmul.f32 %v6450_v0, %v7112_v19 }
 0x440   : > { %3215 = vmatprep.mubr.bf16.mxu0 %v2889_v35  ;;  %3312 = vmatprep.mubr.bf16.mxu1 %v2891_v14  ;;  %v2683_v61 = vmul.f32 %v6429_v46, %v2598_v42  ;;  %v2687_v3 = vmul.f32 %v6429_v46, %v2602_v6  ;;  %v2597_v20 = vmul.f32 %v6441_v44, %v7113_v51  ;;  %v7116_v14 = vld [vmem:[#allocation34_spill] sm:$0xff] }
 0x441   : > { %3216 = vmatmul.mubr.bf16.vlgmr.msra.gmra.mrb[32].mxu0 %v2888_v10  ;;  %3313 = vmatmul.mubr.bf16.vlgmr.msra.gmra.mrb[32].mxu1 %v2890_v12  ;;  %v2685_v27 = vmul.f32 %v6435_v53, %v2600_v63  ;;  %v2689_v29 = vmul.f32 %v6435_v53, %v2604_v40  ;;  %v2601_v21 = vmul.f32 %v6441_v44, %v7114_v16 }
 0x442   : > { %v2769_v13 = vadd.f32 %v6432_v33, %v2683_v61  ;;  %v2773_v35 = vadd.f32 %v6432_v33, %v2687_v3  ;;  %v2682_v18 = vmul.f32 %v6438_v8, %v2597_v20  ;;  %v2599_v24 = vmul.f32 %v6444_v58, %v7115_v32 }
 0x443   : > { %v2771_v37 = vadd.f32 %v6453_v43, %v2685_v27  ;;  %v2775_v17 = vadd.f32 %v6453_v43, %v2689_v29  ;;  %v2573_v2 = vpop.xlane.xlu1 %2572  ;;  %v2686_v28 = vmul.f32 %v6438_v8, %v2601_v21  ;;  %v2603_v42 = vmul.f32 %v6444_v58, %v7116_v14 }
 0x444   : > { %v2833_v6 = vadd.f32 %v2769_v13, %v7109_v56  ;;  %v2837_v10 = vadd.f32 %v2773_v35, %v7110_v31  ;;  %v2575_v12 = vmul.f32 0.001953125, %v2573_v2  ;;  %v2768_v63 = vadd.f32 %v6456_v1, %v2682_v18  ;;  %v7117_v35 = vld [vmem:[#allocation41_spill] sm:$0xff] }
 0x445   : > { %v2835_v40 = vadd.f32 %v2771_v37, %v7111_v47  ;;  %v2839_v61 = vadd.f32 %v2775_v17, %v7112_v19  ;;  %v2772_v3 = vadd.f32 %v6456_v1, %v2686_v28  ;;  %v2684_v20 = vmul.f32 %v6459_v4, %v2599_v24  ;;  %v7118_v18 = vld [vmem:[#allocation45_spill] sm:$0xff]  ;;  %v7119_v37 = vld [vmem:[#allocation42_spill] sm:$0xff] }
 0x446   : > { %v2893_v27 = vpack.c.bf16 %v2837_v10, %v2833_v6  ;;  %v2577_v29 = vadd.f32 1e-06, %v2575_v12  ;;  %v2832_v21 = vadd.f32 %v2768_v63, %v7113_v51  ;;  %v2688_v34 = vmul.f32 %v6459_v4, %v2603_v42  ;;  %v7120_v28 = vld [vmem:[#allocation46_spill] sm:$0xff]  ;;  %v7121_v12 = vld [vmem:[#allocation39_spill] sm:$0xff] }
 0x447   : > { %v2895_v56 = vpack.c.bf16 %v2839_v61, %v2835_v40  ;;  %v2836_v31 = vadd.f32 %v2772_v3, %v7114_v16  ;;  %v2770_v13 = vadd.f32 %v6462_v15, %v2684_v20  ;;  %v2606_v47 = vmul.f32 %v6447_v55, %v7117_v35  ;;  %v7123_v20 = vld [vmem:[#allocation40_spill] sm:$0xff] }
 0x448   : > { %3223 = vmatprep.mubr.bf16.mxu0 %v2893_v27  ;;  %4092 = vrcp.f32 %v2577_v29  ;;  %v2774_v19 = vadd.f32 %v6462_v15, %v2688_v34  ;;  %v2610_v24 = vmul.f32 %v6447_v55, %v7118_v18  ;;  %v2608_v51 = vmul.f32 %v6450_v0, %v7119_v37 }
 0x449   : > { %3320 = vmatprep.mubr.bf16.mxu1 %v2895_v56  ;;  %v2892_v17 = vpack.c.bf16 %v2836_v31, %v2832_v21  ;;  %v2834_v2 = vadd.f32 %v2770_v13, %v7115_v32  ;;  %v2691_v16 = vmul.f32 %v6429_v46, %v2606_v47  ;;  %v2612_v42 = vmul.f32 %v6450_v0, %v7120_v28  ;;  %v7122_v32 = vld [vmem:[#allocation43_spill] sm:$0xff] }
 0x44a   : > { %v2838_v6 = vadd.f32 %v2774_v19, %v7116_v14  ;;  %v2695_v10 = vmul.f32 %v6429_v46, %v2610_v24  ;;  %v2693_v34 = vmul.f32 %v6435_v53, %v2608_v51  ;;  %v2605_v63 = vmul.f32 %v6441_v44, %v7121_v12  ;;  %v7124_v19 = vld [vmem:[#allocation44_spill] sm:$0xff] }
 0x44b   : > { %3224 = vmatmul.mubr.bf16.gmra.mrb[36].mxu0 %v2892_v17  ;;  %v2777_v40 = vadd.f32 %v6432_v33, %v2691_v16  ;;  %v2697_v61 = vmul.f32 %v6435_v53, %v2612_v42  ;;  %v2609_v3 = vmul.f32 %v6441_v44, %v7122_v32  ;;  %v2607_v27 = vmul.f32 %v6444_v58, %v7123_v20 }
 0x44c   : > { %v2894_v29 = vpack.c.bf16 %v2838_v6, %v2834_v2  ;;  %v2781_v14 = vadd.f32 %v6432_v33, %v2695_v10  ;;  %v2779_v21 = vadd.f32 %v6453_v43, %v2693_v34  ;;  %v2690_v56 = vmul.f32 %v6438_v8, %v2605_v63  ;;  %v7125_v10 = vld [vmem:[#allocation50_spill] sm:$0xff] }
 0x44d   : > { %v2841_v31 = vadd.f32 %v2777_v40, %v7117_v35  ;;  %v2783_v13 = vadd.f32 %v6453_v43, %v2697_v61  ;;  %v2694_v47 = vmul.f32 %v6438_v8, %v2609_v3  ;;  %v2611_v24 = vmul.f32 %v6444_v58, %v7124_v19 }
 0x44e   : > { %3321 = vmatmul.mubr.bf16.gmra.mrb[36].mxu1 %v2894_v29  ;;  %v2845_v51 = vadd.f32 %v2781_v14, %v7118_v18  ;;  %v2843_v17 = vadd.f32 %v2779_v21, %v7119_v37  ;;  %v2776_v2 = vadd.f32 %v6456_v1, %v2690_v56  ;;  %v2692_v16 = vmul.f32 %v6459_v4, %v2607_v27  ;;  %v7126_v56 = vld [vmem:[#allocation51_spill] sm:$0xff] }
 0x44f   : > { %v2847_v42 = vadd.f32 %v2783_v13, %v7120_v28  ;;  %v2780_v35 = vadd.f32 %v6456_v1, %v2694_v47  ;;  %v2696_v6 = vmul.f32 %v6459_v4, %v2611_v24  ;;  %v2614_v34 = vmul.f32 %v6447_v55, %v7125_v10  ;;  %v7127_v47 = vld [vmem:[#allocation47_spill] sm:$0xff] }
 0x450   : > { %v2897_v63 = vpack.c.bf16 %v2845_v51, %v2841_v31  ;;  %v2840_v40 = vadd.f32 %v2776_v2, %v7121_v12  ;;  %v2778_v18 = vadd.f32 %v6462_v15, %v2692_v16  ;;  %v2618_v37 = vmul.f32 %v6447_v55, %v5950_v22  ;;  %v7128_v2 = vld [vmem:[#allocation52_spill] sm:$0xff] }
 0x451   : > { %v2899_v61 = vpack.c.bf16 %v2847_v42, %v2843_v17  ;;  %v2844_v3 = vadd.f32 %v2780_v35, %v7122_v32  ;;  %v2782_v28 = vadd.f32 %v6462_v15, %v2696_v6  ;;  %v2699_v27 = vmul.f32 %v6429_v46, %v2614_v34  ;;  %v7129_v35 = vld [vmem:[#allocation48_spill] sm:$0xff] }
 0x452   : > { %v4093_v29 = vpop.eup %4092  ;;  %3231 = vmatprep.mubr.bf16.mxu0 %v2897_v63  ;;  %v2842_v14 = vadd.f32 %v2778_v18, %v7123_v20  ;;  %v2703_v21 = vmul.f32 %v6429_v46, %v2618_v37  ;;  %v2616_v12 = vmul.f32 %v6450_v0, %v7126_v56  ;;  %v2620_v31 = vmul.f32 %v6450_v0, %v5956_v62  ;;  %v7130_v37 = vld [vmem:[#allocation53_spill] sm:$0xff] }
 0x453   : > { %3328 = vmatprep.mubr.bf16.mxu1 %v2899_v61  ;;  %v2896_v55 = vpack.c.bf16 %v2844_v3, %v2840_v40  ;;  %v2846_v32 = vadd.f32 %v2782_v28, %v7124_v19  ;;  %v2785_v13 = vadd.f32 %v6432_v33, %v2699_v27  ;;  %v2613_v24 = vmul.f32 %v6441_v44, %v7127_v47 }
 0x454   : > { %v2789_v51 = vadd.f32 %v6432_v33, %v2703_v21  ;;  %v2701_v20 = vmul.f32 %v6435_v53, %v2616_v12  ;;  %v2705_v17 = vmul.f32 %v6435_v53, %v2620_v31  ;;  %v2617_v16 = vmul.f32 %v6441_v44, %v7128_v2 }
 0x455   : > { %3232 = vmatmul.mubr.bf16.gmra.mrb[40].mxu0 %v2896_v55  ;;  %v2898_v0 = vpack.c.bf16 %v2846_v32, %v2842_v14  ;;  %v2849_v42 = vadd.f32 %v2785_v13, %v7125_v10  ;;  %v2698_v19 = vmul.f32 %v6438_v8, %v2613_v24  ;;  %v2615_v6 = vmul.f32 %v6444_v58, %v7129_v35 }
 0x456   : > { %v2853_v34 = vadd.f32 %v2789_v51, %v5950_v22  ;;  %v2787_v63 = vadd.f32 %v6453_v43, %v2701_v20  ;;  %v2791_v40 = vadd.f32 %v6453_v43, %v2705_v17  ;;  %v2702_v18 = vmul.f32 %v6438_v8, %v2617_v16  ;;  %v7131_v17 = vld [vmem:[#allocation56_spill] sm:$0xff]  ;;  %v7132_v16 = vld [vmem:[#allocation57_spill] sm:$0xff] }
 0x457   : > { %3329 = vmatmul.mubr.bf16.gmra.mrb[40].mxu1 %v2898_v0  ;;  %v2784_v44 = vadd.f32 %v6456_v1, %v2698_v19  ;;  %v2619_v61 = vmul.f32 %v6444_v58, %v7130_v37  ;;  %v2700_v10 = vmul.f32 %v6459_v4, %v2615_v6  ;;  %v6615_v3 = vmul.f32 %v4093_v29, %v6412_v60  ;;  %v7133_v19 = vld [vmem:[#allocation54_spill] sm:$0xff]  ;;  %v7134_v6 = vld [vmem:[#allocation37_spill] sm:$0xff] }
 0x458   : > { %v2901_v28 = vpack.c.bf16 %v2853_v34, %v2849_v42  ;;  %v2851_v22 = vadd.f32 %v2787_v63, %v7126_v56  ;;  %v2855_v27 = vadd.f32 %v2791_v40, %v5956_v62  ;;  %v2788_v14 = vadd.f32 %v6456_v1, %v2702_v18 }
 0x459   : > { %v2848_v21 = vadd.f32 %v2784_v44, %v7127_v47  ;;  %v2704_v12 = vmul.f32 %v6459_v4, %v2619_v61  ;;  %v2786_v31 = vadd.f32 %v6462_v15, %v2700_v10  ;;  %v2622_v58 = vmul.f32 %v6615_v3, %v5983_v7 }
 0x45a   : > { %3239 = vmatprep.mubr.bf16.mxu0 %v2901_v28  ;;  %v2903_v55 = vpack.c.bf16 %v2855_v27, %v2851_v22  ;;  %v2852_v60 = vadd.f32 %v2788_v14, %v7128_v2  ;;  %v2626_v56 = vmul.f32 %v6615_v3, %v6107_v50  ;;  %v6629_v62 = vmul.f32 %v4093_v29, %v6419_v48  ;;  %v7135_v14 = vld [vmem:[#allocation55_spill] sm:$0xff] }
 0x45b   : > { %v2790_v32 = vadd.f32 %v6462_v15, %v2704_v12  ;;  %v2850_v13 = vadd.f32 %v2786_v31, %v7129_v35  ;;  %v2707_v47 = vmul.f32 %v6429_v46, %v2622_v58  ;;  %v6635_v24 = vmul.f32 %v4093_v29, %v6410_v36  ;;  %v7136_v12 = vld [vmem:[#allocation38_spill] sm:$0xff] }
 0x45c   : > { %3336 = vmatprep.mubr.bf16.mxu1 %v2903_v55  ;;  %v2900_v51 = vpack.c.bf16 %v2852_v60, %v2848_v21  ;;  %v2711_v20 = vmul.f32 %v6429_v46, %v2626_v56  ;;  %v2624_v2 = vmul.f32 %v6629_v62, %v7131_v17  ;;  %v2628_v48 = vmul.f32 %v6629_v62, %v7132_v16 }
 0x45d   : > { %v2854_v0 = vadd.f32 %v2790_v32, %v7130_v37  ;;  %v2793_v42 = vadd.f32 %v6432_v33, %v2707_v47  ;;  %v2621_v35 = vmul.f32 %v6635_v24, %v7133_v19  ;;  %v2625_v36 = vmul.f32 %v6635_v24, %v7134_v6 }
 0x45e   : > { %3240 = vmatmul.mubr.bf16.gmra.mrb[44].mxu0 %v2900_v51  ;;  %v2797_v34 = vadd.f32 %v6432_v33, %v2711_v20  ;;  %v2709_v63 = vmul.f32 %v6435_v53, %v2624_v2  ;;  %v2713_v40 = vmul.f32 %v6435_v53, %v2628_v48  ;;  %v6652_v18 = vmul.f32 %v4093_v29, %v6416_v39 }
 0x45f   : > { %v2902_v44 = vpack.c.bf16 %v2854_v0, %v2850_v13  ;;  %v2857_v37 = vadd.f32 %v2793_v42, %v5983_v7  ;;  %v2706_v61 = vmul.f32 %v6438_v8, %v2621_v35  ;;  %v2710_v10 = vmul.f32 %v6438_v8, %v2625_v36  ;;  %v7137_v36 = vld [vmem:[#allocation58_spill] sm:$0xff] }
 0x460   : > { %v2861_v28 = vadd.f32 %v2797_v34, %v6107_v50  ;;  %v2795_v22 = vadd.f32 %v6453_v43, %v2709_v63  ;;  %v2799_v27 = vadd.f32 %v6453_v43, %v2713_v40  ;;  %v2623_v21 = vmul.f32 %v6652_v18, %v7135_v14 }
 0x461   : > { %3337 = vmatmul.mubr.bf16.gmra.mrb[44].mxu1 %v2902_v44  ;;  %v2792_v39 = vadd.f32 %v6456_v1, %v2706_v61  ;;  %v2796_v29 = vadd.f32 %v6456_v1, %v2710_v10  ;;  %v2627_v7 = vmul.f32 %v6652_v18, %v7136_v12  ;;  %v2630_v31 = vmul.f32 %v6615_v3, %v6150_v23 }
 0x462   : > { %v2905_v58 = vpack.c.bf16 %v2861_v28, %v2857_v37  ;;  %v2859_v50 = vadd.f32 %v2795_v22, %v7131_v17  ;;  %v2863_v55 = vadd.f32 %v2799_v27, %v7132_v16  ;;  %v2708_v60 = vmul.f32 %v6459_v4, %v2623_v21  ;;  %v7138_v22 = vld [vmem:[#allocation59_spill] sm:$0xff] }
 0x463   : > { %v2856_v56 = vadd.f32 %v2792_v39, %v7133_v19  ;;  %v2860_v32 = vadd.f32 %v2796_v29, %v7134_v6  ;;  %v2712_v13 = vmul.f32 %v6459_v4, %v2627_v7  ;;  %v2634_v47 = vmul.f32 %v6615_v3, %v6194_v41 }
 0x464   : > { %3247 = vmatprep.mubr.bf16.mxu0 %v2905_v58  ;;  %v2907_v51 = vpack.c.bf16 %v2863_v55, %v2859_v50  ;;  %v2794_v20 = vadd.f32 %v6462_v15, %v2708_v60  ;;  %v2715_v2 = vmul.f32 %v6429_v46, %v2630_v31  ;;  %v2632_v17 = vmul.f32 %v6629_v62, %v6161_v25 }
 0x465   : > { %v2904_v16 = vpack.c.bf16 %v2860_v32, %v2856_v56  ;;  %v2798_v48 = vadd.f32 %v6462_v15, %v2712_v13  ;;  %v2719_v0 = vmul.f32 %v6429_v46, %v2634_v47  ;;  %v2636_v42 = vmul.f32 %v6629_v62, %v6215_v57 }
 0x466   : > { %3344 = vmatprep.mubr.bf16.mxu1 %v2907_v51  ;;  %v2858_v19 = vadd.f32 %v2794_v20, %v7135_v14  ;;  %v2801_v35 = vadd.f32 %v6432_v33, %v2715_v2  ;;  %v2717_v6 = vmul.f32 %v6435_v53, %v2632_v17  ;;  %v2629_v34 = vmul.f32 %v6635_v24, %v7137_v36 }
 0x467   : > { %3248 = vmatmul.mubr.bf16.gmra.mrb[48].mxu0 %v2904_v16  ;;  %v2862_v63 = vadd.f32 %v2798_v48, %v7136_v12  ;;  %v2805_v40 = vadd.f32 %v6432_v33, %v2719_v0  ;;  %v2721_v44 = vmul.f32 %v6435_v53, %v2636_v42  ;;  %v2633_v37 = vmul.f32 %v6635_v24, %v6166_v38 }
 0x468   : > { %v2865_v61 = vadd.f32 %v2801_v35, %v6150_v23  ;;  %v2803_v10 = vadd.f32 %v6453_v43, %v2717_v6  ;;  %v2714_v28 = vmul.f32 %v6438_v8, %v2629_v34  ;;  %v2631_v27 = vmul.f32 %v6652_v18, %v7138_v22 }
 0x469   : > { %v2906_v14 = vpack.c.bf16 %v2862_v63, %v2858_v19  ;;  %v2869_v21 = vadd.f32 %v2805_v40, %v6194_v41  ;;  %v2807_v39 = vadd.f32 %v6453_v43, %v2721_v44  ;;  %v2718_v29 = vmul.f32 %v6438_v8, %v2633_v37 }
 0x46a   : > { %v2867_v12 = vadd.f32 %v2803_v10, %v6161_v25  ;;  %v2800_v7 = vadd.f32 %v6456_v1, %v2714_v28  ;;  %v2635_v23 = vmul.f32 %v6652_v18, %v6182_v26  ;;  %v2716_v31 = vmul.f32 %v6459_v4, %v2631_v27 }
 0x46b   : > { %3345 = vmatmul.mubr.bf16.gmra.mrb[48].mxu1 %v2906_v14  ;;  %v2909_v58 = vpack.c.bf16 %v2869_v21, %v2865_v61  ;;  %v2871_v50 = vadd.f32 %v2807_v39, %v6215_v57  ;;  %v2804_v55 = vadd.f32 %v6456_v1, %v2718_v29  ;;  %v2638_v41 = vmul.f32 %v6615_v3, %v6278_v30 }
 0x46c   : > { %v2864_v60 = vadd.f32 %v2800_v7, %v7137_v36  ;;  %v2720_v25 = vmul.f32 %v6459_v4, %v2635_v23  ;;  %v2802_v56 = vadd.f32 %v6462_v15, %v2716_v31  ;;  %v2642_v32 = vmul.f32 %v6615_v3, %v6301_v54  ;;  %v7139_v7 = vld [vmem:[#allocation64_spill] sm:$0xff] }
 0x46d   : > { %3255 = vmatprep.mubr.bf16.mxu0 %v2909_v58  ;;  %v2911_v13 = vpack.c.bf16 %v2871_v50, %v2867_v12  ;;  %v2868_v47 = vadd.f32 %v2804_v55, %v6166_v38  ;;  %v2723_v57 = vmul.f32 %v6429_v46, %v2638_v41  ;;  %v2640_v51 = vmul.f32 %v6629_v62, %v6287_v52  ;;  %v7140_v50 = vld [vmem:[#allocation61_spill] sm:$0xff] }
 0x46e   : > { %v2806_v20 = vadd.f32 %v6462_v15, %v2720_v25  ;;  %v2866_v2 = vadd.f32 %v2802_v56, %v7138_v22  ;;  %v2727_v17 = vmul.f32 %v6429_v46, %v2642_v32  ;;  %v2644_v16 = vmul.f32 %v6629_v62, %v6308_v11  ;;  %v7141_v25 = vld [vmem:[#allocation65_spill] sm:$0xff] }
 0x46f   : > { %3352 = vmatprep.mubr.bf16.mxu1 %v2911_v13  ;;  %v2908_v48 = vpack.c.bf16 %v2868_v47, %v2864_v60  ;;  %v2809_v0 = vadd.f32 %v6432_v33, %v2723_v57  ;;  %v2725_v38 = vmul.f32 %v6435_v53, %v2640_v51  ;;  %v2637_v42 = vmul.f32 %v6635_v24, %v6218_v9  ;;  %v7142_v13 = vld [vmem:[#allocation49_spill] sm:$0xff] }
 0x470   : > { %v2870_v19 = vadd.f32 %v2806_v20, %v6182_v26  ;;  %v2813_v35 = vadd.f32 %v6432_v33, %v2727_v17  ;;  %v2729_v6 = vmul.f32 %v6435_v53, %v2644_v16  ;;  %v2641_v36 = vmul.f32 %v6635_v24, %v6290_v5  ;;  %v7143_v20 = vld [vmem:[#allocation62_spill] sm:$0xff]  ;;  %v7144_v16 = vld [vmem:[#allocation60_spill] sm:$0xff] }
 0x471   : > { %3256 = vmatmul.mubr.bf16.gmra.mrb[52].mxu0 %v2908_v48  ;;  %v2873_v34 = vadd.f32 %v2809_v0, %v6278_v30  ;;  %v2811_v63 = vadd.f32 %v6453_v43, %v2725_v38  ;;  %v2722_v40 = vmul.f32 %v6438_v8, %v2637_v42  ;;  %v2639_v44 = vmul.f32 %v6652_v18, %v6249_v59  ;;  %v7145_v42 = vld [vmem:[#allocation63_spill] sm:$0xff] }
 0x472   : > { %v2910_v37 = vpack.c.bf16 %v2870_v19, %v2866_v2  ;;  %v2877_v26 = vadd.f32 %v2813_v35, %v6301_v54  ;;  %v2815_v61 = vadd.f32 %v6453_v43, %v2729_v6  ;;  %v2726_v10 = vmul.f32 %v6438_v8, %v2641_v36 }
 0x473   : > { %v2875_v28 = vadd.f32 %v2811_v63, %v6287_v52  ;;  %v2808_v22 = vadd.f32 %v6456_v1, %v2722_v40  ;;  %v2643_v30 = vmul.f32 %v6652_v18, %v6298_v45  ;;  %v2724_v27 = vmul.f32 %v6459_v4, %v2639_v44 }
 0x474   : > { %3353 = vmatmul.mubr.bf16.gmra.mrb[52].mxu1 %v2910_v37  ;;  %v2913_v14 = vpack.c.bf16 %v2877_v26, %v2873_v34  ;;  %v2879_v21 = vadd.f32 %v2815_v61, %v6308_v11  ;;  %v2812_v39 = vadd.f32 %v6456_v1, %v2726_v10  ;;  %v2646_v54 = vmul.f32 %v6615_v3, %v6340_v49  ;;  %v6799_v10 = vld [vmem:[%s6914_s10] ss:$0 sm:$0xff] }
 0x475   : > { %v2872_v29 = vadd.f32 %v2808_v22, %v6218_v9  ;;  %v2728_v52 = vmul.f32 %v6459_v4, %v2643_v30  ;;  %v2810_v12 = vadd.f32 %v6462_v15, %v2724_v27  ;;  %v2650_v23 = vmul.f32 %v6615_v3, %v7139_v7 }
 0x476   : > { %3263 = vmatprep.mubr.bf16.mxu0 %v2913_v14  ;;  %v2915_v31 = vpack.c.bf16 %v2879_v21, %v2875_v28  ;;  %v2876_v58 = vadd.f32 %v2812_v39, %v6290_v5  ;;  %v2731_v11 = vmul.f32 %v6429_v46, %v2646_v54  ;;  %v2648_v55 = vmul.f32 %v6629_v62, %v7140_v50 }
 0x477   : > { %v2814_v41 = vadd.f32 %v6462_v15, %v2728_v52  ;;  %v2874_v9 = vadd.f32 %v2810_v12, %v6249_v59  ;;  %v2735_v60 = vmul.f32 %v6429_v46, %v2650_v23  ;;  %v2652_v56 = vmul.f32 %v6629_v62, %v7141_v25  ;;  %v4095_v23 = vld [vmem:[%s4567_s29] sm:$0xff] }
 0x478   : > { %3360 = vmatprep.mubr.bf16.mxu1 %v2915_v31  ;;  %v2912_v3 = vpack.c.bf16 %v2876_v58, %v2872_v29  ;;  %v2817_v32 = vadd.f32 %v6432_v33, %v2731_v11  ;;  %v2733_v5 = vmul.f32 %v6435_v53, %v2648_v55  ;;  %v2645_v47 = vmul.f32 %v6635_v24, %v7142_v13  ;;  %v4096_v11 = vld [vmem:[%s4567_s29 + $0x8] sm:$0xff] }
 0x479   : > { %v2878_v57 = vadd.f32 %v2814_v41, %v6298_v45  ;;  %v2821_v51 = vadd.f32 %v6432_v33, %v2735_v60  ;;  %v2737_v59 = vmul.f32 %v6435_v53, %v2652_v56  ;;  %v2649_v46 = vmul.f32 %v6635_v24, %v7143_v20 }
 0x47a   : > { %3264 = vmatmul.mubr.bf16.gmra.mrb[56].mxu0 %v2912_v3  ;;  %v2881_v62 = vadd.f32 %v2817_v32, %v6340_v49  ;;  %v2819_v2 = vadd.f32 %v6453_v43, %v2733_v5  ;;  %v2730_v17 = vmul.f32 %v6438_v8, %v2645_v47  ;;  %v2647_v48 = vmul.f32 %v6652_v18, %v7144_v16 }
 0x47b   : > { %v2914_v0 = vpack.c.bf16 %v2878_v57, %v2874_v9  ;;  %v2885_v45 = vadd.f32 %v2821_v51, %v7139_v7  ;;  %v2823_v33 = vadd.f32 %v6453_v43, %v2737_v59  ;;  %v2734_v53 = vmul.f32 %v6438_v8, %v2649_v46  ;;  %v4097_v46 = vld [vmem:[%s4567_s29 + $0x10] sm:$0xff] }
 0x47c   : > { %v2883_v38 = vadd.f32 %v2819_v2, %v7140_v50  ;;  %v2816_v24 = vadd.f32 %v6456_v1, %v2730_v17  ;;  %v2651_v49 = vmul.f32 %v6652_v18, %v7145_v42  ;;  %v2732_v19 = vmul.f32 %v6459_v4, %v2647_v48 }
 0x47d   : > { %3361 = vmatmul.mubr.bf16.gmra.mrb[56].mxu1 %v2914_v0  ;;  %v2917_v35 = vpack.c.bf16 %v2885_v45, %v2881_v62  ;;  %v2887_v6 = vadd.f32 %v2823_v33, %v7141_v25  ;;  %v2820_v36 = vadd.f32 %v6456_v1, %v2734_v53 }
 0x47e   : > { %v2880_v34 = vadd.f32 %v2816_v24, %v7142_v13  ;;  %v2736_v43 = vmul.f32 %v6459_v4, %v2651_v49  ;;  %v2818_v8 = vadd.f32 %v6462_v15, %v2732_v19 }
 0x47f   : > { %3271 = vmatprep.mubr.bf16.mxu0 %v2917_v35  ;;  %v2919_v63 = vpack.c.bf16 %v2887_v6, %v2883_v38  ;;  %v2884_v40 = vadd.f32 %v2820_v36, %v7143_v20 }
 0x480   : > { %v2822_v18 = vadd.f32 %v6462_v15, %v2736_v43  ;;  %v2882_v44 = vadd.f32 %v2818_v8, %v7144_v16  ;;  %v4098_v16 = vld [vmem:[%s4567_s29 + $0x18] sm:$0xff]  ;;  %v4099_v8 = vld [vmem:[%s4567_s29 + $0x20] sm:$0xff] }
 0x481   : > { %3368 = vmatprep.mubr.bf16.mxu1 %v2919_v63  ;;  %v2916_v37 = vpack.c.bf16 %v2884_v40, %v2880_v34 }
 0x482   : > { %v2886_v26 = vadd.f32 %v2822_v18, %v7145_v42 }
 0x483   : > { %3272 = vmatmul.mubr.bf16.gmra.mrb[60].mxu0 %v2916_v37 }
 0x484   : > { %v2918_v1 = vpack.c.bf16 %v2886_v26, %v2882_v44  ;;  %v4100_v44 = vld [vmem:[%s4567_s29 + $0x28] sm:$0xff] }
 0x486   : > { %3369 = vmatmul.mubr.bf16.gmra.mrb[60].mxu1 %v2918_v1 }
 0x514   : > { %v3636_v61 = vpop.f32.mrb[32].mxu0  ;;  %v3700_v4 = vpop.f32.mrb[32].mxu1 }
 0x515   : > { %v3637_v28 = vpop.f32.mrb[33].mxu0  ;;  %v3701_v15 = vpop.f32.mrb[33].mxu1 }
 0x516   : > { %v3638_v22 = vadd.f32 %v3637_v28, %v3636_v61  ;;  %v3702_v30 = vadd.f32 %v3701_v15, %v3700_v4  ;;  %v3639_v27 = vpop.f32.mrb[34].mxu0  ;;  %v3703_v14 = vpop.f32.mrb[34].mxu1 }
 0x517   : > { %v3640_v21 = vpop.f32.mrb[35].mxu0  ;;  %v3704_v39 = vpop.f32.mrb[35].mxu1 }
 0x518   : > { %v3218_v54 = vadd.f32 %v3638_v22, %v6799_v10  ;;  %v3641_v29 = vadd.f32 %v3640_v21, %v3639_v27  ;;  %v3705_v52 = vadd.f32 %v3704_v39, %v3703_v14 }
 0x51a   : > { %v3315_v12 = vadd.f32 %v3702_v30, %v3218_v54  ;;  %v3221_v7 = vadd.f32 %v3641_v29, %v6799_v10 }
 0x51c   : > { %v3377_v31 = vadd.f32 %v4095_v23, %v3315_v12  ;;  %v3318_v58 = vadd.f32 %v3705_v52, %v3221_v7  ;;  %v4101_v52 = vld [vmem:[%s4567_s29 + $0x30] sm:$0xff] }
 0x51e   : > { %3393 = vst [vmem:[%s6806_s1] sm:$0xff] %v3377_v31  ;;  %v3378_v50 = vadd.f32 %v4096_v11, %v3318_v58  ;;  %v3642_v55 = vpop.f32.mrb[36].mxu0  ;;  %v4102_v58 = vld [vmem:[%s4567_s29 + $0x38] sm:$0xff] }
 0x51f   : > { %v3643_v41 = vpop.f32.mrb[37].mxu0 }
 0x520   : > { %3394 = vst [vmem:[%s6806_s1 + $0x8] sm:$0xff] %v3378_v50  ;;  %v3644_v9 = vadd.f32 %v3643_v41, %v3642_v55  ;;  %v3645_v60 = vpop.f32.mrb[38].mxu0 }
 0x521   : > { %v3706_v25 = vpop.f32.mrb[36].mxu1  ;;  %v3646_v56 = vpop.f32.mrb[39].mxu0 }
 0x522   : > { %v3226_v3 = vadd.f32 %v3644_v9, %v6799_v10  ;;  %v3707_v32 = vpop.f32.mrb[37].mxu1  ;;  %v3647_v5 = vadd.f32 %v3646_v56, %v3645_v60 }
 0x523   : > { %v3708_v13 = vadd.f32 %v3707_v32, %v3706_v25  ;;  %v3709_v47 = vpop.f32.mrb[38].mxu1 }
 0x524   : > { %v3229_v57 = vadd.f32 %v3647_v5, %v6799_v10  ;;  %v3710_v51 = vpop.f32.mrb[39].mxu1 }
 0x525   : > { %v3323_v59 = vadd.f32 %v3708_v13, %v3226_v3  ;;  %v3711_v20 = vadd.f32 %v3710_v51, %v3709_v47  ;;  %v4103_v51 = vld [vmem:[%s4567_s29 + $0x40] sm:$0xff] }
 0x527   : > { %v3379_v62 = vadd.f32 %v4097_v46, %v3323_v59  ;;  %v3326_v2 = vadd.f32 %v3711_v20, %v3229_v57 }
 0x528   : > { %v3648_v17 = vpop.f32.mrb[40].mxu0 }
 0x529   : > { %3395 = vst [vmem:[%s6806_s1 + $0x10] sm:$0xff] %v3379_v62  ;;  %v3380_v48 = vadd.f32 %v4098_v16, %v3326_v2  ;;  %v3649_v0 = vpop.f32.mrb[41].mxu0  ;;  %v4104_v2 = vld [vmem:[%s4567_s29 + $0x48] sm:$0xff] }
 0x52a   : > { %v3712_v45 = vpop.f32.mrb[40].mxu1  ;;  %v3650_v33 = vadd.f32 %v3649_v0, %v3648_v17  ;;  %v3651_v53 = vpop.f32.mrb[42].mxu0 }
 0x52b   : > { %3396 = vst [vmem:[%s6806_s1 + $0x18] sm:$0xff] %v3380_v48  ;;  %v3713_v38 = vpop.f32.mrb[41].mxu1  ;;  %v3652_v24 = vpop.f32.mrb[43].mxu0 }
 0x52c   : > { %v3234_v42 = vadd.f32 %v3650_v33, %v6799_v10  ;;  %v3714_v49 = vadd.f32 %v3713_v38, %v3712_v45  ;;  %v3715_v19 = vpop.f32.mrb[42].mxu1  ;;  %v3653_v35 = vadd.f32 %v3652_v24, %v3651_v53 }
 0x52d   : > { %v3716_v6 = vpop.f32.mrb[43].mxu1 }
 0x52e   : > { %v3331_v36 = vadd.f32 %v3714_v49, %v3234_v42  ;;  %v3237_v34 = vadd.f32 %v3653_v35, %v6799_v10  ;;  %v3717_v43 = vadd.f32 %v3716_v6, %v3715_v19 }
 0x530   : > { %v3381_v63 = vadd.f32 %v4099_v8, %v3331_v36  ;;  %v3334_v40 = vadd.f32 %v3717_v43, %v3237_v34  ;;  %v4105_v36 = vld [vmem:[%s4567_s29 + $0x50] sm:$0xff] }
 0x531   : > { %v3654_v18 = vpop.f32.mrb[44].mxu0 }
 0x532   : > { %3397 = vst [vmem:[%s6806_s1 + $0x20] sm:$0xff] %v3381_v63  ;;  %v3382_v37 = vadd.f32 %v4100_v44, %v3334_v40  ;;  %v3655_v26 = vpop.f32.mrb[45].mxu0  ;;  %v4106_v40 = vld [vmem:[%s4567_s29 + $0x58] sm:$0xff] }
 0x533   : > { %v3656_v1 = vadd.f32 %v3655_v26, %v3654_v18  ;;  %v3657_v61 = vpop.f32.mrb[46].mxu0 }
 0x534   : > { %3398 = vst [vmem:[%s6806_s1 + $0x28] sm:$0xff] %v3382_v37  ;;  %v3718_v4 = vpop.f32.mrb[44].mxu1  ;;  %v3658_v28 = vpop.f32.mrb[47].mxu0 }
 0x535   : > { %v3242_v15 = vadd.f32 %v3656_v1, %v6799_v10  ;;  %v3719_v22 = vpop.f32.mrb[45].mxu1  ;;  %v3659_v30 = vadd.f32 %v3658_v28, %v3657_v61 }
 0x536   : > { %v3720_v27 = vadd.f32 %v3719_v22, %v3718_v4  ;;  %v3721_v14 = vpop.f32.mrb[46].mxu1 }
 0x537   : > { %v3245_v21 = vadd.f32 %v3659_v30, %v6799_v10  ;;  %v3722_v39 = vpop.f32.mrb[47].mxu1 }
 0x538   : > { %v3339_v54 = vadd.f32 %v3720_v27, %v3242_v15  ;;  %v3723_v29 = vadd.f32 %v3722_v39, %v3721_v14  ;;  %v4107_v39 = vld [vmem:[%s4567_s29 + $0x60] sm:$0xff] }
 0x53a   : > { %v3383_v12 = vadd.f32 %v4101_v52, %v3339_v54  ;;  %v3342_v7 = vadd.f32 %v3723_v29, %v3245_v21  ;;  %v3660_v23 = vpop.f32.mrb[48].mxu0 }
 0x53b   : > { %v3661_v31 = vpop.f32.mrb[49].mxu0 }
 0x53c   : > { %3399 = vst [vmem:[%s6806_s1 + $0x30] sm:$0xff] %v3383_v12  ;;  %v3384_v11 = vadd.f32 %v4102_v58, %v3342_v7  ;;  %v3662_v50 = vadd.f32 %v3661_v31, %v3660_v23  ;;  %v3663_v55 = vpop.f32.mrb[50].mxu0  ;;  %v4108_v7 = vld [vmem:[%s4567_s29 + $0x68] sm:$0xff] }
 0x53d   : > { %v3664_v41 = vpop.f32.mrb[51].mxu0 }
 0x53e   : > { %3400 = vst [vmem:[%s6806_s1 + $0x38] sm:$0xff] %v3384_v11  ;;  %v3724_v9 = vpop.f32.mrb[48].mxu1  ;;  %v3250_v60 = vadd.f32 %v3662_v50, %v6799_v10  ;;  %v3665_v25 = vadd.f32 %v3664_v41, %v3663_v55 }
 0x53f   : > { %v3725_v56 = vpop.f32.mrb[49].mxu1 }
 0x540   : > { %v3726_v3 = vadd.f32 %v3725_v56, %v3724_v9  ;;  %v3727_v32 = vpop.f32.mrb[50].mxu1  ;;  %v3253_v5 = vadd.f32 %v3665_v25, %v6799_v10 }
 0x541   : > { %v3728_v13 = vpop.f32.mrb[51].mxu1 }
 0x542   : > { %v3347_v47 = vadd.f32 %v3726_v3, %v3250_v60  ;;  %v3729_v57 = vadd.f32 %v3728_v13, %v3727_v32  ;;  %v4109_v13 = vld [vmem:[%s4567_s29 + $0x70] sm:$0xff] }
 0x544   : > { %v3385_v59 = vadd.f32 %v4103_v51, %v3347_v47  ;;  %v3350_v20 = vadd.f32 %v3729_v57, %v3253_v5  ;;  %v3666_v46 = vpop.f32.mrb[52].mxu0 }
 0x545   : > { %v3667_v62 = vpop.f32.mrb[53].mxu0 }
 0x546   : > { %3401 = vst [vmem:[%s6806_s1 + $0x40] sm:$0xff] %v3385_v59  ;;  %v3386_v17 = vadd.f32 %v4104_v2, %v3350_v20  ;;  %v3668_v16 = vadd.f32 %v3667_v62, %v3666_v46  ;;  %v3669_v48 = vpop.f32.mrb[54].mxu0 }
 0x547   : > { %v3730_v0 = vpop.f32.mrb[52].mxu1  ;;  %v3670_v45 = vpop.f32.mrb[55].mxu0 }
 0x548   : > { %3402 = vst [vmem:[%s6806_s1 + $0x48] sm:$0xff] %v3386_v17  ;;  %v3258_v33 = vadd.f32 %v3668_v16, %v6799_v10  ;;  %v3731_v53 = vpop.f32.mrb[53].mxu1  ;;  %v3671_v38 = vadd.f32 %v3670_v45, %v3669_v48 }
 0x549   : > { %v3732_v24 = vadd.f32 %v3731_v53, %v3730_v0  ;;  %v3733_v42 = vpop.f32.mrb[54].mxu1 }
 0x54a   : > { %v3261_v49 = vadd.f32 %v3671_v38, %v6799_v10  ;;  %v3734_v19 = vpop.f32.mrb[55].mxu1 }
 0x54b   : > { %v3355_v35 = vadd.f32 %v3732_v24, %v3258_v33  ;;  %v3735_v6 = vadd.f32 %v3734_v19, %v3733_v42 }
 0x54d   : > { %v3387_v34 = vadd.f32 %v4105_v36, %v3355_v35  ;;  %v3358_v43 = vadd.f32 %v3735_v6, %v3261_v49  ;;  %v3672_v8 = vpop.f32.mrb[56].mxu0 }
 0x54e   : > { %v3673_v63 = vpop.f32.mrb[57].mxu0 }
 0x54f   : > { %3403 = vst [vmem:[%s6806_s1 + $0x50] sm:$0xff] %v3387_v34  ;;  %v3388_v18 = vadd.f32 %v4106_v40, %v3358_v43  ;;  %v3674_v44 = vadd.f32 %v3673_v63, %v3672_v8  ;;  %v3675_v37 = vpop.f32.mrb[58].mxu0 }
 0x550   : > { %v3736_v26 = vpop.f32.mrb[56].mxu1  ;;  %v3676_v1 = vpop.f32.mrb[59].mxu0 }
 0x551   : > { %3404 = vst [vmem:[%s6806_s1 + $0x58] sm:$0xff] %v3388_v18  ;;  %v3266_v61 = vadd.f32 %v3674_v44, %v6799_v10  ;;  %v3737_v4 = vpop.f32.mrb[57].mxu1  ;;  %v3677_v28 = vadd.f32 %v3676_v1, %v3675_v37 }
 0x552   : > { %v3738_v15 = vadd.f32 %v3737_v4, %v3736_v26  ;;  %v3739_v22 = vpop.f32.mrb[58].mxu1 }
 0x553   : > { %v3269_v30 = vadd.f32 %v3677_v28, %v6799_v10  ;;  %v3740_v27 = vpop.f32.mrb[59].mxu1 }
 0x554   : > { %v3363_v14 = vadd.f32 %v3738_v15, %v3266_v61  ;;  %v3741_v21 = vadd.f32 %v3740_v27, %v3739_v22 }
 0x556   : > { %v3389_v54 = vadd.f32 %v4107_v39, %v3363_v14  ;;  %v3366_v29 = vadd.f32 %v3741_v21, %v3269_v30  ;;  %v3678_v52 = vpop.f32.mrb[60].mxu0 }
 0x557   : > { %v3679_v12 = vpop.f32.mrb[61].mxu0 }
 0x558   : > { %3405 = vst [vmem:[%s6806_s1 + $0x60] sm:$0xff] %v3389_v54  ;;  %v3390_v23 = vadd.f32 %v4108_v7, %v3366_v29  ;;  %v3680_v31 = vadd.f32 %v3679_v12, %v3678_v52  ;;  %v3681_v58 = vpop.f32.mrb[62].mxu0 }
 0x559   : > { %v3742_v11 = vpop.f32.mrb[60].mxu1  ;;  %v3682_v50 = vpop.f32.mrb[63].mxu0 }
 0x55a   : > { %3406 = vst [vmem:[%s6806_s1 + $0x68] sm:$0xff] %v3390_v23  ;;  %v3274_v55 = vadd.f32 %v3680_v31, %v6799_v10  ;;  %v3743_v41 = vpop.f32.mrb[61].mxu1  ;;  %v3683_v9 = vadd.f32 %v3682_v50, %v3681_v58 }
 0x55b   : > { %v3744_v60 = vadd.f32 %v3743_v41, %v3742_v11  ;;  %v3745_v25 = vpop.f32.mrb[62].mxu1 }
 0x55c   : > { %v3277_v56 = vadd.f32 %v3683_v9, %v6799_v10  ;;  %v3746_v3 = vpop.f32.mrb[63].mxu1  ;;  %v4110_v10 = vld [vmem:[%s4567_s29 + $0x78] sm:$0xff] }
 0x55d   : > { %v3371_v32 = vadd.f32 %v3744_v60, %v3274_v55  ;;  %v3747_v5 = vadd.f32 %v3746_v3, %v3745_v25 }
 0x55f   : > { %v3391_v47 = vadd.f32 %v4109_v13, %v3371_v32  ;;  %v3374_v57 = vadd.f32 %v3747_v5, %v3277_v56 }
 0x561   : > { %3407 = vst [vmem:[%s6806_s1 + $0x70] sm:$0xff] %v3391_v47  ;;  %v3392_v51 = vadd.f32 %v4110_v10, %v3374_v57 }
 0x563   : > { %3408 = vst [vmem:[%s6806_s1 + $0x78] sm:$0xff] %v3392_v51 }
 0x564   : > { %4238 = shalt.err (!%p4235_p13)
}
 0x565   : > { %s4239_s29 = scalar_lea.hbm %s6855_s22, 2048  ;;  %s4243_s27 = scalar_lea.hbm %s7146_s12, 4096 }
 0x566   : > { %p4240_p0 = scmp.ne.s32.totalorder %s6855_s22, %s4239_s29  ;;  %p4244_p9 = scmp.lt.u32.totalorder %s6855_s22, %s7146_s12 }
 0x567   : > { %p4245_p12 = scmp.lt.u32.totalorder %s4243_s27, %s4239_s29  ;;  %p4247_p1 = scmp.lt.u32.totalorder %s4239_s29, %s6855_s22 }
 0x568   : > { %p4241_p5 = pnand %p4240_p0, %p4513_p6 }
 0x569   : > { %p4246_p2 = por %p4245_p12, %p4244_p9 }
 0x56a   : > { %p4242_p11 = pneg %p4241_p5 }
 0x56b   : > { %p4248_p4 = por %p4247_p1, %p4246_p2 }
 0x56d   : > { %p4249_p8 = pnand %p4248_p4, %p4242_p11 }
 0x56f   : > { %4252 = shalt.err (!%p4249_p8)
}
 0x570   : > { %s4313_s21 = smov 128   ;;  %s4314_s30 = smov 8  }
 0x571   : > { %3762 = dma.vmem_to_hbm [thread:$0]  (%p4513_p6), %s6857_s28, 2048, %s6855_s22, %s3410_s13, %s4313_s21, %s4313_s21, %s4314_s30  }
 0x572 PF: > { %s7147_s23 = sld [smem:[#allocation15_spill]]  ;;  %s7148_s25 = sld [smem:[#allocation16_spill]] }
 0x573   : > { %p7150_p7 = scmp.ge.s32.totalorder %s4299_s20, 2 }
 0x578   : > { %s3439_s15 = sand.u32 1, %s7147_s23   ;;  %p7149_p3 = scmp.ne.s32.totalorder %s7148_s25, 0 }
 0x579   : > { %s3440_s29 = scalar_lea.sflag [#allocation4], %s3439_s15 }
 0x57a   : > { %p3779_p10 = pnand %p7150_p7, %p7149_p3 }
 0x57c   : > { %4282 = dma.done.wait (!%p3779_p10), %s3440_s29, 2048  }
 0x57d   : > { %4284 = vsyncadd (!%p3779_p10), %s3440_s29, 4294965248  ;;  %p26_p13 = scmp.ge.s32.totalorder %s4499_s11, 4   ;;  %s7151_s17 = smov %s4291_s18 }
 0x57e   : > { %s7152_s18 = smov %s4295_s19  ;;  %s7153_s19 = smov %s4509_s16 }
 0x57f   : > { %s7154_s20 = smov %s4499_s11  ;;  %28 = sbr.rel (!%p26_p13) target bundleno = 10 (0xa), region = 121 }
 0x586   :  { %3445 = vsyncpa [#allocation3], 1 }
 0x587   :  { %3447 = vsyncpa [#allocation3 + $0x1], 1 }
 0x588   :  { %3448 = vsyncpa [#allocation6], 1 }
 0x589   :  { %3449 = vsyncpa [#allocation9], 1 }
 0x58a   :  { %3450 = vsyncpa [#allocation4], 1 }
 0x58b   :  { %3452 = vsyncpa [#allocation4 + $0x1], 1 }

</bundles_post_ra>
